<compile_context>
chip_gen: v5e
topology: v5e:2x2
jax: 0.10.0
libtpu: 0.0.40
codegen_flags: <defaults>
</compile_context>

<pallas_src>
import functools

import jax
import jax.numpy as jnp
import numpy as np
from jax import lax
from jax.experimental import pallas as pl
from jax.experimental.pallas import tpu as pltpu

BN_EPS = 1e-5
C1, C1P = 10, 16          # conv1 out-channels (padded to 16)
C2, C2P = 20, 24          # conv2 out-channels (padded to 24)
N_OFF = 36                # 6x6 combined (pool-tap + kernel) offsets per stage
N_POS2 = 16               # 4x4 pooled output positions of stage 2
TAPS = ((0, 0), (0, 1), (1, 0), (1, 1))


# ---------------------------------------------------------------------------
# Fused kernel: conv1+pool+relu+bn1 -> conv2+pool+relu+bn2 -> fc1 -> fc2
# ---------------------------------------------------------------------------
def _mnist_kernel(cols_ref, mask_ref, w1_ref, w2_ref, w3_ref, w4_ref,
                  p1_ref, p2_ref, pfc_ref, o_ref, *, batch, eps):
    B = batch
    nb = N_POS2 * B                      # lanes per stage-2 offset block

    # ---- stage 1: conv1 (+bias) for all 4 pool taps in ONE dot, maxpool,
    #      relu, training-mode BatchNorm with one-pass masked stats ----------
    acc1 = jnp.dot(w1_ref[...], cols_ref[...],
                   preferred_element_type=jnp.float32)          # (4*C1P, 36*nb)
    h = acc1[0:C1P]
    for t in range(1, 4):
        h = jnp.maximum(h, acc1[t * C1P:(t + 1) * C1P])
    p1 = p1_ref[...]
    h = jnp.maximum(h + p1[:, 0:1], 0.0)                        # bias + relu
    msk = mask_ref[...]                                         # (1, 36*nb) 0/1
    inv1 = 1.0 / float(144 * B)                                 # unique (b,y,x)
    hm = h * msk
    mean1 = jnp.sum(hm, axis=1, keepdims=True) * inv1
    var1 = jnp.maximum(
        jnp.sum(hm * h, axis=1, keepdims=True) * inv1 - mean1 * mean1, 0.0)
    h1 = (h - mean1) * lax.rsqrt(var1 + eps) * p1[:, 1:2] + p1[:, 2:3]

    # ---- stage 2: conv2 for all 4 pool taps in ONE dot.  The contraction
    #      axis (offset o2, in-channel c) is built by restacking the 36
    #      lane-aligned offset blocks of h1 onto sublanes (VMEM copies only).
    rhs2 = jnp.concatenate(
        [h1[:, o * nb:(o + 1) * nb] for o in range(N_OFF)],
        axis=0).astype(jnp.bfloat16)                            # (36*C1P, nb)
    acc2 = jnp.dot(w2_ref[...], rhs2,
                   preferred_element_type=jnp.float32)          # (4*C2P, nb)
    h2 = acc2[0:C2P]
    for t in range(1, 4):
        h2 = jnp.maximum(h2, acc2[t * C2P:(t + 1) * C2P])
    p2 = p2_ref[...]
    h2 = jnp.maximum(h2 + p2[:, 0:1], 0.0)
    inv2 = 1.0 / float(N_POS2 * B)
    mean2 = jnp.sum(h2, axis=1, keepdims=True) * inv2
    var2 = jnp.maximum(
        jnp.sum(h2 * h2, axis=1, keepdims=True) * inv2 - mean2 * mean2, 0.0)
    h2 = (h2 - mean2) * lax.rsqrt(var2 + eps) * p2[:, 1:2] + p2[:, 2:3]

    # ---- fc1 as ONE dot: restack the 16 spatial positions onto sublanes ----
    rhs3 = jnp.concatenate(
        [h2[:, p * B:(p + 1) * B] for p in range(N_POS2)],
        axis=0).astype(jnp.bfloat16)                            # (16*C2P, B)
    pfc = pfc_ref[...]
    fc1 = jnp.dot(w3_ref[...], rhs3, preferred_element_type=jnp.float32)
    fc1 = jnp.maximum(fc1 + pfc[0:50, 0:1], 0.0)                # (50, B)

    # ---- fc2 + log_softmax --------------------------------------------------
    logits = jnp.dot(w4_ref[...], fc1.astype(jnp.bfloat16),
                     preferred_element_type=jnp.float32) + pfc[0:10, 1:2]
    mx = jnp.max(logits, axis=0, keepdims=True)
    s = logits - mx
    lse = jnp.log(jnp.sum(jnp.exp(s), axis=0, keepdims=True))
    o_ref[...] = (s - lse).astype(o_ref.dtype)


# ---------------------------------------------------------------------------
# Wrapper: patch construction (pure static slices in XLA) + pallas_call
# ---------------------------------------------------------------------------
def mnist_forward(x, kp):
    """Forward pass of the MNIST module.  x: (B, 1, 28, 28) f32, NCHW."""
    B = x.shape[0]
    nb = N_POS2 * B

    x2 = x[:, 0]                                             # (B, 28, 28)
    # P1[o1y, o1x, b, y, x] = x2[b, o1y + 2y, o1x + 2x],  y, x in [0, 12)
    p1 = jnp.stack([jnp.stack([x2[:, oy:oy + 23:2, ox:ox + 23:2]
                               for ox in range(6)], 0)
                    for oy in range(6)], 0)                  # (6, 6, B, 12, 12)
    # cols[o2y, o2x, o1y, o1x, b, i, j] = P1[o1y, o1x, b, o2y + 2i, o2x + 2j]
    cols = jnp.stack([jnp.stack([p1[:, :, :, oy:oy + 7:2, ox:ox + 7:2]
                                 for ox in range(6)], 0)
                      for oy in range(6)], 0)                # (6, 6, 6, 6, B, 4, 4)
    # rows = stage-1 offsets (36); columns = (o2, pos, b) = stage-2 layout
    cols = cols.transpose(2, 3, 0, 1, 5, 6, 4).reshape(N_OFF, N_OFF * nb)
    cols = cols.astype(jnp.bfloat16)

    # 0/1 mask selecting each unique (b, y, x) of the 12x12 pooled map exactly
    # once among the duplicated stage-1 columns (for the bn1 batch stats).
    ar6, ar4 = np.arange(6), np.arange(4)
    canon = (ar6[:, None] <= 1) | (ar4[None, :] == 3)        # (o2y, i)
    msk = canon[:, None, :, None] & canon[None, :, None, :]  # (o2y, o2x, i, j)
    mask = np.broadcast_to(msk.reshape(N_OFF * N_POS2, 1),
                           (N_OFF * N_POS2, B)).reshape(1, -1)
    mask = jnp.asarray(mask, jnp.float32)

    kernel = functools.partial(_mnist_kernel, batch=B, eps=BN_EPS)
    args = (cols, mask, kp["w1"], kp["w2"], kp["w3"], kp["w4"],
            kp["p1"], kp["p2"], kp["pfc"])

    def _full(shape):
        return pl.BlockSpec(shape, lambda i: (0,) * len(shape))

    out_t = pl.pallas_call(
        kernel,
        out_shape=jax.ShapeDtypeStruct((10, B), jnp.float32),
        grid=(1,),
        in_specs=[_full(a.shape) for a in args],
        out_specs=pl.BlockSpec((10, B), lambda i: (0, 0)),
        compiler_params=pltpu.CompilerParams(
            dimension_semantics=("arbitrary",),
            vmem_limit_bytes=32 * 1024 * 1024),
    )(*args)
    return out_t.T                                           # (B, 10)


# ---------------------------------------------------------------------------
# One-time parameter re-layout (outside jit)
# ---------------------------------------------------------------------------
def prepare_params(p):
    # conv1 weight expanded over the 36 combined (pool-tap + kernel) offsets,
    # 4 pool taps stacked on the (padded) output-channel axis -> one MXU issue.
    cw1 = np.asarray(p["conv1_w"], np.float32)[:, 0]                 # (10, 5, 5)
    w1 = np.zeros((4, C1P, 6, 6), np.float32)
    for t, (dy, dx) in enumerate(TAPS):
        w1[t, :C1, dy:dy + 5, dx:dx + 5] = cw1
    # conv2 weight expanded over (offset o2, padded in-channel), taps stacked.
    cw2 = np.asarray(p["conv2_w"], np.float32).transpose(0, 2, 3, 1)  # (20,5,5,10)
    w2 = np.zeros((4, C2P, 6, 6, C1P), np.float32)
    for t, (dy, dx) in enumerate(TAPS):
        w2[t, :C2, dy:dy + 5, dx:dx + 5, :C1] = cw2
    # fc1 repacked for the (position-major, channel-minor) restack of h2;
    # torch.flatten feature order is c*16 + pos.
    fw = np.asarray(p["fc1_w"], np.float32).reshape(50, C2, 16).transpose(0, 2, 1)
    w3 = np.zeros((50, 16, C2P), np.float32)
    w3[:, :, :C2] = fw
    # packed per-channel epilogue vectors: [bias, gamma, beta, 0]
    p1v = np.zeros((C1P, 4), np.float32)
    p1v[:C1, 0] = np.asarray(p["conv1_b"])
    p1v[:C1, 1] = np.asarray(p["bn1_g"])
    p1v[:C1, 2] = np.asarray(p["bn1_b"])
    p2v = np.zeros((C2P, 4), np.float32)
    p2v[:C2, 0] = np.asarray(p["conv2_b"])
    p2v[:C2, 1] = np.asarray(p["bn2_g"])
    p2v[:C2, 2] = np.asarray(p["bn2_b"])
    pfc = np.zeros((64, 2), np.float32)
    pfc[:50, 0] = np.asarray(p["fc1_b"])
    pfc[:10, 1] = np.asarray(p["fc2_b"])
    return {
        "w1": jnp.asarray(w1.reshape(4 * C1P, N_OFF), jnp.bfloat16),
        "w2": jnp.asarray(w2.reshape(4 * C2P, N_OFF * C1P), jnp.bfloat16),
        "w3": jnp.asarray(w3.reshape(50, 16 * C2P), jnp.bfloat16),
        "w4": jnp.asarray(np.asarray(p["fc2_w"], np.float32), jnp.bfloat16),
        "p1": jnp.asarray(p1v),
        "p2": jnp.asarray(p2v),
        "pfc": jnp.asarray(pfc),
    }


# ---------------------------------------------------------------------------
# Pure-JAX f32 reference (self-check) and param init
# ---------------------------------------------------------------------------
def mnist_reference(x, p):
    def bn(y, g, b, eps=BN_EPS):
        mean = jnp.mean(y, axis=(0, 2, 3), keepdims=True)
        var = jnp.mean((y - mean) ** 2, axis=(0, 2, 3), keepdims=True)
        return ((y - mean) * lax.rsqrt(var + eps) * g.reshape(1, -1, 1, 1)
                + b.reshape(1, -1, 1, 1))

    def pool2(y):
        return lax.reduce_window(y, -jnp.inf, lax.max, (1, 1, 2, 2),
                                 (1, 1, 2, 2), "VALID")

    y = lax.conv_general_dilated(x, p["conv1_w"], (1, 1), "VALID")
    y = y + p["conv1_b"].reshape(1, -1, 1, 1)
    y = bn(jnp.maximum(pool2(y), 0.0), p["bn1_g"], p["bn1_b"])
    y = lax.conv_general_dilated(y, p["conv2_w"], (1, 1), "VALID")
    y = y + p["conv2_b"].reshape(1, -1, 1, 1)
    y = bn(jnp.maximum(pool2(y), 0.0), p["bn2_g"], p["bn2_b"])
    y = y.reshape(y.shape[0], -1)
    y = jnp.maximum(y @ p["fc1_w"].T + p["fc1_b"], 0.0)
    y = y @ p["fc2_w"].T + p["fc2_b"]
    return jax.nn.log_softmax(y, axis=-1)


def init_params(key):
    ks = jax.random.split(key, 6)
    scale = 0.1
    return {
        "conv1_w": scale * jax.random.normal(ks[0], (10, 1, 5, 5), jnp.float32),
        "conv1_b": scale * jax.random.normal(ks[1], (10,), jnp.float32),
        "bn1_g": jnp.ones((10,), jnp.float32),
        "bn1_b": jnp.zeros((10,), jnp.float32),
        "conv2_w": scale * jax.random.normal(ks[2], (20, 10, 5, 5), jnp.float32),
        "conv2_b": scale * jax.random.normal(ks[3], (20,), jnp.float32),
        "bn2_g": jnp.ones((20,), jnp.float32),
        "bn2_b": jnp.zeros((20,), jnp.float32),
        "fc1_w": scale * jax.random.normal(ks[4], (50, 320), jnp.float32),
        "fc1_b": jnp.zeros((50,), jnp.float32),
        "fc2_w": scale * jax.random.normal(ks[5], (10, 50), jnp.float32),
        "fc2_b": jnp.zeros((10,), jnp.float32),
    }


if __name__ == "__main__":
    key = jax.random.PRNGKey(0)
    k_x, k_p = jax.random.split(key)
    # batch of 8 keeps every lane slice / store 128-aligned (B % 8 == 0);
    # MNIST-shaped input (fc1 expects 20*4*4 = 320 -> 28x28 single channel).
    x = jax.random.normal(k_x, (8, 1, 28, 28), jnp.float32)   # NCHW like PyTorch
    params = init_params(k_p)
    kparams = prepare_params(params)   # weight re-layout once, outside jit

    fwd = jax.jit(mnist_forward)
    out = jax.block_until_ready(fwd(x, kparams))

    assert out.shape == (8, 10)
    # log_softmax rows must (approximately) exp-sum to 1
    assert jnp.allclose(jnp.sum(jnp.exp(out), axis=1), 1.0, atol=1e-4)
    # loose check vs the pure-JAX f32 reference (kernel uses bf16 MXU operands)
    ref = mnist_reference(x, params)
    max_err = float(jnp.max(jnp.abs(out - ref)))
    assert max_err < 0.25, f"max |log-prob diff| vs reference = {max_err}"
    print("KERNEL_OK")
</pallas_src>

<mosaic_0001>
module attributes {stable_mosaic.version = 11 : i64} {
  func.func @_mnist_kernel(%arg0: i32, %arg1: memref<36x4608xbf16, #tpu.memory_space<vmem>>, %arg2: memref<1x4608xf32, #tpu.memory_space<vmem>>, %arg3: memref<64x36xbf16, #tpu.memory_space<vmem>>, %arg4: memref<96x576xbf16, #tpu.memory_space<vmem>>, %arg5: memref<50x384xbf16, #tpu.memory_space<vmem>>, %arg6: memref<10x50xbf16, #tpu.memory_space<vmem>>, %arg7: memref<16x4xf32, #tpu.memory_space<vmem>>, %arg8: memref<24x4xf32, #tpu.memory_space<vmem>>, %arg9: memref<64x2xf32, #tpu.memory_space<vmem>>, %arg10: memref<10x8xf32, #tpu.memory_space<vmem>>) attributes {dimension_semantics = [#tpu.dimension_semantics<arbitrary>], iteration_bounds = array<i64: 1>, scalar_prefetch = 0 : i64, scratch_operands = 0 : i64, tpu.core_type = #tpu.core_type<tc>, window_params = [{pipeline_mode = #tpu.pipeline_mode<synchronous>, transform_indices = @transform_0, window_bounds = array<i64: 36, 4608>}, {pipeline_mode = #tpu.pipeline_mode<synchronous>, transform_indices = @transform_1, window_bounds = array<i64: 1, 4608>}, {pipeline_mode = #tpu.pipeline_mode<synchronous>, transform_indices = @transform_2, window_bounds = array<i64: 64, 36>}, {pipeline_mode = #tpu.pipeline_mode<synchronous>, transform_indices = @transform_3, window_bounds = array<i64: 96, 576>}, {pipeline_mode = #tpu.pipeline_mode<synchronous>, transform_indices = @transform_4, window_bounds = array<i64: 50, 384>}, {pipeline_mode = #tpu.pipeline_mode<synchronous>, transform_indices = @transform_5, window_bounds = array<i64: 10, 50>}, {pipeline_mode = #tpu.pipeline_mode<synchronous>, transform_indices = @transform_6, window_bounds = array<i64: 16, 4>}, {pipeline_mode = #tpu.pipeline_mode<synchronous>, transform_indices = @transform_7, window_bounds = array<i64: 24, 4>}, {pipeline_mode = #tpu.pipeline_mode<synchronous>, transform_indices = @transform_8, window_bounds = array<i64: 64, 2>}, {pipeline_mode = #tpu.pipeline_mode<synchronous>, transform_indices = @transform_9, window_bounds = array<i64: 10, 8>}]} {
    %c0 = arith.constant 0 : index
    %c0_0 = arith.constant 0 : index
    %0 = vector.load %arg3[%c0, %c0_0] : memref<64x36xbf16, #tpu.memory_space<vmem>>, vector<64x36xbf16>
    %c0_1 = arith.constant 0 : index
    %c0_2 = arith.constant 0 : index
    %1 = vector.load %arg1[%c0_1, %c0_2] : memref<36x4608xbf16, #tpu.memory_space<vmem>>, vector<36x4608xbf16>
    %cst = arith.constant dense<0.000000e+00> : vector<64x4608xf32>
    %2 = tpu.matmul %0, %1, %cst {dimension_numbers = #tpu.dot_dimension_numbers<[1], [0], [0], [1], [0, 0, 1, 1], [], []>} : vector<64x36xbf16>, vector<36x4608xbf16>, vector<64x4608xf32> -> vector<64x4608xf32>
    %3 = vector.extract_strided_slice %2 {offsets = [0, 0], sizes = [16, 4608], strides = [1, 1]} : vector<64x4608xf32> to vector<16x4608xf32>
    %4 = vector.extract_strided_slice %2 {offsets = [16, 0], sizes = [16, 4608], strides = [1, 1]} : vector<64x4608xf32> to vector<16x4608xf32>
    %5 = arith.maximumf %3, %4 : vector<16x4608xf32>
    %6 = vector.extract_strided_slice %2 {offsets = [32, 0], sizes = [16, 4608], strides = [1, 1]} : vector<64x4608xf32> to vector<16x4608xf32>
    %7 = arith.maximumf %5, %6 : vector<16x4608xf32>
    %8 = vector.extract_strided_slice %2 {offsets = [48, 0], sizes = [16, 4608], strides = [1, 1]} : vector<64x4608xf32> to vector<16x4608xf32>
    %9 = arith.maximumf %7, %8 : vector<16x4608xf32>
    %c0_3 = arith.constant 0 : index
    %c0_4 = arith.constant 0 : index
    %10 = vector.load %arg7[%c0_3, %c0_4] : memref<16x4xf32, #tpu.memory_space<vmem>>, vector<16x4xf32>
    %11 = vector.extract_strided_slice %10 {offsets = [0, 0], sizes = [16, 1], strides = [1, 1]} : vector<16x4xf32> to vector<16x1xf32>
    %12 = vector.broadcast %11 : vector<16x1xf32> to vector<16x4608xf32>
    %13 = arith.addf %9, %12 : vector<16x4608xf32>
    %cst_5 = arith.constant 0.000000e+00 : f32
    %14 = vector.broadcast %cst_5 : f32 to vector<16x4608xf32>
    %15 = arith.maximumf %13, %14 : vector<16x4608xf32>
    %c0_6 = arith.constant 0 : index
    %c0_7 = arith.constant 0 : index
    %16 = vector.load %arg2[%c0_6, %c0_7] : memref<1x4608xf32, #tpu.memory_space<vmem>>, vector<1x4608xf32>
    %17 = vector.broadcast %16 : vector<1x4608xf32> to vector<16x4608xf32>
    %18 = arith.mulf %15, %17 : vector<16x4608xf32>
    %cst_8 = arith.constant dense<0.000000e+00> : vector<16xf32>
    %19 = vector.multi_reduction <add>, %18, %cst_8 [1] : vector<16x4608xf32> to vector<16xf32>
    %20 = vector.shape_cast %19 : vector<16xf32> to vector<16x1xf32>
    %cst_9 = arith.constant 8.68055562E-4 : f32
    %21 = vector.broadcast %cst_9 : f32 to vector<16x1xf32>
    %22 = arith.mulf %20, %21 : vector<16x1xf32>
    %23 = arith.mulf %18, %15 : vector<16x4608xf32>
    %cst_10 = arith.constant dense<0.000000e+00> : vector<16xf32>
    %24 = vector.multi_reduction <add>, %23, %cst_10 [1] : vector<16x4608xf32> to vector<16xf32>
    %25 = vector.shape_cast %24 : vector<16xf32> to vector<16x1xf32>
    %cst_11 = arith.constant 8.68055562E-4 : f32
    %26 = vector.broadcast %cst_11 : f32 to vector<16x1xf32>
    %27 = arith.mulf %25, %26 : vector<16x1xf32>
    %28 = arith.mulf %22, %22 : vector<16x1xf32>
    %29 = arith.subf %27, %28 : vector<16x1xf32>
    %cst_12 = arith.constant 0.000000e+00 : f32
    %30 = vector.broadcast %cst_12 : f32 to vector<16x1xf32>
    %31 = arith.maximumf %29, %30 : vector<16x1xf32>
    %32 = vector.broadcast %22 : vector<16x1xf32> to vector<16x4608xf32>
    %33 = arith.subf %15, %32 : vector<16x4608xf32>
    %cst_13 = arith.constant 9.99999974E-6 : f32
    %34 = vector.broadcast %cst_13 : f32 to vector<16x1xf32>
    %35 = arith.addf %31, %34 : vector<16x1xf32>
    %36 = math.rsqrt %35 : vector<16x1xf32>
    %37 = vector.broadcast %36 : vector<16x1xf32> to vector<16x4608xf32>
    %38 = arith.mulf %33, %37 : vector<16x4608xf32>
    %39 = vector.extract_strided_slice %10 {offsets = [0, 1], sizes = [16, 1], strides = [1, 1]} : vector<16x4xf32> to vector<16x1xf32>
    %40 = vector.broadcast %39 : vector<16x1xf32> to vector<16x4608xf32>
    %41 = arith.mulf %38, %40 : vector<16x4608xf32>
    %42 = vector.extract_strided_slice %10 {offsets = [0, 2], sizes = [16, 1], strides = [1, 1]} : vector<16x4xf32> to vector<16x1xf32>
    %43 = vector.broadcast %42 : vector<16x1xf32> to vector<16x4608xf32>
    %44 = arith.addf %41, %43 : vector<16x4608xf32>
    %45 = vector.extract_strided_slice %44 {offsets = [0, 0], sizes = [16, 128], strides = [1, 1]} : vector<16x4608xf32> to vector<16x128xf32>
    %46 = vector.extract_strided_slice %44 {offsets = [0, 128], sizes = [16, 128], strides = [1, 1]} : vector<16x4608xf32> to vector<16x128xf32>
    %47 = vector.extract_strided_slice %44 {offsets = [0, 256], sizes = [16, 128], strides = [1, 1]} : vector<16x4608xf32> to vector<16x128xf32>
    %48 = vector.extract_strided_slice %44 {offsets = [0, 384], sizes = [16, 128], strides = [1, 1]} : vector<16x4608xf32> to vector<16x128xf32>
    %49 = vector.extract_strided_slice %44 {offsets = [0, 512], sizes = [16, 128], strides = [1, 1]} : vector<16x4608xf32> to vector<16x128xf32>
    %50 = vector.extract_strided_slice %44 {offsets = [0, 640], sizes = [16, 128], strides = [1, 1]} : vector<16x4608xf32> to vector<16x128xf32>
    %51 = vector.extract_strided_slice %44 {offsets = [0, 768], sizes = [16, 128], strides = [1, 1]} : vector<16x4608xf32> to vector<16x128xf32>
    %52 = vector.extract_strided_slice %44 {offsets = [0, 896], sizes = [16, 128], strides = [1, 1]} : vector<16x4608xf32> to vector<16x128xf32>
    %53 = vector.extract_strided_slice %44 {offsets = [0, 1024], sizes = [16, 128], strides = [1, 1]} : vector<16x4608xf32> to vector<16x128xf32>
    %54 = vector.extract_strided_slice %44 {offsets = [0, 1152], sizes = [16, 128], strides = [1, 1]} : vector<16x4608xf32> to vector<16x128xf32>
    %55 = vector.extract_strided_slice %44 {offsets = [0, 1280], sizes = [16, 128], strides = [1, 1]} : vector<16x4608xf32> to vector<16x128xf32>
    %56 = vector.extract_strided_slice %44 {offsets = [0, 1408], sizes = [16, 128], strides = [1, 1]} : vector<16x4608xf32> to vector<16x128xf32>
    %57 = vector.extract_strided_slice %44 {offsets = [0, 1536], sizes = [16, 128], strides = [1, 1]} : vector<16x4608xf32> to vector<16x128xf32>
    %58 = vector.extract_strided_slice %44 {offsets = [0, 1664], sizes = [16, 128], strides = [1, 1]} : vector<16x4608xf32> to vector<16x128xf32>
    %59 = vector.extract_strided_slice %44 {offsets = [0, 1792], sizes = [16, 128], strides = [1, 1]} : vector<16x4608xf32> to vector<16x128xf32>
    %60 = vector.extract_strided_slice %44 {offsets = [0, 1920], sizes = [16, 128], strides = [1, 1]} : vector<16x4608xf32> to vector<16x128xf32>
    %61 = vector.extract_strided_slice %44 {offsets = [0, 2048], sizes = [16, 128], strides = [1, 1]} : vector<16x4608xf32> to vector<16x128xf32>
    %62 = vector.extract_strided_slice %44 {offsets = [0, 2176], sizes = [16, 128], strides = [1, 1]} : vector<16x4608xf32> to vector<16x128xf32>
    %63 = vector.extract_strided_slice %44 {offsets = [0, 2304], sizes = [16, 128], strides = [1, 1]} : vector<16x4608xf32> to vector<16x128xf32>
    %64 = vector.extract_strided_slice %44 {offsets = [0, 2432], sizes = [16, 128], strides = [1, 1]} : vector<16x4608xf32> to vector<16x128xf32>
    %65 = vector.extract_strided_slice %44 {offsets = [0, 2560], sizes = [16, 128], strides = [1, 1]} : vector<16x4608xf32> to vector<16x128xf32>
    %66 = vector.extract_strided_slice %44 {offsets = [0, 2688], sizes = [16, 128], strides = [1, 1]} : vector<16x4608xf32> to vector<16x128xf32>
    %67 = vector.extract_strided_slice %44 {offsets = [0, 2816], sizes = [16, 128], strides = [1, 1]} : vector<16x4608xf32> to vector<16x128xf32>
    %68 = vector.extract_strided_slice %44 {offsets = [0, 2944], sizes = [16, 128], strides = [1, 1]} : vector<16x4608xf32> to vector<16x128xf32>
    %69 = vector.extract_strided_slice %44 {offsets = [0, 3072], sizes = [16, 128], strides = [1, 1]} : vector<16x4608xf32> to vector<16x128xf32>
    %70 = vector.extract_strided_slice %44 {offsets = [0, 3200], sizes = [16, 128], strides = [1, 1]} : vector<16x4608xf32> to vector<16x128xf32>
    %71 = vector.extract_strided_slice %44 {offsets = [0, 3328], sizes = [16, 128], strides = [1, 1]} : vector<16x4608xf32> to vector<16x128xf32>
    %72 = vector.extract_strided_slice %44 {offsets = [0, 3456], sizes = [16, 128], strides = [1, 1]} : vector<16x4608xf32> to vector<16x128xf32>
    %73 = vector.extract_strided_slice %44 {offsets = [0, 3584], sizes = [16, 128], strides = [1, 1]} : vector<16x4608xf32> to vector<16x128xf32>
    %74 = vector.extract_strided_slice %44 {offsets = [0, 3712], sizes = [16, 128], strides = [1, 1]} : vector<16x4608xf32> to vector<16x128xf32>
    %75 = vector.extract_strided_slice %44 {offsets = [0, 3840], sizes = [16, 128], strides = [1, 1]} : vector<16x4608xf32> to vector<16x128xf32>
    %76 = vector.extract_strided_slice %44 {offsets = [0, 3968], sizes = [16, 128], strides = [1, 1]} : vector<16x4608xf32> to vector<16x128xf32>
    %77 = vector.extract_strided_slice %44 {offsets = [0, 4096], sizes = [16, 128], strides = [1, 1]} : vector<16x4608xf32> to vector<16x128xf32>
    %78 = vector.extract_strided_slice %44 {offsets = [0, 4224], sizes = [16, 128], strides = [1, 1]} : vector<16x4608xf32> to vector<16x128xf32>
    %79 = vector.extract_strided_slice %44 {offsets = [0, 4352], sizes = [16, 128], strides = [1, 1]} : vector<16x4608xf32> to vector<16x128xf32>
    %80 = vector.extract_strided_slice %44 {offsets = [0, 4480], sizes = [16, 128], strides = [1, 1]} : vector<16x4608xf32> to vector<16x128xf32>
    %81 = tpu.concatenate %45, %46, %47, %48, %49, %50, %51, %52, %53, %54, %55, %56, %57, %58, %59, %60 in 0 : vector<16x128xf32>, vector<16x128xf32>, vector<16x128xf32>, vector<16x128xf32>, vector<16x128xf32>, vector<16x128xf32>, vector<16x128xf32>, vector<16x128xf32>, vector<16x128xf32>, vector<16x128xf32>, vector<16x128xf32>, vector<16x128xf32>, vector<16x128xf32>, vector<16x128xf32>, vector<16x128xf32>, vector<16x128xf32> -> vector<256x128xf32>
    %82 = tpu.concatenate %61, %62, %63, %64, %65, %66, %67, %68, %69, %70, %71, %72, %73, %74, %75, %76 in 0 : vector<16x128xf32>, vector<16x128xf32>, vector<16x128xf32>, vector<16x128xf32>, vector<16x128xf32>, vector<16x128xf32>, vector<16x128xf32>, vector<16x128xf32>, vector<16x128xf32>, vector<16x128xf32>, vector<16x128xf32>, vector<16x128xf32>, vector<16x128xf32>, vector<16x128xf32>, vector<16x128xf32>, vector<16x128xf32> -> vector<256x128xf32>
    %83 = tpu.concatenate %77, %78, %79, %80 in 0 : vector<16x128xf32>, vector<16x128xf32>, vector<16x128xf32>, vector<16x128xf32> -> vector<64x128xf32>
    %84 = tpu.concatenate %81, %82, %83 in 0 : vector<256x128xf32>, vector<256x128xf32>, vector<64x128xf32> -> vector<576x128xf32>
    %85 = arith.truncf %84 : vector<576x128xf32> to vector<576x128xbf16>
    %c0_14 = arith.constant 0 : index
    %c0_15 = arith.constant 0 : index
    %86 = vector.load %arg4[%c0_14, %c0_15] : memref<96x576xbf16, #tpu.memory_space<vmem>>, vector<96x576xbf16>
    %cst_16 = arith.constant dense<0.000000e+00> : vector<96x128xf32>
    %87 = tpu.matmul %86, %85, %cst_16 {dimension_numbers = #tpu.dot_dimension_numbers<[1], [0], [0], [1], [0, 0, 1, 1], [], []>} : vector<96x576xbf16>, vector<576x128xbf16>, vector<96x128xf32> -> vector<96x128xf32>
    %88 = vector.extract_strided_slice %87 {offsets = [0, 0], sizes = [24, 128], strides = [1, 1]} : vector<96x128xf32> to vector<24x128xf32>
    %89 = vector.extract_strided_slice %87 {offsets = [24, 0], sizes = [24, 128], strides = [1, 1]} : vector<96x128xf32> to vector<24x128xf32>
    %90 = arith.maximumf %88, %89 : vector<24x128xf32>
    %91 = vector.extract_strided_slice %87 {offsets = [48, 0], sizes = [24, 128], strides = [1, 1]} : vector<96x128xf32> to vector<24x128xf32>
    %92 = arith.maximumf %90, %91 : vector<24x128xf32>
    %93 = vector.extract_strided_slice %87 {offsets = [72, 0], sizes = [24, 128], strides = [1, 1]} : vector<96x128xf32> to vector<24x128xf32>
    %94 = arith.maximumf %92, %93 : vector<24x128xf32>
    %c0_17 = arith.constant 0 : index
    %c0_18 = arith.constant 0 : index
    %95 = vector.load %arg8[%c0_17, %c0_18] : memref<24x4xf32, #tpu.memory_space<vmem>>, vector<24x4xf32>
    %96 = vector.extract_strided_slice %95 {offsets = [0, 0], sizes = [24, 1], strides = [1, 1]} : vector<24x4xf32> to vector<24x1xf32>
    %97 = vector.broadcast %96 : vector<24x1xf32> to vector<24x128xf32>
    %98 = arith.addf %94, %97 : vector<24x128xf32>
    %cst_19 = arith.constant 0.000000e+00 : f32
    %99 = vector.broadcast %cst_19 : f32 to vector<24x128xf32>
    %100 = arith.maximumf %98, %99 : vector<24x128xf32>
    %cst_20 = arith.constant dense<0.000000e+00> : vector<24xf32>
    %101 = vector.multi_reduction <add>, %100, %cst_20 [1] : vector<24x128xf32> to vector<24xf32>
    %102 = vector.shape_cast %101 : vector<24xf32> to vector<24x1xf32>
    %cst_21 = arith.constant 7.812500e-03 : f32
    %103 = vector.broadcast %cst_21 : f32 to vector<24x1xf32>
    %104 = arith.mulf %102, %103 : vector<24x1xf32>
    %105 = arith.mulf %100, %100 : vector<24x128xf32>
    %cst_22 = arith.constant dense<0.000000e+00> : vector<24xf32>
    %106 = vector.multi_reduction <add>, %105, %cst_22 [1] : vector<24x128xf32> to vector<24xf32>
    %107 = vector.shape_cast %106 : vector<24xf32> to vector<24x1xf32>
    %cst_23 = arith.constant 7.812500e-03 : f32
    %108 = vector.broadcast %cst_23 : f32 to vector<24x1xf32>
    %109 = arith.mulf %107, %108 : vector<24x1xf32>
    %110 = arith.mulf %104, %104 : vector<24x1xf32>
    %111 = arith.subf %109, %110 : vector<24x1xf32>
    %cst_24 = arith.constant 0.000000e+00 : f32
    %112 = vector.broadcast %cst_24 : f32 to vector<24x1xf32>
    %113 = arith.maximumf %111, %112 : vector<24x1xf32>
    %114 = vector.broadcast %104 : vector<24x1xf32> to vector<24x128xf32>
    %115 = arith.subf %100, %114 : vector<24x128xf32>
    %cst_25 = arith.constant 9.99999974E-6 : f32
    %116 = vector.broadcast %cst_25 : f32 to vector<24x1xf32>
    %117 = arith.addf %113, %116 : vector<24x1xf32>
    %118 = math.rsqrt %117 : vector<24x1xf32>
    %119 = vector.broadcast %118 : vector<24x1xf32> to vector<24x128xf32>
    %120 = arith.mulf %115, %119 : vector<24x128xf32>
    %121 = vector.extract_strided_slice %95 {offsets = [0, 1], sizes = [24, 1], strides = [1, 1]} : vector<24x4xf32> to vector<24x1xf32>
    %122 = vector.broadcast %121 : vector<24x1xf32> to vector<24x128xf32>
    %123 = arith.mulf %120, %122 : vector<24x128xf32>
    %124 = vector.extract_strided_slice %95 {offsets = [0, 2], sizes = [24, 1], strides = [1, 1]} : vector<24x4xf32> to vector<24x1xf32>
    %125 = vector.broadcast %124 : vector<24x1xf32> to vector<24x128xf32>
    %126 = arith.addf %123, %125 : vector<24x128xf32>
    %127 = vector.extract_strided_slice %126 {offsets = [0, 0], sizes = [24, 8], strides = [1, 1]} : vector<24x128xf32> to vector<24x8xf32>
    %128 = vector.extract_strided_slice %126 {offsets = [0, 8], sizes = [24, 8], strides = [1, 1]} : vector<24x128xf32> to vector<24x8xf32>
    %129 = vector.extract_strided_slice %126 {offsets = [0, 16], sizes = [24, 8], strides = [1, 1]} : vector<24x128xf32> to vector<24x8xf32>
    %130 = vector.extract_strided_slice %126 {offsets = [0, 24], sizes = [24, 8], strides = [1, 1]} : vector<24x128xf32> to vector<24x8xf32>
    %131 = vector.extract_strided_slice %126 {offsets = [0, 32], sizes = [24, 8], strides = [1, 1]} : vector<24x128xf32> to vector<24x8xf32>
    %132 = vector.extract_strided_slice %126 {offsets = [0, 40], sizes = [24, 8], strides = [1, 1]} : vector<24x128xf32> to vector<24x8xf32>
    %133 = vector.extract_strided_slice %126 {offsets = [0, 48], sizes = [24, 8], strides = [1, 1]} : vector<24x128xf32> to vector<24x8xf32>
    %134 = vector.extract_strided_slice %126 {offsets = [0, 56], sizes = [24, 8], strides = [1, 1]} : vector<24x128xf32> to vector<24x8xf32>
    %135 = vector.extract_strided_slice %126 {offsets = [0, 64], sizes = [24, 8], strides = [1, 1]} : vector<24x128xf32> to vector<24x8xf32>
    %136 = vector.extract_strided_slice %126 {offsets = [0, 72], sizes = [24, 8], strides = [1, 1]} : vector<24x128xf32> to vector<24x8xf32>
    %137 = vector.extract_strided_slice %126 {offsets = [0, 80], sizes = [24, 8], strides = [1, 1]} : vector<24x128xf32> to vector<24x8xf32>
    %138 = vector.extract_strided_slice %126 {offsets = [0, 88], sizes = [24, 8], strides = [1, 1]} : vector<24x128xf32> to vector<24x8xf32>
    %139 = vector.extract_strided_slice %126 {offsets = [0, 96], sizes = [24, 8], strides = [1, 1]} : vector<24x128xf32> to vector<24x8xf32>
    %140 = vector.extract_strided_slice %126 {offsets = [0, 104], sizes = [24, 8], strides = [1, 1]} : vector<24x128xf32> to vector<24x8xf32>
    %141 = vector.extract_strided_slice %126 {offsets = [0, 112], sizes = [24, 8], strides = [1, 1]} : vector<24x128xf32> to vector<24x8xf32>
    %142 = vector.extract_strided_slice %126 {offsets = [0, 120], sizes = [24, 8], strides = [1, 1]} : vector<24x128xf32> to vector<24x8xf32>
    %143 = tpu.concatenate %127, %128, %129, %130, %131, %132, %133, %134, %135, %136, %137, %138, %139, %140, %141, %142 in 0 : vector<24x8xf32>, vector<24x8xf32>, vector<24x8xf32>, vector<24x8xf32>, vector<24x8xf32>, vector<24x8xf32>, vector<24x8xf32>, vector<24x8xf32>, vector<24x8xf32>, vector<24x8xf32>, vector<24x8xf32>, vector<24x8xf32>, vector<24x8xf32>, vector<24x8xf32>, vector<24x8xf32>, vector<24x8xf32> -> vector<384x8xf32>
    %144 = arith.truncf %143 : vector<384x8xf32> to vector<384x8xbf16>
    %c0_26 = arith.constant 0 : index
    %c0_27 = arith.constant 0 : index
    %145 = vector.load %arg9[%c0_26, %c0_27] : memref<64x2xf32, #tpu.memory_space<vmem>>, vector<64x2xf32>
    %c0_28 = arith.constant 0 : index
    %c0_29 = arith.constant 0 : index
    %146 = vector.load %arg5[%c0_28, %c0_29] : memref<50x384xbf16, #tpu.memory_space<vmem>>, vector<50x384xbf16>
    %cst_30 = arith.constant dense<0.000000e+00> : vector<50x8xf32>
    %147 = tpu.matmul %146, %144, %cst_30 {dimension_numbers = #tpu.dot_dimension_numbers<[1], [0], [0], [1], [0, 0, 1, 1], [], []>} : vector<50x384xbf16>, vector<384x8xbf16>, vector<50x8xf32> -> vector<50x8xf32>
    %148 = vector.extract_strided_slice %145 {offsets = [0, 0], sizes = [50, 1], strides = [1, 1]} : vector<64x2xf32> to vector<50x1xf32>
    %149 = vector.broadcast %148 : vector<50x1xf32> to vector<50x8xf32>
    %150 = arith.addf %147, %149 : vector<50x8xf32>
    %cst_31 = arith.constant 0.000000e+00 : f32
    %151 = vector.broadcast %cst_31 : f32 to vector<50x8xf32>
    %152 = arith.maximumf %150, %151 : vector<50x8xf32>
    %c0_32 = arith.constant 0 : index
    %c0_33 = arith.constant 0 : index
    %153 = vector.load %arg6[%c0_32, %c0_33] : memref<10x50xbf16, #tpu.memory_space<vmem>>, vector<10x50xbf16>
    %154 = arith.truncf %152 : vector<50x8xf32> to vector<50x8xbf16>
    %cst_34 = arith.constant dense<0.000000e+00> : vector<10x8xf32>
    %155 = tpu.matmul %153, %154, %cst_34 {dimension_numbers = #tpu.dot_dimension_numbers<[1], [0], [0], [1], [0, 0, 1, 1], [], []>} : vector<10x50xbf16>, vector<50x8xbf16>, vector<10x8xf32> -> vector<10x8xf32>
    %156 = vector.extract_strided_slice %145 {offsets = [0, 1], sizes = [10, 1], strides = [1, 1]} : vector<64x2xf32> to vector<10x1xf32>
    %157 = vector.broadcast %156 : vector<10x1xf32> to vector<10x8xf32>
    %158 = arith.addf %155, %157 : vector<10x8xf32>
    %cst_35 = arith.constant dense<0xFF800000> : vector<8xf32>
    %159 = vector.multi_reduction <maximumf>, %158, %cst_35 [0] : vector<10x8xf32> to vector<8xf32>
    %160 = vector.shape_cast %159 : vector<8xf32> to vector<1x8xf32>
    %161 = vector.broadcast %160 : vector<1x8xf32> to vector<10x8xf32>
    %162 = arith.subf %158, %161 : vector<10x8xf32>
    %163 = math.exp %162 : vector<10x8xf32>
    %cst_36 = arith.constant dense<0.000000e+00> : vector<8xf32>
    %164 = vector.multi_reduction <add>, %163, %cst_36 [0] : vector<10x8xf32> to vector<8xf32>
    %165 = vector.shape_cast %164 : vector<8xf32> to vector<1x8xf32>
    %166 = math.log %165 : vector<1x8xf32>
    %167 = vector.broadcast %166 : vector<1x8xf32> to vector<10x8xf32>
    %168 = arith.subf %162, %167 : vector<10x8xf32>
    %c0_37 = arith.constant 0 : index
    %c0_38 = arith.constant 0 : index
    %169 = vector.load %arg10[%c0_37, %c0_38] : memref<10x8xf32, #tpu.memory_space<vmem>>, vector<10x8xf32>
    tpu.vector_store %arg10[%c0_37, %c0_38], %168 {strides = array<i32>} : memref<10x8xf32, #tpu.memory_space<vmem>>, vector<10x8xf32>,
    return
  }
  func.func @transform_0(%arg0: i32) -> (i32, i32) {
    %c0_i32 = arith.constant 0 : i32
    %c0_i32_0 = arith.constant 0 : i32
    %c0_i32_1 = arith.constant 0 : i32
    return %c0_i32, %c0_i32_0 : i32, i32
  }
  func.func @transform_1(%arg0: i32) -> (i32, i32) {
    %c0_i32 = arith.constant 0 : i32
    %c0_i32_0 = arith.constant 0 : i32
    %c0_i32_1 = arith.constant 0 : i32
    return %c0_i32, %c0_i32_0 : i32, i32
  }
  func.func @transform_2(%arg0: i32) -> (i32, i32) {
    %c0_i32 = arith.constant 0 : i32
    %c0_i32_0 = arith.constant 0 : i32
    %c0_i32_1 = arith.constant 0 : i32
    return %c0_i32, %c0_i32_0 : i32, i32
  }
  func.func @transform_3(%arg0: i32) -> (i32, i32) {
    %c0_i32 = arith.constant 0 : i32
    %c0_i32_0 = arith.constant 0 : i32
    %c0_i32_1 = arith.constant 0 : i32
    return %c0_i32, %c0_i32_0 : i32, i32
  }
  func.func @transform_4(%arg0: i32) -> (i32, i32) {
    %c0_i32 = arith.constant 0 : i32
    %c0_i32_0 = arith.constant 0 : i32
    %c0_i32_1 = arith.constant 0 : i32
    return %c0_i32, %c0_i32_0 : i32, i32
  }
  func.func @transform_5(%arg0: i32) -> (i32, i32) {
    %c0_i32 = arith.constant 0 : i32
    %c0_i32_0 = arith.constant 0 : i32
    %c0_i32_1 = arith.constant 0 : i32
    return %c0_i32, %c0_i32_0 : i32, i32
  }
  func.func @transform_6(%arg0: i32) -> (i32, i32) {
    %c0_i32 = arith.constant 0 : i32
    %c0_i32_0 = arith.constant 0 : i32
    %c0_i32_1 = arith.constant 0 : i32
    return %c0_i32, %c0_i32_0 : i32, i32
  }
  func.func @transform_7(%arg0: i32) -> (i32, i32) {
    %c0_i32 = arith.constant 0 : i32
    %c0_i32_0 = arith.constant 0 : i32
    %c0_i32_1 = arith.constant 0 : i32
    return %c0_i32, %c0_i32_0 : i32, i32
  }
  func.func @transform_8(%arg0: i32) -> (i32, i32) {
    %c0_i32 = arith.constant 0 : i32
    %c0_i32_0 = arith.constant 0 : i32
    %c0_i32_1 = arith.constant 0 : i32
    return %c0_i32, %c0_i32_0 : i32, i32
  }
  func.func @transform_9(%arg0: i32) -> (i32, i32) {
    %c0_i32 = arith.constant 0 : i32
    %c0_i32_0 = arith.constant 0 : i32
    %c0_i32_1 = arith.constant 0 : i32
    return %c0_i32, %c0_i32_0 : i32, i32
  }
}

</mosaic_0001>

<bundles_post_ra>
// kernel: mnist_forward.1
= control target key start
LH: loop header
LB: loop body
LE: loop exit
PB: predicated region body
PF: predicated region fallthrough
CT: control target
= control target key end

     0   :  { %vm614_vm0 = vcmask 1041408   ;;  %vm601_vm1 = vcmask 293888   ;;  %v8017_v46 = vmov 0   ;;  %vm3071_vm8 = vcmask 523264   ;;  %s4734_s24 = smov 8   ;;  %s4735_s25 = smov 96   ;;  %s8007_s0 = inlined_call_operand.vmem [shape: bf16[36,4608], index: 0, kind: input, shape index: {}]   ;;  %s8008_s2 = inlined_call_operand.vmem [shape: bf16[64,36], index: 2, kind: input, shape index: {}]   ;;  %s8009_s6 = inlined_call_operand.vmem [shape: f32[16,4], index: 6, kind: input, shape index: {}]   ;;  %s8010_s1 = inlined_call_operand.vmem [shape: f32[1,4608], index: 1, kind: input, shape index: {}]   ;;  %s8011_s3 = inlined_call_operand.vmem [shape: bf16[96,576], index: 3, kind: input, shape index: {}]   ;;  %s8012_s7 = inlined_call_operand.vmem [shape: f32[24,4], index: 7, kind: input, shape index: {}]   ;;  %s8013_s8 = inlined_call_operand.vmem [shape: f32[64,2], index: 8, kind: input, shape index: {}]   ;;  %s8014_s4 = inlined_call_operand.vmem [shape: bf16[50,384], index: 4, kind: input, shape index: {}]   ;;  %s8015_s5 = inlined_call_operand.vmem [shape: bf16[10,50], index: 5, kind: input, shape index: {}]   ;;  %s8016_s9 = inlined_call_operand.vmem [shape: f32[10,8], index: 9, kind: output, shape index: {}]  }
   0x1   :  { %v113_v0 = vld [vmem:[%s8007_s0 + $0x240] sm:$0x33]  ;;  %v114_v1 = vld [vmem:[%s8007_s0 + $0x248] sm:$0x33]  ;;  %v4535_v9 = vld [vmem:[%s8007_s0 + $0x1ac] sm:$0xf0]  ;;  %4614 = vset.pattern.permute.xlu0 %v8017_v46 }
   0x2   :  { %v385_v2 = vunpack.c.l.b16 %v113_v0  ;;  %v386_v3 = vunpack.c.h.b16 %v113_v0  ;;  %v388_v4 = vunpack.c.h.b16 %v114_v1  ;;  %v4024_v8 = vld [vmem:[%s8007_s0 + $0x120] sm:$0xf]  ;;  %v4517_v10 = vld [vmem:[%s8007_s0 + $0x124] sm:$0xf]  ;;  %v4026_v11 = vld [vmem:[%s8007_s0 + $0x1b0] sm:$0xf0]  ;;  %v387_v17 = vunpack.c.l.b16 %v114_v1 }
   0x3   :  { %v4518_v12 = vld [vmem:[%s8007_s0 + $0x12c] sm:$0xf]  ;;  %v4034_v13 = vld [vmem:[%s8007_s0 + $0x1b8] sm:$0xf0]  ;;  %v4025_v18 = vor.u32 %v4535_v9, %v4024_v8  ;;  %v4029_v19 = vor.u32 %v4517_v10, %v4026_v11  ;;  %v3880_v21 = vld [vmem:[%s8007_s0] sm:$0xf] }
   0x4   :  { %v493_v5 = vpack.c.b16 %v385_v2, %v385_v2  ;;  %v494_v6 = vpack.c.b16 %v386_v3, %v386_v3  ;;  %v496_v7 = vpack.c.b16 %v388_v4, %v388_v4  ;;  %v4037_v20 = vor.u32 %v4518_v12, %v4034_v13  ;;  %v4499_v22 = vld [vmem:[%s8007_s0 + $0x8c] sm:$0xf0]  ;;  %v4481_v23 = vld [vmem:[%s8007_s0 + $0x4] sm:$0xf]  ;;  %v3882_v24 = vld [vmem:[%s8007_s0 + $0x90] sm:$0xf0] }
   0x5   :  { %v4482_v25 = vld [vmem:[%s8007_s0 + $0xc] sm:$0xf]  ;;  %v3890_v26 = vld [vmem:[%s8007_s0 + $0x98] sm:$0xf0]  ;;  %v495_v27 = vpack.c.b16 %v387_v17, %v387_v17  ;;  %v3881_v28 = vor.u32 %v4499_v22, %v3880_v21  ;;  %v3885_v29 = vor.u32 %v4481_v23, %v3882_v24  ;;  %v4845_v31 = vld [vmem:[%s8008_s2] sm:$0xff]  ;;  %s4736_s26 = smov 48  }
   0x6   :  { %v616_v14 = vsel %vm614_vm0, %v493_v5, 0  ;;  %v619_v15 = vsel %vm614_vm0, %v494_v6, 0  ;;  %v625_v16 = vsel %vm614_vm0, %v496_v7, 0  ;;  %v3893_v30 = vor.u32 %v4482_v25, %v3890_v26  ;;  %v4850_v32 = vld [vmem:[%s8008_s2 + $0x18] sm:$0xff]  ;;  %v4032_v34 = vld [vmem:[%s8007_s0 + $0x128] sm:$0xf] }
   0x7   :  { %728 = vmatpush.bf16.msra.mxu0 %v616_v14  ;;  %4593 = vmatpush.bf16.msra.mxu2 %v616_v14  ;;  %v622_v33 = vsel %vm614_vm0, %v495_v27, 0  ;;  %v4536_v35 = vld [vmem:[%s8007_s0 + $0x1b4] sm:$0xf0]  ;;  %v3888_v37 = vld [vmem:[%s8007_s0 + $0x8] sm:$0xf]  ;;  %v1983_v41 = vld [vmem:[%s8009_s6] sm:$0xff] }
   0x8   :  { %757 = vmatpush.bf16.msra.mxu1 %v619_v15  ;;  %815 = vmatpush.bf16.msra.mxu3 %v625_v16  ;;  %v4033_v36 = vor.u32 %v4536_v35, %v4032_v34  ;;  %v4500_v38 = vld [vmem:[%s8007_s0 + $0x94] sm:$0xf0]  ;;  %v115_v39 = vld [vmem:[%s8007_s0 + $0x250] sm:$0x33]  ;;  %v4537_v45 = vld [vmem:[%s8007_s0 + $0x1bc] sm:$0xf0] }
   0x9   :  { %v389_v40 = vunpack.c.l.b16 %v115_v39  ;;  %v3889_v42 = vor.u32 %v4500_v38, %v3888_v37  ;;  %v4040_v44 = vld [vmem:[%s8007_s0 + $0x130] sm:$0xf]  ;;  %1987 = vperm.xlu0 %4614, %v1983_v41   ;;  %v4501_v50 = vld [vmem:[%s8007_s0 + $0x9c] sm:$0xf0]  ;;  %v4896_v52 = vld [vmem:[%s8008_s2 + $0x8] sm:$0xff]  ;;  %v390_v54 = vunpack.c.h.b16 %v115_v39  ;;  %s4737_s27 = smov 56  }
   0xa   :  { %v4041_v48 = vor.u32 %v4537_v45, %v4040_v44  ;;  %v3896_v49 = vld [vmem:[%s8007_s0 + $0x10] sm:$0xf]  ;;  %v116_v53 = vld [vmem:[%s8007_s0 + $0x258] sm:$0x33]  ;;  %v1984_v56 = vld [vmem:[%s8009_s6 + $0x8] sm:$0xff]  ;;  %s4738_s28 = smov 16  }
   0xb   :  { %729 = vmatpush.bf16.msra.mxu0 %v4025_v18  ;;  %4594 = vmatpush.bf16.msra.mxu2 %v4025_v18  ;;  %v497_v43 = vpack.c.b16 %v389_v40, %v389_v40  ;;  %v3897_v51 = vor.u32 %v4501_v50, %v3896_v49  ;;  %v392_v55 = vunpack.c.h.b16 %v116_v53  ;;  %v4519_v57 = vld [vmem:[%s8007_s0 + $0x134] sm:$0xf]  ;;  %v498_v58 = vpack.c.b16 %v390_v54, %v390_v54  ;;  %v4042_v60 = vld [vmem:[%s8007_s0 + $0x1c0] sm:$0xf0]  ;;  %v4520_v61 = vld [vmem:[%s8007_s0 + $0x13c] sm:$0xf] }
   0xc   :  { %758 = vmatpush.bf16.msra.mxu1 %v4029_v19  ;;  %816 = vmatpush.bf16.msra.mxu3 %v4037_v20  ;;  %v4050_v62 = vld [vmem:[%s8007_s0 + $0x1c8] sm:$0xf0]  ;;  %v4045_v1 = vor.u32 %v4519_v57, %v4042_v60  ;;  %v4483_v3 = vld [vmem:[%s8007_s0 + $0x14] sm:$0xf]  ;;  %v3898_v4 = vld [vmem:[%s8007_s0 + $0xa0] sm:$0xf0]  ;;  %v391_v10 = vunpack.c.l.b16 %v116_v53 }
   0xd   :  { %v628_v47 = vsel %vm614_vm0, %v497_v43, 0  ;;  %v500_v59 = vpack.c.b16 %v392_v55, %v392_v55  ;;  %v631_v63 = vsel %vm614_vm0, %v498_v58, 0  ;;  %v4053_v2 = vor.u32 %v4520_v61, %v4050_v62  ;;  %v4484_v5 = vld [vmem:[%s8007_s0 + $0x1c] sm:$0xf]  ;;  %v3906_v6 = vld [vmem:[%s8007_s0 + $0xa8] sm:$0xf0] }
   0xe   :  { %v3901_v7 = vor.u32 %v4483_v3, %v3898_v4  ;;  %v3909_v8 = vor.u32 %v4484_v5, %v3906_v6  ;;  %v4941_v9 = vld [vmem:[%s8008_s2 + $0x10] sm:$0xff]  ;;  %v499_v11 = vpack.c.b16 %v391_v10, %v391_v10  ;;  %v4048_v12 = vld [vmem:[%s8007_s0 + $0x138] sm:$0xf]  ;;  %v4538_v13 = vld [vmem:[%s8007_s0 + $0x1c4] sm:$0xf0]  ;;  %s4739_s29 = smov 104  }
   0xf   :  { %730 = vmatpush.bf16.msra.mxu0 %v3881_v28  ;;  %4595 = vmatpush.bf16.msra.mxu2 %v3881_v28  ;;  %v637_v0 = vsel %vm614_vm0, %v500_v59, 0  ;;  %v4049_v15 = vor.u32 %v4538_v13, %v4048_v12  ;;  %v3904_v16 = vld [vmem:[%s8007_s0 + $0x18] sm:$0xf]  ;;  %v4502_v17 = vld [vmem:[%s8007_s0 + $0xa4] sm:$0xf0]  ;;  %s4740_s30 = smov 112  }
  0x10   :  { %759 = vmatpush.bf16.msra.mxu1 %v3885_v29  ;;  %817 = vmatpush.bf16.msra.mxu3 %v3893_v30  ;;  %v634_v14 = vsel %vm614_vm0, %v499_v11, 0  ;;  %v3905_v18 = vor.u32 %v4502_v17, %v3904_v16  ;;  %v117_v19 = vld [vmem:[%s8007_s0 + $0x260] sm:$0x33]  ;;  %v4539_v23 = vld [vmem:[%s8007_s0 + $0x1cc] sm:$0xf0]  ;;  %s4741_s10 = smov 24  }
  0x11   :  { %1992 = vperm.xlu0 %4614, %v1984_v56   ;;  %v393_v20 = vunpack.c.l.b16 %v117_v19  ;;  %v4056_v22 = vld [vmem:[%s8007_s0 + $0x140] sm:$0xf]  ;;  %v4503_v27 = vld [vmem:[%s8007_s0 + $0xac] sm:$0xf0]  ;;  %v118_v29 = vld [vmem:[%s8007_s0 + $0x268] sm:$0x33]  ;;  %v394_v30 = vunpack.c.h.b16 %v117_v19 }
  0x12   :  { %4166 = vmatmul.msk.bf16.vlgmr.msra.gmra.mxu0 %vm601_vm1, %v4845_v31  ;;  %4169 = vmatmul.msk.bf16.vlgmr.msra.gmra.mxu2 %vm601_vm1, %v4850_v32  ;;  %v4057_v25 = vor.u32 %v4539_v23, %v4056_v22  ;;  %v3912_v26 = vld [vmem:[%s8007_s0 + $0x20] sm:$0xf]  ;;  %v4521_v34 = vld [vmem:[%s8007_s0 + $0x144] sm:$0xf]  ;;  %v4058_v37 = vld [vmem:[%s8007_s0 + $0x1d0] sm:$0xf0] }
  0x13   :  { %786 = vmatpush.bf16.msrb.mxu2 %v622_v33  ;;  %4170 = vmatmul.msk.bf16.vlgmr.msra.gmra.mxu1 %vm601_vm1, %v4845_v31  ;;  %v501_v21 = vpack.c.b16 %v393_v20, %v393_v20  ;;  %v3913_v28 = vor.u32 %v4503_v27, %v3912_v26  ;;  %v396_v33 = vunpack.c.h.b16 %v118_v29  ;;  %v502_v35 = vpack.c.b16 %v394_v30, %v394_v30  ;;  %v4522_v38 = vld [vmem:[%s8007_s0 + $0x14c] sm:$0xf]  ;;  %v4066_v39 = vld [vmem:[%s8007_s0 + $0x1d8] sm:$0xf0]  ;;  %v4485_v44 = vld [vmem:[%s8007_s0 + $0x24] sm:$0xf] }
  0x14   :  { %4178 = vmatmul.msk.bf16.vlgmr.msra.gmra.mxu3 %vm601_vm1, %v4845_v31  ;;  %844 = vmatpush.bf16.msrb.mxu0 %v628_v47  ;;  %v4069_v43 = vor.u32 %v4522_v38, %v4066_v39  ;;  %v3914_v45 = vld [vmem:[%s8007_s0 + $0xb0] sm:$0xf0]  ;;  %v4486_v47 = vld [vmem:[%s8007_s0 + $0x2c] sm:$0xf]  ;;  %v3922_v49 = vld [vmem:[%s8007_s0 + $0xb8] sm:$0xf0] }
  0x15   :  { %873 = vmatpush.bf16.msrb.mxu1 %v631_v63  ;;  %931 = vmatpush.bf16.msrb.mxu3 %v637_v0  ;;  %v640_v24 = vsel %vm614_vm0, %v501_v21, 0  ;;  %v643_v40 = vsel %vm614_vm0, %v502_v35, 0  ;;  %v3925_v50 = vor.u32 %v4486_v47, %v3922_v49  ;;  %v4064_v55 = vld [vmem:[%s8007_s0 + $0x148] sm:$0xf]  ;;  %v4540_v56 = vld [vmem:[%s8007_s0 + $0x1d4] sm:$0xf0] }
  0x16   :  { %v4065_v57 = vor.u32 %v4540_v56, %v4064_v55  ;;  %v3920_v58 = vld [vmem:[%s8007_s0 + $0x28] sm:$0xf]  ;;  %v4504_v59 = vld [vmem:[%s8007_s0 + $0xb4] sm:$0xf0]  ;;  %v119_v63 = vld [vmem:[%s8007_s0 + $0x270] sm:$0x33] }
  0x17   :  { %787 = vmatpush.bf16.msrb.mxu2 %v4033_v36  ;;  %v504_v36 = vpack.c.b16 %v396_v33, %v396_v33  ;;  %v3921_v60 = vor.u32 %v4504_v59, %v3920_v58  ;;  %v397_v0 = vunpack.c.l.b16 %v119_v63  ;;  %v3928_v12 = vld [vmem:[%s8007_s0 + $0x30] sm:$0xf]  ;;  %v4505_v13 = vld [vmem:[%s8007_s0 + $0xbc] sm:$0xf0]  ;;  %v120_v20 = vld [vmem:[%s8007_s0 + $0x278] sm:$0x33]  ;;  %v398_v21 = vunpack.c.h.b16 %v119_v63 }
  0x18   :  { %845 = vmatpush.bf16.msrb.mxu0 %v4041_v48  ;;  %v3917_v48 = vor.u32 %v4485_v44, %v3914_v45  ;;  %v400_v22 = vunpack.c.h.b16 %v120_v20  ;;  %v4524_v38 = vld [vmem:[%s8007_s0 + $0x15c] sm:$0xf]  ;;  %v3930_v44 = vld [vmem:[%s8007_s0 + $0xc0] sm:$0xf0]  ;;  %v3938_v49 = vld [vmem:[%s8007_s0 + $0xc8] sm:$0xf0]  ;;  %v399_v58 = vunpack.c.l.b16 %v120_v20 }
  0x19   :  { %874 = vmatpush.bf16.msrb.mxu1 %v4045_v1  ;;  %932 = vmatpush.bf16.msrb.mxu3 %v4053_v2  ;;  %v649_v41 = vsel %vm614_vm0, %v504_v36, 0  ;;  %v505_v2 = vpack.c.b16 %v397_v0, %v397_v0  ;;  %v4523_v36 = vld [vmem:[%s8007_s0 + $0x154] sm:$0xf]  ;;  %v4488_v45 = vld [vmem:[%s8007_s0 + $0x3c] sm:$0xf]  ;;  %s4742_s11 = smov 32  }
  0x1a   :  { %s4743_s12 = smov 64   ;;  %s4745_s13 = smov 80  }
  0x1b   :  { %788 = vmatpush.bf16.msrb.mxu2 %v3889_v42  ;;  %v4061_v42 = vor.u32 %v4521_v34, %v4058_v37  ;;  %v652_v5 = vsel %vm614_vm0, %v505_v2, 0  ;;  %v4074_v37 = vld [vmem:[%s8007_s0 + $0x1e0] sm:$0xf0]  ;;  %s4746_s14 = smov 40  }
  0x1c   :  { %846 = vmatpush.bf16.msrb.mxu0 %v3897_v51  ;;  %v395_v51 = vunpack.c.l.b16 %v118_v29  ;;  %v4077_v39 = vor.u32 %v4523_v36, %v4074_v37 }
  0x1d   :  { %875 = vmatpush.bf16.msrb.mxu1 %v3901_v7  ;;  %933 = vmatpush.bf16.msrb.mxu3 %v3909_v8  ;;  %v4072_v7 = vld [vmem:[%s8007_s0 + $0x150] sm:$0xf]  ;;  %v4541_v8 = vld [vmem:[%s8007_s0 + $0x1dc] sm:$0xf0] }
  0x1e   :  { %v503_v53 = vpack.c.b16 %v395_v51, %v395_v51  ;;  %v4073_v10 = vor.u32 %v4541_v8, %v4072_v7  ;;  %v4542_v7 = vld [vmem:[%s8007_s0 + $0x1e4] sm:$0xf0] }
  0x1f   :  { %902 = vmatpush.bf16.msra.mxu2 %v634_v14 }
  0x20   :  { %960 = vmatpush.bf16.msra.mxu0 %v640_v24  ;;  %v646_v54 = vsel %vm614_vm0, %v503_v53, 0  ;;  %v506_v24 = vpack.c.b16 %v398_v21, %v398_v21  ;;  %v3941_v53 = vor.u32 %v4488_v45, %v3938_v49  ;;  %v4088_v49 = vld [vmem:[%s8007_s0 + $0x160] sm:$0xf] }
  0x21   :  { %989 = vmatpush.bf16.msra.mxu1 %v643_v40  ;;  %1047 = vmatpush.bf16.msra.mxu3 %v649_v41  ;;  %v4082_v40 = vld [vmem:[%s8007_s0 + $0x1e8] sm:$0xf0] }
  0x22   :  { %4167 = vmatmul.msk.bf16.gmra.mxu0 %vm601_vm1, %v4896_v52  ;;  %4174 = vmatmul.msk.bf16.vlgmr.msrb.gmra.mxu2 %vm601_vm1, %v4845_v31  ;;  %v655_v29 = vsel %vm614_vm0, %v506_v24, 0  ;;  %v4085_v41 = vor.u32 %v4524_v38, %v4082_v40  ;;  %v121_v38 = vld [vmem:[%s8007_s0 + $0x280] sm:$0x33] }
  0x23   :  { %4171 = vmatmul.msk.bf16.gmra.mxu1 %vm601_vm1, %v4896_v52  ;;  %903 = vmatpush.bf16.msra.mxu2 %v4049_v15  ;;  %v3929_v15 = vor.u32 %v4505_v13, %v3928_v12  ;;  %v3936_v13 = vld [vmem:[%s8007_s0 + $0x38] sm:$0xf] }
  0x24   :  { %4179 = vmatmul.msk.bf16.gmra.mxu3 %vm601_vm1, %v4896_v52  ;;  %961 = vmatpush.bf16.msra.mxu0 %v4057_v25  ;;  %v508_v25 = vpack.c.b16 %v400_v22, %v400_v22 }
  0x25   :  { %990 = vmatpush.bf16.msra.mxu1 %v4061_v42  ;;  %1048 = vmatpush.bf16.msra.mxu3 %v4069_v43  ;;  %v4487_v43 = vld [vmem:[%s8007_s0 + $0x34] sm:$0xf] }
  0x26   :  { %v661_v30 = vsel %vm614_vm0, %v508_v25, 0 }
  0x27   :  { %904 = vmatpush.bf16.msra.mxu2 %v3905_v18 }
  0x28   :  { %962 = vmatpush.bf16.msra.mxu0 %v3913_v28 }
  0x29   :  { %991 = vmatpush.bf16.msra.mxu1 %v3917_v48  ;;  %1049 = vmatpush.bf16.msra.mxu3 %v3925_v50  ;;  %v3933_v48 = vor.u32 %v4487_v43, %v3930_v44 }
  0x2b   :  { %1018 = vmatpush.bf16.msrb.mxu2 %v646_v54 }
  0x2f   :  { %1019 = vmatpush.bf16.msrb.mxu2 %v4065_v57  ;;  %v4120_v57 = vld [vmem:[%s8007_s0 + $0x180] sm:$0xf] }
  0x32   :  { %4168 = vmatmul.msk.bf16.gmra.mxu0 %vm601_vm1, %v4941_v9  ;;  %4175 = vmatmul.msk.bf16.gmra.mxu2 %vm601_vm1, %v4896_v52 }
  0x33   :  { %4172 = vmatmul.msk.bf16.gmra.mxu1 %vm601_vm1, %v4941_v9  ;;  %1020 = vmatpush.bf16.msrb.mxu2 %v3921_v60  ;;  %v507_v60 = vpack.c.b16 %v399_v58, %v399_v58  ;;  %v4507_v58 = vld [vmem:[%s8007_s0 + $0xcc] sm:$0xf0] }
  0x34   :  { %4180 = vmatmul.msk.bf16.gmra.mxu3 %vm601_vm1, %v4941_v9 }
  0x35   :  { %v658_v2 = vsel %vm614_vm0, %v507_v60, 0 }
  0x42   :  { %4176 = vmatmul.msk.bf16.gmra.mxu2 %vm601_vm1, %v4941_v9  ;;  %4182 = vmatmul.msk.bf16.vlgmr.msrb.gmra.mxu0 %vm601_vm1, %v4845_v31 }
  0x43   :  { %4173 = vmatmul.msk.bf16.gmra.mxu1 %vm601_vm1, %v4850_v32  ;;  %1076 = vmatpush.bf16.msrb.mxu0 %v652_v5 }
  0x44   :  { %4181 = vmatmul.msk.bf16.gmra.mxu3 %vm601_vm1, %v4850_v32 }
  0x47   :  { %1077 = vmatpush.bf16.msrb.mxu0 %v4073_v10 }
  0x4b   :  { %1078 = vmatpush.bf16.msrb.mxu0 %v3929_v15 }
  0x52   :  { %4177 = vmatmul.msk.bf16.gmra.mxu2 %vm601_vm1, %v4850_v32  ;;  %4183 = vmatmul.msk.bf16.gmra.mxu0 %vm601_vm1, %v4896_v52 }
  0x53   :  { %4186 = vmatmul.msk.bf16.vlgmr.msrb.gmra.mxu1 %vm601_vm1, %v4845_v31 }
  0x54   :  { %4194 = vmatmul.msk.bf16.vlgmr.msrb.gmra.mxu3 %vm601_vm1, %v4845_v31  ;;  %1105 = vmatpush.bf16.msrb.mxu1 %v655_v29 }
  0x55   :  { %1163 = vmatpush.bf16.msrb.mxu3 %v661_v30 }
  0x58   :  { %1106 = vmatpush.bf16.msrb.mxu1 %v4077_v39  ;;  %v401_v39 = vunpack.c.l.b16 %v121_v38 }
  0x59   :  { %1164 = vmatpush.bf16.msrb.mxu3 %v4085_v41 }
  0x5a   :  { %v509_v41 = vpack.c.b16 %v401_v39, %v401_v39 }
  0x5c   :  { %1107 = vmatpush.bf16.msrb.mxu1 %v3933_v48  ;;  %v664_v45 = vsel %vm614_vm0, %v509_v41, 0  ;;  %v4098_v41 = vld [vmem:[%s8007_s0 + $0x1f8] sm:$0xf0] }
  0x5d   :  { %1165 = vmatpush.bf16.msrb.mxu3 %v3941_v53 }
  0x62   :  { %4184 = vmatmul.msk.bf16.gmra.mxu0 %vm601_vm1, %v4941_v9  ;;  %4190 = vmatmul.msk.bf16.vlgmr.msra.gmra.mxu2 %vm601_vm1, %v4845_v31 }
  0x63   :  { %4187 = vmatmul.msk.bf16.gmra.mxu1 %vm601_vm1, %v4896_v52  ;;  %1134 = vmatpush.bf16.msra.mxu2 %v658_v2 }
  0x64   :  { %4195 = vmatmul.msk.bf16.gmra.mxu3 %vm601_vm1, %v4896_v52 }
  0x72   :  { %4185 = vmatmul.msk.bf16.gmra.mxu0 %vm601_vm1, %v4850_v32  ;;  %4191 = vmatmul.msk.bf16.gmra.mxu2 %vm601_vm1, %v4896_v52 }
  0x73   :  { %4188 = vmatmul.msk.bf16.gmra.mxu1 %vm601_vm1, %v4941_v9 }
  0x74   :  { %4196 = vmatmul.msk.bf16.gmra.mxu3 %vm601_vm1, %v4941_v9 }
  0x82   :  { %4192 = vmatmul.msk.bf16.gmra.mxu2 %vm601_vm1, %v4941_v9  ;;  %4198 = vmatmul.msk.bf16.vlgmr.msra.gmra.mxu0 %vm601_vm1, %v4845_v31 }
  0x83   :  { %4189 = vmatmul.msk.bf16.gmra.mxu1 %vm601_vm1, %v4850_v32  ;;  %1192 = vmatpush.bf16.msra.mxu0 %v664_v45  ;;  %v4489_v45 = vld [vmem:[%s8007_s0 + $0x44] sm:$0xf] }
  0x84   :  { %4197 = vmatmul.msk.bf16.gmra.mxu3 %vm601_vm1, %v4850_v32 }
  0x8f   :  { %v5062_v61 = vpop.f32.mrf.mxu0 }
  0x90   :  { %v5064_v62 = vpop.f32.mrf.mxu1 }
  0x92   :  { %4193 = vmatmul.msk.bf16.gmra.mxu2 %vm601_vm1, %v4850_v32  ;;  %4199 = vmatmul.msk.bf16.gmra.mxu0 %vm601_vm1, %v4896_v52 }
  0x93   :  { %4202 = vmatmul.msk.bf16.vlgmr.msra.gmra.mxu1 %vm601_vm1, %v4845_v31 }
  0x94   :  { %4210 = vmatmul.msk.bf16.vlgmr.msra.gmra.mxu3 %vm601_vm1, %v4845_v31 }
  0x95   :  { %v5077_v1 = vpop.f32.mrf.mxu2 }
  0x97   :  { %v5079_v3 = vpop.f32.mrf.mxu3  ;;  %v5081_v4 = vpop.f32.mrf.mxu0 }
  0x98   :  { %v5084_v6 = vpop.f32.mrf.mxu1 }
  0x9d   :  { %v5092_v11 = vpop.f32.mrf.mxu2 }
  0x9f   :  { %v5100_v14 = vpop.f32.mrf.mxu3  ;;  %v737_v16 = vpop.f32.mrf.mxu0 }
  0xa0   :  { %v1767_v17 = vmax.f32 %v5062_v61, %v737_v16  ;;  %v766_v18 = vpop.f32.mrf.mxu1 }
  0xa1   :  { %v1768_v19 = vmax.f32 %v5064_v62, %v766_v18 }
  0xa2   :  { %4200 = vmatmul.msk.bf16.gmra.mxu0 %vm601_vm1, %v4941_v9  ;;  %4206 = vmatmul.msk.bf16.vlgmr.msrb.gmra.mxu2 %vm601_vm1, %v4845_v31 }
  0xa3   :  { %4203 = vmatmul.msk.bf16.gmra.mxu1 %vm601_vm1, %v4896_v52 }
  0xa4   :  { %4211 = vmatmul.msk.bf16.gmra.mxu3 %vm601_vm1, %v4896_v52 }
  0xa5   :  { %v5115_v23 = vpop.f32.mrf.mxu2 }
  0xa7   :  { %v824_v26 = vpop.f32.mrf.mxu3  ;;  %v739_v28 = vpop.f32.mrf.mxu0 }
  0xa8   :  { %v1770_v27 = vmax.f32 %v5079_v3, %v824_v26  ;;  %v1803_v33 = vmax.f32 %v5081_v4, %v739_v28  ;;  %v768_v34 = vpop.f32.mrf.mxu1 }
  0xa9   :  { %v1804_v35 = vmax.f32 %v5084_v6, %v768_v34  ;;  %v4080_v6 = vld [vmem:[%s8007_s0 + $0x158] sm:$0xf] }
  0xaa   :  { %v4081_v10 = vor.u32 %v4542_v7, %v4080_v6  ;;  %v122_v6 = vld [vmem:[%s8007_s0 + $0x288] sm:$0x33]  ;;  %v402_v7 = vunpack.c.h.b16 %v121_v38 }
  0xab   :  { %v4526_v38 = vld [vmem:[%s8007_s0 + $0x16c] sm:$0xf] }
  0xac   :  { %1135 = vmatpush.bf16.msra.mxu2 %v4081_v10  ;;  %v404_v10 = vunpack.c.h.b16 %v122_v6 }
  0xad   :  { %v792_v42 = vpop.f32.mrf.mxu2 }
  0xaf   :  { %v826_v47 = vpop.f32.mrf.mxu3  ;;  %v742_v51 = vpop.f32.mrf.mxu0 }
  0xb0   :  { %v1806_v50 = vmax.f32 %v5100_v14, %v826_v47  ;;  %v5147_v54 = vmax.f32 %v1767_v17, %v742_v51  ;;  %v771_v55 = vpop.f32.mrf.mxu1  ;;  %v4506_v14 = vld [vmem:[%s8007_s0 + $0xc4] sm:$0xf0] }
  0xb1   :  { %v5149_v56 = vmax.f32 %v1768_v19, %v771_v55  ;;  %v3937_v17 = vor.u32 %v4506_v14, %v3936_v13  ;;  %v3944_v55 = vld [vmem:[%s8007_s0 + $0x40] sm:$0xf]  ;;  %v510_v13 = vpack.c.b16 %v402_v7, %v402_v7  ;;  %v512_v14 = vpack.c.b16 %v404_v10, %v404_v10 }
  0xb2   :  { %4201 = vmatmul.msk.bf16.gmra.mxu0 %vm601_vm1, %v4850_v32  ;;  %4207 = vmatmul.msk.bf16.gmra.mxu2 %vm601_vm1, %v4896_v52 }
  0xb3   :  { %4204 = vmatmul.msk.bf16.gmra.mxu1 %vm601_vm1, %v4941_v9  ;;  %1136 = vmatpush.bf16.msra.mxu2 %v3937_v17 }
  0xb4   :  { %4212 = vmatmul.msk.bf16.gmra.mxu3 %vm601_vm1, %v4941_v9 }
  0xb5   :  { %v795_v59 = vpop.f32.mrf.mxu2 }
  0xb6   :  { %v1769_v61 = vmax.f32 %v5115_v23, %v795_v59 }
  0xb7   :  { %v829_v62 = vpop.f32.mrf.mxu3  ;;  %v744_v0 = vpop.f32.mrf.mxu0 }
  0xb8   :  { %v5162_v63 = vmax.f32 %v1770_v27, %v829_v62  ;;  %v5165_v3 = vmax.f32 %v1803_v33, %v744_v0  ;;  %v773_v4 = vpop.f32.mrf.mxu1 }
  0xb9   :  { %v5167_v5 = vmax.f32 %v1804_v35, %v773_v4 }
  0xbd   :  { %v797_v12 = vpop.f32.mrf.mxu2 }
  0xbe   :  { %v1805_v15 = vmax.f32 %v792_v42, %v797_v12 }
  0xbf   :  { %v831_v16 = vpop.f32.mrf.mxu3  ;;  %v848_v19 = vpop.f32.mrf.mxu0 }
  0xc0   :  { %v5183_v18 = vmax.f32 %v1806_v50, %v831_v16  ;;  %v5185_v20 = vpop.f32.mrf.mxu1  ;;  %v4543_v50 = vld [vmem:[%s8007_s0 + $0x1ec] sm:$0xf0] }
  0xc1   :  { %v4089_v51 = vor.u32 %v4543_v50, %v4088_v49 }
  0xc2   :  { %4208 = vmatmul.msk.bf16.gmra.mxu2 %vm601_vm1, %v4941_v9  ;;  %4214 = vmatmul.msk.bf16.vlgmr.msrb.gmra.mxu0 %vm601_vm1, %v4845_v31 }
  0xc3   :  { %4205 = vmatmul.msk.bf16.gmra.mxu1 %vm601_vm1, %v4850_v32  ;;  %1193 = vmatpush.bf16.msra.mxu0 %v4089_v51  ;;  %v3954_v51 = vld [vmem:[%s8007_s0 + $0xd8] sm:$0xf0] }
  0xc4   :  { %4213 = vmatmul.msk.bf16.gmra.mxu3 %vm601_vm1, %v4850_v32 }
  0xc5   :  { %v800_v22 = vpop.f32.mrf.mxu2 }
  0xc6   :  { %v5197_v23 = vmax.f32 %v1769_v61, %v800_v22  ;;  %v3945_v61 = vor.u32 %v4507_v58, %v3944_v55  ;;  %v673_v22 = vsel %vm614_vm0, %v512_v14, 0 }
  0xc7   :  { %v5199_v24 = vpop.f32.mrf.mxu3  ;;  %v850_v26 = vpop.f32.mrf.mxu0  ;;  %1279 = vmatpush.bf16.msra.mxu3 %v673_v22 }
  0xc8   :  { %v5203_v27 = vpop.f32.mrf.mxu1  ;;  %1194 = vmatpush.bf16.msra.mxu0 %v3945_v61 }
  0xcd   :  { %v802_v29 = vpop.f32.mrf.mxu2 }
  0xce   :  { %v5207_v30 = vmax.f32 %v1805_v15, %v802_v29 }
  0xcf   :  { %v5209_v33 = vpop.f32.mrf.mxu3  ;;  %v853_v35 = vpop.f32.mrf.mxu0 }
  0xd0   :  { %v1771_v36 = vmax.f32 %v848_v19, %v853_v35  ;;  %v5213_v37 = vpop.f32.mrf.mxu1  ;;  %v667_v19 = vsel %vm614_vm0, %v510_v13, 0 }
  0xd1   :  { %1221 = vmatpush.bf16.msra.mxu1 %v667_v19 }
  0xd2   :  { %4209 = vmatmul.msk.bf16.gmra.mxu2 %vm601_vm1, %v4850_v32  ;;  %4215 = vmatmul.msk.bf16.gmra.mxu0 %vm601_vm1, %v4896_v52 }
  0xd3   :  { %4218 = vmatmul.msk.bf16.vlgmr.msrb.gmra.mxu1 %vm601_vm1, %v4845_v31 }
  0xd4   :  { %4226 = vmatmul.msk.bf16.vlgmr.msrb.gmra.mxu3 %vm601_vm1, %v4845_v31 }
  0xd5   :  { %v5226_v40 = vpop.f32.mrf.mxu2 }
  0xd7   :  { %v5230_v43 = vpop.f32.mrf.mxu3  ;;  %v855_v44 = vpop.f32.mrf.mxu0 }
  0xd8   :  { %v1807_v47 = vmax.f32 %v850_v26, %v855_v44  ;;  %v5233_v48 = vpop.f32.mrf.mxu1 }
  0xdd   :  { %v5241_v53 = vpop.f32.mrf.mxu2 }
  0xdf   :  { %v5251_v60 = vpop.f32.mrf.mxu3  ;;  %v858_v62 = vpop.f32.mrf.mxu0 }
  0xe0   :  { %v5253_v0 = vmax.f32 %v1771_v36, %v858_v62  ;;  %v882_v2 = vpop.f32.mrf.mxu1  ;;  %v4525_v36 = vld [vmem:[%s8007_s0 + $0x164] sm:$0xf] }
  0xe1   :  { %v1772_v4 = vmax.f32 %v5213_v37, %v882_v2  ;;  %v4090_v37 = vld [vmem:[%s8007_s0 + $0x1f0] sm:$0xf0] }
  0xe2   :  { %4216 = vmatmul.msk.bf16.gmra.mxu0 %vm601_vm1, %v4941_v9  ;;  %4222 = vmatmul.msk.bf16.vlgmr.msra.gmra.mxu2 %vm601_vm1, %v4845_v31  ;;  %v4093_v39 = vor.u32 %v4525_v36, %v4090_v37 }
  0xe3   :  { %4219 = vmatmul.msk.bf16.gmra.mxu1 %vm601_vm1, %v4896_v52 }
  0xe4   :  { %4227 = vmatmul.msk.bf16.gmra.mxu3 %vm601_vm1, %v4896_v52  ;;  %1222 = vmatpush.bf16.msra.mxu1 %v4093_v39 }
  0xe5   :  { %v5267_v12 = vpop.f32.mrf.mxu2 }
  0xe7   :  { %v940_v15 = vpop.f32.mrf.mxu3  ;;  %v860_v17 = vpop.f32.mrf.mxu0 }
  0xe8   :  { %v1774_v16 = vmax.f32 %v5230_v43, %v940_v15  ;;  %v5272_v26 = vmax.f32 %v1807_v47, %v860_v17  ;;  %v884_v29 = vpop.f32.mrf.mxu1  ;;  %v4101_v43 = vor.u32 %v4526_v38, %v4098_v41  ;;  %v3946_v47 = vld [vmem:[%s8007_s0 + $0xd0] sm:$0xf0]  ;;  %v3952_v38 = vld [vmem:[%s8007_s0 + $0x48] sm:$0xf] }
  0xe9   :  { %v1808_v35 = vmax.f32 %v5233_v48, %v884_v29  ;;  %v4490_v48 = vld [vmem:[%s8007_s0 + $0x4c] sm:$0xf]  ;;  %v3949_v50 = vor.u32 %v4489_v45, %v3946_v47 }
  0xea   :  { %1280 = vmatpush.bf16.msra.mxu3 %v4101_v43  ;;  %v3957_v61 = vor.u32 %v4490_v48, %v3954_v51 }
  0xeb   :  { %1223 = vmatpush.bf16.msra.mxu1 %v3949_v50 }
  0xed   :  { %v908_v44 = vpop.f32.mrf.mxu2 }
  0xee   :  { %1281 = vmatpush.bf16.msra.mxu3 %v3957_v61 }
  0xef   :  { %v942_v49 = vpop.f32.mrf.mxu3  ;;  %v5300_v58 = vpop.f32.mrf.mxu0 }
  0xf0   :  { %v1810_v55 = vmax.f32 %v5251_v60, %v942_v49  ;;  %v887_v2 = vpop.f32.mrf.mxu1  ;;  %v403_v60 = vunpack.c.l.b16 %v122_v6  ;;  %v4096_v6 = vld [vmem:[%s8007_s0 + $0x168] sm:$0xf] }
  0xf1   :  { %v5304_v7 = vmax.f32 %v1772_v4, %v887_v2 }
  0xf2   :  { %4217 = vmatmul.msk.bf16.gmra.mxu0 %vm601_vm1, %v4850_v32  ;;  %4223 = vmatmul.msk.bf16.gmra.mxu2 %vm601_vm1, %v4896_v52  ;;  %v511_v13 = vpack.c.b16 %v403_v60, %v403_v60 }
  0xf3   :  { %4220 = vmatmul.msk.bf16.gmra.mxu1 %vm601_vm1, %v4941_v9 }
  0xf4   :  { %4228 = vmatmul.msk.bf16.gmra.mxu3 %vm601_vm1, %v4941_v9  ;;  %v670_v19 = vsel %vm614_vm0, %v511_v13, 0 }
  0xf5   :  { %v911_v10 = vpop.f32.mrf.mxu2  ;;  %1250 = vmatpush.bf16.msrb.mxu2 %v670_v19 }
  0xf6   :  { %v1773_v14 = vmax.f32 %v5267_v12, %v911_v10  ;;  %v4544_v12 = vld [vmem:[%s8007_s0 + $0x1f4] sm:$0xf0] }
  0xf7   :  { %v945_v4 = vpop.f32.mrf.mxu3  ;;  %v5317_v17 = vpop.f32.mrf.mxu0 }
  0xf8   :  { %v5315_v15 = vmax.f32 %v1774_v16, %v945_v4  ;;  %v889_v29 = vpop.f32.mrf.mxu1  ;;  %v4097_v16 = vor.u32 %v4544_v12, %v4096_v6  ;;  %v123_v12 = vld [vmem:[%s8007_s0 + $0x290] sm:$0x33] }
  0xf9   :  { %v5322_v36 = vmax.f32 %v1808_v35, %v889_v29  ;;  %v4508_v35 = vld [vmem:[%s8007_s0 + $0xd4] sm:$0xf0] }
  0xfa   :  { %1251 = vmatpush.bf16.msrb.mxu2 %v4097_v16  ;;  %v3953_v43 = vor.u32 %v4508_v35, %v3952_v38  ;;  %v405_v16 = vunpack.c.l.b16 %v123_v12 }
  0xfc   :  { %v513_v38 = vpack.c.b16 %v405_v16, %v405_v16 }
  0xfd   :  { %v913_v37 = vpop.f32.mrf.mxu2 }
  0xfe   :  { %v1809_v39 = vmax.f32 %v908_v44, %v913_v37  ;;  %1252 = vmatpush.bf16.msrb.mxu2 %v3953_v43  ;;  %v676_v43 = vsel %vm614_vm0, %v513_v38, 0  ;;  %v3960_v38 = vld [vmem:[%s8007_s0 + $0x50] sm:$0xf] }
  0xff   :  { %v947_v41 = vpop.f32.mrf.mxu3  ;;  %v964_v47 = vpop.f32.mrf.mxu0  ;;  %1308 = vmatpush.bf16.msrb.mxu0 %v676_v43 }
 0x100   :  { %v5336_v45 = vmax.f32 %v1810_v55, %v947_v41  ;;  %v5338_v48 = vpop.f32.mrf.mxu1 }
 0x102   :  { %4224 = vmatmul.msk.bf16.gmra.mxu2 %vm601_vm1, %v4941_v9  ;;  %4230 = vmatmul.msk.bf16.vlgmr.msra.gmra.mxu0 %vm601_vm1, %v4845_v31 }
 0x103   :  { %4221 = vmatmul.msk.bf16.gmra.mxu1 %vm601_vm1, %v4850_v32 }
 0x104   :  { %4229 = vmatmul.msk.bf16.gmra.mxu3 %vm601_vm1, %v4850_v32 }
 0x105   :  { %v916_v44 = vpop.f32.mrf.mxu2 }
 0x106   :  { %v5350_v50 = vmax.f32 %v1773_v14, %v916_v44 }
 0x107   :  { %v5352_v51 = vpop.f32.mrf.mxu3  ;;  %v966_v61 = vpop.f32.mrf.mxu0 }
 0x108   :  { %v5356_v2 = vpop.f32.mrf.mxu1 }
 0x10d   :  { %v918_v10 = vpop.f32.mrf.mxu2 }
 0x10e   :  { %v5360_v13 = vmax.f32 %v1809_v39, %v918_v10  ;;  %v4104_v10 = vld [vmem:[%s8007_s0 + $0x170] sm:$0xf] }
 0x10f   :  { %v5362_v4 = vpop.f32.mrf.mxu3  ;;  %v969_v19 = vpop.f32.mrf.mxu0 }
 0x110   :  { %v1775_v29 = vmax.f32 %v964_v47, %v969_v19  ;;  %v5366_v6 = vpop.f32.mrf.mxu1  ;;  %v4545_v19 = vld [vmem:[%s8007_s0 + $0x1fc] sm:$0xf0] }
 0x111   :  { %v4105_v16 = vor.u32 %v4545_v19, %v4104_v10 }
 0x112   :  { %4225 = vmatmul.msk.bf16.gmra.mxu2 %vm601_vm1, %v4850_v32  ;;  %4231 = vmatmul.msk.bf16.gmra.mxu0 %vm601_vm1, %v4896_v52 }
 0x113   :  { %4234 = vmatmul.msk.bf16.vlgmr.msra.gmra.mxu1 %vm601_vm1, %v4845_v31  ;;  %1309 = vmatpush.bf16.msrb.mxu0 %v4105_v16  ;;  %v124_v16 = vld [vmem:[%s8007_s0 + $0x298] sm:$0x33] }
 0x114   :  { %4242 = vmatmul.msk.bf16.vlgmr.msra.gmra.mxu3 %vm601_vm1, %v4845_v31 }
 0x115   :  { %v5379_v37 = vpop.f32.mrf.mxu2 }
 0x117   :  { %v5383_v39 = vpop.f32.mrf.mxu3  ;;  %v971_v41 = vpop.f32.mrf.mxu0 }
 0x118   :  { %v1811_v47 = vmax.f32 %v966_v61, %v971_v41  ;;  %v5386_v44 = vpop.f32.mrf.mxu1  ;;  %v4509_v61 = vld [vmem:[%s8007_s0 + $0xdc] sm:$0xf0] }
 0x119   :  { %v3961_v14 = vor.u32 %v4509_v61, %v3960_v38 }
 0x11b   :  { %1310 = vmatpush.bf16.msrb.mxu0 %v3961_v14  ;;  %v408_v14 = vunpack.c.h.b16 %v124_v16 }
 0x11d   :  { %v5394_v46 = vpop.f32.mrf.mxu2  ;;  %v516_v38 = vpack.c.b16 %v408_v14, %v408_v14  ;;  %v4528_v14 = vld [vmem:[%s8007_s0 + $0x17c] sm:$0xf] }
 0x11f   :  { %v5404_v43 = vpop.f32.mrf.mxu3  ;;  %v974_v55 = vpop.f32.mrf.mxu0  ;;  %v685_v49 = vsel %vm614_vm0, %v516_v38, 0 }
 0x120   :  { %v5406_v35 = vmax.f32 %v1775_v29, %v974_v55  ;;  %v998_v10 = vpop.f32.mrf.mxu1  ;;  %v406_v55 = vunpack.c.h.b16 %v123_v12  ;;  %1395 = vmatpush.bf16.msrb.mxu3 %v685_v49 }
 0x121   :  { %v1776_v19 = vmax.f32 %v5366_v6, %v998_v10 }
 0x122   :  { %4232 = vmatmul.msk.bf16.gmra.mxu0 %vm601_vm1, %v4941_v9  ;;  %4238 = vmatmul.msk.bf16.vlgmr.msrb.gmra.mxu2 %vm601_vm1, %v4845_v31  ;;  %v514_v6 = vpack.c.b16 %v406_v55, %v406_v55  ;;  %v4527_v55 = vld [vmem:[%s8007_s0 + $0x174] sm:$0xf] }
 0x123   :  { %4235 = vmatmul.msk.bf16.gmra.mxu1 %vm601_vm1, %v4896_v52 }
 0x124   :  { %4243 = vmatmul.msk.bf16.gmra.mxu3 %vm601_vm1, %v4896_v52  ;;  %v679_v60 = vsel %vm614_vm0, %v514_v6, 0 }
 0x125   :  { %v5420_v29 = vpop.f32.mrf.mxu2  ;;  %1337 = vmatpush.bf16.msrb.mxu1 %v679_v60  ;;  %v4114_v60 = vld [vmem:[%s8007_s0 + $0x208] sm:$0xf0] }
 0x126   :  { %v4117_v49 = vor.u32 %v4528_v14, %v4114_v60 }
 0x127   :  { %v1056_v61 = vpop.f32.mrf.mxu3  ;;  %v976_v41 = vpop.f32.mrf.mxu0 }
 0x128   :  { %v1778_v10 = vmax.f32 %v5383_v39, %v1056_v61  ;;  %v5425_v22 = vmax.f32 %v1811_v47, %v976_v41  ;;  %v1000_v62 = vpop.f32.mrf.mxu1  ;;  %v4106_v39 = vld [vmem:[%s8007_s0 + $0x200] sm:$0xf0]  ;;  %1396 = vmatpush.bf16.msrb.mxu3 %v4117_v49  ;;  %v4491_v47 = vld [vmem:[%s8007_s0 + $0x54] sm:$0xf]  ;;  %v4492_v41 = vld [vmem:[%s8007_s0 + $0x5c] sm:$0xf] }
 0x129   :  { %v1812_v12 = vmax.f32 %v5386_v44, %v1000_v62  ;;  %v4109_v6 = vor.u32 %v4527_v55, %v4106_v39  ;;  %v3962_v44 = vld [vmem:[%s8007_s0 + $0xe0] sm:$0xf0]  ;;  %v3970_v55 = vld [vmem:[%s8007_s0 + $0xe8] sm:$0xf0] }
 0x12a   :  { %v3965_v61 = vor.u32 %v4491_v47, %v3962_v44 }
 0x12b   :  { %1338 = vmatpush.bf16.msrb.mxu1 %v4109_v6  ;;  %v3973_v6 = vor.u32 %v4492_v41, %v3970_v55 }
 0x12d   :  { %v1024_v62 = vpop.f32.mrf.mxu2  ;;  %1397 = vmatpush.bf16.msrb.mxu3 %v3973_v6 }
 0x12f   :  { %v1058_v38 = vpop.f32.mrf.mxu3  ;;  %v5453_v14 = vpop.f32.mrf.mxu0  ;;  %1339 = vmatpush.bf16.msrb.mxu1 %v3965_v61 }
 0x130   :  { %v1814_v39 = vmax.f32 %v5404_v43, %v1058_v38  ;;  %v1003_v49 = vpop.f32.mrf.mxu1  ;;  %v407_v43 = vunpack.c.l.b16 %v124_v16  ;;  %v4112_v16 = vld [vmem:[%s8007_s0 + $0x178] sm:$0xf] }
 0x131   :  { %v5457_v34 = vmax.f32 %v1776_v19, %v1003_v49 }
 0x132   :  { %4233 = vmatmul.msk.bf16.gmra.mxu0 %vm601_vm1, %v4850_v32  ;;  %4239 = vmatmul.msk.bf16.gmra.mxu2 %vm601_vm1, %v4896_v52  ;;  %v515_v44 = vpack.c.b16 %v407_v43, %v407_v43 }
 0x133   :  { %4236 = vmatmul.msk.bf16.gmra.mxu1 %vm601_vm1, %v4941_v9 }
 0x134   :  { %4244 = vmatmul.msk.bf16.gmra.mxu3 %vm601_vm1, %v4941_v9  ;;  %v682_v55 = vsel %vm614_vm0, %v515_v44, 0 }
 0x135   :  { %v1027_v47 = vpop.f32.mrf.mxu2  ;;  %1366 = vmatpush.bf16.msra.mxu2 %v682_v55 }
 0x136   :  { %v1777_v41 = vmax.f32 %v5420_v29, %v1027_v47  ;;  %v4546_v29 = vld [vmem:[%s8007_s0 + $0x204] sm:$0xf0]  ;;  %v3968_v47 = vld [vmem:[%s8007_s0 + $0x58] sm:$0xf] }
 0x137   :  { %v1061_v19 = vpop.f32.mrf.mxu3  ;;  %v5470_v61 = vpop.f32.mrf.mxu0 }
 0x138   :  { %v5468_v38 = vmax.f32 %v1778_v10, %v1061_v19  ;;  %v1005_v49 = vpop.f32.mrf.mxu1  ;;  %v4113_v10 = vor.u32 %v4546_v29, %v4112_v16 }
 0x139   :  { %v5475_v60 = vmax.f32 %v1812_v12, %v1005_v49  ;;  %v4510_v12 = vld [vmem:[%s8007_s0 + $0xe4] sm:$0xf0] }
 0x13a   :  { %8188 = vst [vmem:[#allocation2_spill] sm:$0xff] %v5468_v38  ;;  %1367 = vmatpush.bf16.msra.mxu2 %v4113_v10  ;;  %v3969_v55 = vor.u32 %v4510_v12, %v3968_v47  ;;  %v5524_v10 = vld [vmem:[%s8008_s2 + $0x18] sm:$0xff] }
 0x13d   :  { %v1029_v43 = vpop.f32.mrf.mxu2 }
 0x13e   :  { %v1813_v44 = vmax.f32 %v1024_v62, %v1029_v43  ;;  %1368 = vmatpush.bf16.msra.mxu2 %v3969_v55 }
 0x13f   :  { %v1063_v19 = vpop.f32.mrf.mxu3  ;;  %v1080_v6 = vpop.f32.mrf.mxu0 }
 0x140   :  { %v5489_v49 = vmax.f32 %v1814_v39, %v1063_v19  ;;  %v5491_v25 = vpop.f32.mrf.mxu1 }
 0x142   :  { %8189 = vst [vmem:[#allocation3_spill] sm:$0xff] %v5489_v49  ;;  %4240 = vmatmul.msk.bf16.gmra.mxu2 %vm601_vm1, %v4941_v9  ;;  %4246 = vmatmul.msk.bf16.vlgmr.msrb.gmra.mxu0 %vm601_vm1, %v4845_v31 }
 0x143   :  { %4237 = vmatmul.msk.bf16.gmra.mxu1 %vm601_vm1, %v4850_v32 }
 0x144   :  { %4245 = vmatmul.msk.bf16.gmra.mxu3 %vm601_vm1, %v4850_v32 }
 0x145   :  { %v1032_v62 = vpop.f32.mrf.mxu2 }
 0x146   :  { %v5503_v39 = vmax.f32 %v1777_v41, %v1032_v62 }
 0x147   :  { %v5505_v29 = vpop.f32.mrf.mxu3  ;;  %v1082_v43 = vpop.f32.mrf.mxu0 }
 0x148   :  { %8190 = vst [vmem:[#allocation4_spill] sm:$0xff] %v5503_v39  ;;  %v5509_v47 = vpop.f32.mrf.mxu1 }
 0x149   :  { %8191 = vst [vmem:[#allocation5_spill] sm:$0xff] %v5505_v29 }
 0x14a   :  { %8192 = vst [vmem:[#allocation6_spill] sm:$0xff] %v5509_v47 }
 0x14d   :  { %v1034_v12 = vpop.f32.mrf.mxu2 }
 0x14e   :  { %v5513_v19 = vmax.f32 %v1813_v44, %v1034_v12  ;;  %v125_v44 = vld [vmem:[%s8007_s0 + $0x2a0] sm:$0x33] }
 0x14f   :  { %v5515_v55 = vpop.f32.mrf.mxu3  ;;  %v1085_v41 = vpop.f32.mrf.mxu0  ;;  %v409_v12 = vunpack.c.l.b16 %v125_v44 }
 0x150   :  { %8193 = vst [vmem:[#allocation7_spill] sm:$0xff] %v5513_v19  ;;  %v1779_v62 = vmax.f32 %v1080_v6, %v1085_v41  ;;  %v5519_v16 = vpop.f32.mrf.mxu1  ;;  %v5536_v6 = vld [vmem:[%s8008_s2] sm:$0xff] }
 0x151   :  { %8194 = vst [vmem:[#allocation8_spill] sm:$0xff] %v5515_v55  ;;  %v517_v32 = vpack.c.b16 %v409_v12, %v409_v12  ;;  %v4547_v12 = vld [vmem:[%s8007_s0 + $0x20c] sm:$0xf0] }
 0x152   :  { %4241 = vmatmul.msk.bf16.gmra.mxu2 %vm601_vm1, %v5524_v10  ;;  %4247 = vmatmul.msk.bf16.gmra.mxu0 %vm601_vm1, %v4896_v52  ;;  %v4121_v21 = vor.u32 %v4547_v12, %v4120_v57  ;;  %v126_v12 = vld [vmem:[%s8007_s0 + $0x2a8] sm:$0x33] }
 0x153   :  { %4250 = vmatmul.msk.bf16.vlgmr.msrb.gmra.mxu1 %vm601_vm1, %v5536_v6  ;;  %v688_v42 = vsel %vm614_vm0, %v517_v32, 0  ;;  %v3976_v32 = vld [vmem:[%s8007_s0 + $0x60] sm:$0xf] }
 0x154   :  { %4258 = vmatmul.msk.bf16.vlgmr.msrb.gmra.mxu3 %vm601_vm1, %v5536_v6  ;;  %1424 = vmatpush.bf16.msra.mxu0 %v688_v42  ;;  %v4511_v42 = vld [vmem:[%s8007_s0 + $0xec] sm:$0xf0] }
 0x155   :  { %v5542_v41 = vpop.f32.mrf.mxu2  ;;  %v3977_v55 = vor.u32 %v4511_v42, %v3976_v32  ;;  %v5582_v32 = vld [vmem:[%s8008_s2 + $0x8] sm:$0xff] }
 0x156   :  { %8195 = vst [vmem:[#allocation9_spill] sm:$0xff] %v5542_v41 }
 0x157   :  { %v5546_v31 = vpop.f32.mrf.mxu3  ;;  %v1087_v59 = vpop.f32.mrf.mxu0 }
 0x158   :  { %v1815_v28 = vmax.f32 %v1082_v43, %v1087_v59  ;;  %v5549_v8 = vpop.f32.mrf.mxu1  ;;  %1425 = vmatpush.bf16.msra.mxu0 %v4121_v21 }
 0x15c   :  { %1426 = vmatpush.bf16.msra.mxu0 %v3977_v55 }
 0x15d   :  { %v5557_v52 = vpop.f32.mrf.mxu2 }
 0x15e   :  { %8196 = vst [vmem:[#allocation10_spill] sm:$0xff] %v5557_v52 }
 0x15f   :  { %v5567_v43 = vpop.f32.mrf.mxu3  ;;  %v1090_v49 = vpop.f32.mrf.mxu0 }
 0x160   :  { %v5569_v29 = vmax.f32 %v1779_v62, %v1090_v49  ;;  %v1114_v57 = vpop.f32.mrf.mxu1  ;;  %v410_v49 = vunpack.c.h.b16 %v125_v44 }
 0x161   :  { %v1780_v21 = vmax.f32 %v5519_v16, %v1114_v57 }
 0x162   :  { %8197 = vst [vmem:[#allocation11_spill] sm:$0xff] %v5569_v29  ;;  %4248 = vmatmul.msk.bf16.gmra.mxu0 %vm601_vm1, %v4941_v9  ;;  %4254 = vmatmul.msk.bf16.vlgmr.msra.gmra.mxu2 %vm601_vm1, %v5536_v6  ;;  %v412_v9 = vunpack.c.h.b16 %v126_v12  ;;  %v518_v55 = vpack.c.b16 %v410_v49, %v410_v49  ;;  %v4529_v49 = vld [vmem:[%s8007_s0 + $0x184] sm:$0xf] }
 0x163   :  { %4251 = vmatmul.msk.bf16.gmra.mxu1 %vm601_vm1, %v5582_v32 }
 0x164   :  { %4259 = vmatmul.msk.bf16.gmra.mxu3 %vm601_vm1, %v5582_v32  ;;  %v520_v62 = vpack.c.b16 %v412_v9, %v412_v9  ;;  %v691_v38 = vsel %vm614_vm0, %v518_v55, 0  ;;  %v4530_v9 = vld [vmem:[%s8007_s0 + $0x18c] sm:$0xf] }
 0x165   :  { %v5588_v16 = vpop.f32.mrf.mxu2  ;;  %1453 = vmatpush.bf16.msra.mxu1 %v691_v38 }
 0x166   :  { %v697_v52 = vsel %vm614_vm0, %v520_v62, 0 }
 0x167   :  { %v1172_v42 = vpop.f32.mrf.mxu3  ;;  %v1092_v59 = vpop.f32.mrf.mxu0  ;;  %1511 = vmatpush.bf16.msra.mxu3 %v697_v52  ;;  %v3978_v52 = vld [vmem:[%s8007_s0 + $0xf0] sm:$0xf0] }
 0x168   :  { %v1782_v57 = vmax.f32 %v5546_v31, %v1172_v42  ;;  %v5593_v19 = vmax.f32 %v1815_v28, %v1092_v59  ;;  %v1116_v41 = vpop.f32.mrf.mxu1  ;;  %v4122_v31 = vld [vmem:[%s8007_s0 + $0x210] sm:$0xf0]  ;;  %v4130_v28 = vld [vmem:[%s8007_s0 + $0x218] sm:$0xf0]  ;;  %v4494_v59 = vld [vmem:[%s8007_s0 + $0x6c] sm:$0xf] }
 0x169   :  { %v1816_v44 = vmax.f32 %v5549_v8, %v1116_v41  ;;  %v4125_v55 = vor.u32 %v4529_v49, %v4122_v31  ;;  %v4133_v38 = vor.u32 %v4530_v9, %v4130_v28  ;;  %v4493_v41 = vld [vmem:[%s8007_s0 + $0x64] sm:$0xf]  ;;  %v3986_v49 = vld [vmem:[%s8007_s0 + $0xf8] sm:$0xf0] }
 0x16a   :  { %8198 = vst [vmem:[#allocation12_spill] sm:$0xff] %v5593_v19  ;;  %v3981_v42 = vor.u32 %v4493_v41, %v3978_v52 }
 0x16b   :  { %1454 = vmatpush.bf16.msra.mxu1 %v4125_v55  ;;  %1512 = vmatpush.bf16.msra.mxu3 %v4133_v38  ;;  %v3989_v55 = vor.u32 %v4494_v59, %v3986_v49 }
 0x16d   :  { %v1140_v8 = vpop.f32.mrf.mxu2 }
 0x16f   :  { %v1174_v62 = vpop.f32.mrf.mxu3  ;;  %v5621_v9 = vpop.f32.mrf.mxu0  ;;  %1455 = vmatpush.bf16.msra.mxu1 %v3981_v42  ;;  %1513 = vmatpush.bf16.msra.mxu3 %v3989_v55 }
 0x170   :  { %v1818_v31 = vmax.f32 %v5567_v43, %v1174_v62  ;;  %8199 = vst [vmem:[#allocation13_spill] sm:$0xff] %v5621_v9  ;;  %v1119_v38 = vpop.f32.mrf.mxu1  ;;  %v5634_v43 = vld [vmem:[%s8008_s2 + $0x10] sm:$0xff] }
 0x171   :  { %v5625_v39 = vmax.f32 %v1780_v21, %v1119_v38  ;;  %v411_v21 = vunpack.c.l.b16 %v126_v12  ;;  %v4128_v12 = vld [vmem:[%s8007_s0 + $0x188] sm:$0xf] }
 0x172   :  { %4249 = vmatmul.msk.bf16.gmra.mxu0 %vm601_vm1, %v5524_v10  ;;  %4255 = vmatmul.msk.bf16.gmra.mxu2 %vm601_vm1, %v5582_v32 }
 0x173   :  { %8200 = vst [vmem:[#allocation14_spill] sm:$0xff] %v5625_v39  ;;  %4252 = vmatmul.msk.bf16.gmra.mxu1 %vm601_vm1, %v5634_v43  ;;  %v519_v52 = vpack.c.b16 %v411_v21, %v411_v21 }
 0x174   :  { %4260 = vmatmul.msk.bf16.gmra.mxu3 %vm601_vm1, %v5634_v43 }
 0x175   :  { %v1143_v41 = vpop.f32.mrf.mxu2  ;;  %v694_v55 = vsel %vm614_vm0, %v519_v52, 0 }
 0x176   :  { %v1781_v59 = vmax.f32 %v5588_v16, %v1143_v41  ;;  %1482 = vmatpush.bf16.msrb.mxu2 %v694_v55  ;;  %v4548_v16 = vld [vmem:[%s8007_s0 + $0x214] sm:$0xf0]  ;;  %v3984_v41 = vld [vmem:[%s8007_s0 + $0x68] sm:$0xf] }
 0x177   :  { %v1177_v62 = vpop.f32.mrf.mxu3  ;;  %v5643_v49 = vpop.f32.mrf.mxu0 }
 0x178   :  { %v5641_v42 = vmax.f32 %v1782_v57, %v1177_v62  ;;  %8202 = vst [vmem:[#allocation16_spill] sm:$0xff] %v5643_v49  ;;  %v1121_v28 = vpop.f32.mrf.mxu1  ;;  %v4129_v57 = vor.u32 %v4548_v16, %v4128_v12 }
 0x179   :  { %v5648_v9 = vmax.f32 %v1816_v44, %v1121_v28  ;;  %v4512_v44 = vld [vmem:[%s8007_s0 + $0xf4] sm:$0xf0] }
 0x17a   :  { %8201 = vst [vmem:[#allocation15_spill] sm:$0xff] %v5641_v42  ;;  %1483 = vmatpush.bf16.msrb.mxu2 %v4129_v57  ;;  %v3985_v62 = vor.u32 %v4512_v44, %v3984_v41  ;;  %v4136_v42 = vld [vmem:[%s8007_s0 + $0x190] sm:$0xf] }
 0x17b   :  { %8203 = vst [vmem:[#allocation17_spill] sm:$0xff] %v5648_v9 }
 0x17d   :  { %v1145_v21 = vpop.f32.mrf.mxu2 }
 0x17e   :  { %v1817_v28 = vmax.f32 %v1140_v8, %v1145_v21  ;;  %1484 = vmatpush.bf16.msrb.mxu2 %v3985_v62 }
 0x17f   :  { %v1179_v52 = vpop.f32.mrf.mxu3  ;;  %v1196_v38 = vpop.f32.mrf.mxu0 }
 0x180   :  { %v5662_v55 = vmax.f32 %v1818_v31, %v1179_v52  ;;  %v5664_v49 = vpop.f32.mrf.mxu1 }
 0x181   :  { %8205 = vst [vmem:[#allocation19_spill] sm:$0xff] %v5664_v49 }
 0x182   :  { %8204 = vst [vmem:[#allocation18_spill] sm:$0xff] %v5662_v55  ;;  %4256 = vmatmul.msk.bf16.gmra.mxu2 %vm601_vm1, %v5634_v43  ;;  %4262 = vmatmul.msk.bf16.vlgmr.msra.gmra.mxu0 %vm601_vm1, %v5536_v6 }
 0x183   :  { %4253 = vmatmul.msk.bf16.gmra.mxu1 %vm601_vm1, %v5524_v10 }
 0x184   :  { %4261 = vmatmul.msk.bf16.gmra.mxu3 %vm601_vm1, %v5524_v10 }
 0x185   :  { %v1148_v8 = vpop.f32.mrf.mxu2 }
 0x186   :  { %v5676_v31 = vmax.f32 %v1781_v59, %v1148_v8 }
 0x187   :  { %v5678_v16 = vpop.f32.mrf.mxu3  ;;  %v1198_v21 = vpop.f32.mrf.mxu0 }
 0x188   :  { %8206 = vst [vmem:[#allocation20_spill] sm:$0xff] %v5676_v31  ;;  %v5682_v41 = vpop.f32.mrf.mxu1 }
 0x189   :  { %8207 = vst [vmem:[#allocation21_spill] sm:$0xff] %v5678_v16 }
 0x18a   :  { %8208 = vst [vmem:[#allocation22_spill] sm:$0xff] %v5682_v41 }
 0x18d   :  { %v1150_v52 = vpop.f32.mrf.mxu2 }
 0x18e   :  { %v5686_v62 = vmax.f32 %v1817_v28, %v1150_v52  ;;  %v127_v28 = vld [vmem:[%s8007_s0 + $0x2b0] sm:$0x33] }
 0x18f   :  { %v5688_v12 = vpop.f32.mrf.mxu3  ;;  %v1201_v8 = vpop.f32.mrf.mxu0  ;;  %v413_v52 = vunpack.c.l.b16 %v127_v28 }
 0x190   :  { %8209 = vst [vmem:[#allocation23_spill] sm:$0xff] %v5686_v62  ;;  %v1783_v49 = vmax.f32 %v1196_v38, %v1201_v8  ;;  %v5692_v39 = vpop.f32.mrf.mxu1 }
 0x191   :  { %8210 = vst [vmem:[#allocation24_spill] sm:$0xff] %v5688_v12  ;;  %v521_v8 = vpack.c.b16 %v413_v52, %v413_v52  ;;  %v4549_v52 = vld [vmem:[%s8007_s0 + $0x21c] sm:$0xf0] }
 0x192   :  { %4257 = vmatmul.msk.bf16.gmra.mxu2 %vm601_vm1, %v5524_v10  ;;  %4263 = vmatmul.msk.bf16.gmra.mxu0 %vm601_vm1, %v5582_v32  ;;  %v4137_v41 = vor.u32 %v4549_v52, %v4136_v42  ;;  %v128_v52 = vld [vmem:[%s8007_s0 + $0x2b8] sm:$0x33] }
 0x193   :  { %4266 = vmatmul.msk.bf16.vlgmr.msra.gmra.mxu1 %vm601_vm1, %v5536_v6  ;;  %v700_v12 = vsel %vm614_vm0, %v521_v8, 0  ;;  %v3992_v8 = vld [vmem:[%s8007_s0 + $0x70] sm:$0xf] }
 0x194   :  { %4274 = vmatmul.msk.bf16.vlgmr.msra.gmra.mxu3 %vm601_vm1, %v5536_v6  ;;  %1540 = vmatpush.bf16.msrb.mxu0 %v700_v12  ;;  %v4513_v12 = vld [vmem:[%s8007_s0 + $0xfc] sm:$0xf0] }
 0x195   :  { %v5705_v38 = vpop.f32.mrf.mxu2 }
 0x196   :  { %8211 = vst [vmem:[#allocation25_spill] sm:$0xff] %v5705_v38  ;;  %v3993_v38 = vor.u32 %v4513_v12, %v3992_v8 }
 0x197   :  { %v5709_v57 = vpop.f32.mrf.mxu3  ;;  %v1203_v44 = vpop.f32.mrf.mxu0 }
 0x198   :  { %v1819_v55 = vmax.f32 %v1198_v21, %v1203_v44  ;;  %v5712_v16 = vpop.f32.mrf.mxu1  ;;  %1541 = vmatpush.bf16.msrb.mxu0 %v4137_v41 }
 0x19c   :  { %1542 = vmatpush.bf16.msrb.mxu0 %v3993_v38 }
 0x19d   :  { %v5720_v59 = vpop.f32.mrf.mxu2 }
 0x19e   :  { %8212 = vst [vmem:[#allocation26_spill] sm:$0xff] %v5720_v59 }
 0x19f   :  { %v5730_v44 = vpop.f32.mrf.mxu3  ;;  %v1206_v31 = vpop.f32.mrf.mxu0 }
 0x1a0   :  { %v5732_v9 = vmax.f32 %v1783_v49, %v1206_v31  ;;  %v1230_v42 = vpop.f32.mrf.mxu1  ;;  %v414_v49 = vunpack.c.h.b16 %v127_v28  ;;  %v416_v31 = vunpack.c.h.b16 %v128_v52 }
 0x1a1   :  { %v1784_v41 = vmax.f32 %v5692_v39, %v1230_v42 }
 0x1a2   :  { %8213 = vst [vmem:[#allocation27_spill] sm:$0xff] %v5732_v9  ;;  %4264 = vmatmul.msk.bf16.gmra.mxu0 %vm601_vm1, %v5634_v43  ;;  %4270 = vmatmul.msk.bf16.vlgmr.msrb.gmra.mxu2 %vm601_vm1, %v5536_v6  ;;  %v522_v39 = vpack.c.b16 %v414_v49, %v414_v49  ;;  %v524_v8 = vpack.c.b16 %v416_v31, %v416_v31  ;;  %v4531_v49 = vld [vmem:[%s8007_s0 + $0x194] sm:$0xf]  ;;  %v4532_v31 = vld [vmem:[%s8007_s0 + $0x19c] sm:$0xf] }
 0x1a3   :  { %4267 = vmatmul.msk.bf16.gmra.mxu1 %vm601_vm1, %v5582_v32 }
 0x1a4   :  { %4275 = vmatmul.msk.bf16.gmra.mxu3 %vm601_vm1, %v5582_v32  ;;  %v703_v59 = vsel %vm614_vm0, %v522_v39, 0  ;;  %v709_v62 = vsel %vm614_vm0, %v524_v8, 0 }
 0x1a5   :  { %v5746_v38 = vpop.f32.mrf.mxu2  ;;  %1569 = vmatpush.bf16.msrb.mxu1 %v703_v59  ;;  %1627 = vmatpush.bf16.msrb.mxu3 %v709_v62  ;;  %v3994_v59 = vld [vmem:[%s8007_s0 + $0x100] sm:$0xf0] }
 0x1a7   :  { %v1288_v12 = vpop.f32.mrf.mxu3  ;;  %v1208_v21 = vpop.f32.mrf.mxu0 }
 0x1a8   :  { %v1786_v42 = vmax.f32 %v5709_v57, %v1288_v12  ;;  %v5751_v19 = vmax.f32 %v1819_v55, %v1208_v21  ;;  %v1232_v29 = vpop.f32.mrf.mxu1  ;;  %v4138_v57 = vld [vmem:[%s8007_s0 + $0x220] sm:$0xf0]  ;;  %v4146_v55 = vld [vmem:[%s8007_s0 + $0x228] sm:$0xf0]  ;;  %v4496_v21 = vld [vmem:[%s8007_s0 + $0x7c] sm:$0xf] }
 0x1a9   :  { %v1820_v28 = vmax.f32 %v5712_v16, %v1232_v29  ;;  %v4141_v39 = vor.u32 %v4531_v49, %v4138_v57  ;;  %v4149_v62 = vor.u32 %v4532_v31, %v4146_v55  ;;  %v4495_v16 = vld [vmem:[%s8007_s0 + $0x74] sm:$0xf]  ;;  %v4002_v49 = vld [vmem:[%s8007_s0 + $0x108] sm:$0xf0] }
 0x1aa   :  { %8214 = vst [vmem:[#allocation28_spill] sm:$0xff] %v5751_v19  ;;  %v3997_v12 = vor.u32 %v4495_v16, %v3994_v59 }
 0x1ab   :  { %1570 = vmatpush.bf16.msrb.mxu1 %v4141_v39  ;;  %1628 = vmatpush.bf16.msrb.mxu3 %v4149_v62  ;;  %v4005_v39 = vor.u32 %v4496_v21, %v4002_v49 }
 0x1ad   :  { %v1256_v29 = vpop.f32.mrf.mxu2 }
 0x1af   :  { %v1290_v8 = vpop.f32.mrf.mxu3  ;;  %v5779_v31 = vpop.f32.mrf.mxu0  ;;  %1571 = vmatpush.bf16.msrb.mxu1 %v3997_v12  ;;  %1629 = vmatpush.bf16.msrb.mxu3 %v4005_v39 }
 0x1b0   :  { %v1822_v57 = vmax.f32 %v5730_v44, %v1290_v8  ;;  %8215 = vst [vmem:[#allocation29_spill] sm:$0xff] %v5779_v31  ;;  %v1235_v62 = vpop.f32.mrf.mxu1  ;;  %v415_v44 = vunpack.c.l.b16 %v128_v52  ;;  %v4144_v52 = vld [vmem:[%s8007_s0 + $0x198] sm:$0xf] }
 0x1b1   :  { %v5783_v47 = vmax.f32 %v1784_v41, %v1235_v62 }
 0x1b2   :  { %4265 = vmatmul.msk.bf16.gmra.mxu0 %vm601_vm1, %v5524_v10  ;;  %4271 = vmatmul.msk.bf16.gmra.mxu2 %vm601_vm1, %v5582_v32  ;;  %v523_v59 = vpack.c.b16 %v415_v44, %v415_v44 }
 0x1b3   :  { %8216 = vst [vmem:[#allocation30_spill] sm:$0xff] %v5783_v47  ;;  %4268 = vmatmul.msk.bf16.gmra.mxu1 %vm601_vm1, %v5634_v43 }
 0x1b4   :  { %4276 = vmatmul.msk.bf16.gmra.mxu3 %vm601_vm1, %v5634_v43  ;;  %v706_v49 = vsel %vm614_vm0, %v523_v59, 0 }
 0x1b5   :  { %v1259_v16 = vpop.f32.mrf.mxu2  ;;  %1598 = vmatpush.bf16.msra.mxu2 %v706_v49 }
 0x1b6   :  { %v1785_v21 = vmax.f32 %v5746_v38, %v1259_v16  ;;  %v4550_v38 = vld [vmem:[%s8007_s0 + $0x224] sm:$0xf0]  ;;  %v4000_v16 = vld [vmem:[%s8007_s0 + $0x78] sm:$0xf] }
 0x1b7   :  { %v1293_v41 = vpop.f32.mrf.mxu3  ;;  %v5796_v12 = vpop.f32.mrf.mxu0 }
 0x1b8   :  { %v5794_v8 = vmax.f32 %v1786_v42, %v1293_v41  ;;  %8218 = vst [vmem:[#allocation32_spill] sm:$0xff] %v5796_v12  ;;  %v1237_v62 = vpop.f32.mrf.mxu1  ;;  %v4145_v42 = vor.u32 %v4550_v38, %v4144_v52 }
 0x1b9   :  { %v5801_v55 = vmax.f32 %v1820_v28, %v1237_v62  ;;  %v4514_v28 = vld [vmem:[%s8007_s0 + $0x104] sm:$0xf0] }
 0x1ba   :  { %8217 = vst [vmem:[#allocation31_spill] sm:$0xff] %v5794_v8  ;;  %1599 = vmatpush.bf16.msra.mxu2 %v4145_v42  ;;  %v4001_v49 = vor.u32 %v4514_v28, %v4000_v16  ;;  %v4152_v8 = vld [vmem:[%s8007_s0 + $0x1a0] sm:$0xf] }
 0x1bb   :  { %8219 = vst [vmem:[#allocation33_spill] sm:$0xff] %v5801_v55 }
 0x1bd   :  { %v1261_v44 = vpop.f32.mrf.mxu2 }
 0x1be   :  { %v1821_v59 = vmax.f32 %v1256_v29, %v1261_v44  ;;  %1600 = vmatpush.bf16.msra.mxu2 %v4001_v49 }
 0x1bf   :  { %v1295_v41 = vpop.f32.mrf.mxu3  ;;  %v1312_v39 = vpop.f32.mrf.mxu0 }
 0x1c0   :  { %v5815_v62 = vmax.f32 %v1822_v57, %v1295_v41  ;;  %v5817_v12 = vpop.f32.mrf.mxu1 }
 0x1c1   :  { %8221 = vst [vmem:[#allocation35_spill] sm:$0xff] %v5817_v12 }
 0x1c2   :  { %8220 = vst [vmem:[#allocation34_spill] sm:$0xff] %v5815_v62  ;;  %4272 = vmatmul.msk.bf16.gmra.mxu2 %vm601_vm1, %v5634_v43  ;;  %4278 = vmatmul.msk.bf16.vlgmr.msrb.gmra.mxu0 %vm601_vm1, %v5536_v6 }
 0x1c3   :  { %4269 = vmatmul.msk.bf16.gmra.mxu1 %vm601_vm1, %v5524_v10 }
 0x1c4   :  { %4277 = vmatmul.msk.bf16.gmra.mxu3 %vm601_vm1, %v5524_v10 }
 0x1c5   :  { %v1264_v29 = vpop.f32.mrf.mxu2 }
 0x1c6   :  { %v5829_v57 = vmax.f32 %v1785_v21, %v1264_v29 }
 0x1c7   :  { %v5831_v38 = vpop.f32.mrf.mxu3  ;;  %v1314_v44 = vpop.f32.mrf.mxu0 }
 0x1c8   :  { %8222 = vst [vmem:[#allocation36_spill] sm:$0xff] %v5829_v57  ;;  %v5835_v16 = vpop.f32.mrf.mxu1 }
 0x1c9   :  { %8223 = vst [vmem:[#allocation37_spill] sm:$0xff] %v5831_v38 }
 0x1ca   :  { %8224 = vst [vmem:[#allocation38_spill] sm:$0xff] %v5835_v16 }
 0x1cd   :  { %v1266_v41 = vpop.f32.mrf.mxu2 }
 0x1ce   :  { %v5839_v49 = vmax.f32 %v1821_v59, %v1266_v41  ;;  %v129_v59 = vld [vmem:[%s8007_s0 + $0x2c0] sm:$0x33] }
 0x1cf   :  { %v5841_v52 = vpop.f32.mrf.mxu3  ;;  %v1317_v29 = vpop.f32.mrf.mxu0  ;;  %v417_v41 = vunpack.c.l.b16 %v129_v59 }
 0x1d0   :  { %8225 = vst [vmem:[#allocation39_spill] sm:$0xff] %v5839_v49  ;;  %v1787_v12 = vmax.f32 %v1312_v39, %v1317_v29  ;;  %v5845_v47 = vpop.f32.mrf.mxu1 }
 0x1d1   :  { %8226 = vst [vmem:[#allocation40_spill] sm:$0xff] %v5841_v52  ;;  %v525_v29 = vpack.c.b16 %v417_v41, %v417_v41  ;;  %v4551_v41 = vld [vmem:[%s8007_s0 + $0x22c] sm:$0xf0] }
 0x1d2   :  { %4273 = vmatmul.msk.bf16.gmra.mxu2 %vm601_vm1, %v5524_v10  ;;  %4279 = vmatmul.msk.bf16.gmra.mxu0 %vm601_vm1, %v5582_v32  ;;  %v4153_v16 = vor.u32 %v4551_v41, %v4152_v8  ;;  %v130_v41 = vld [vmem:[%s8007_s0 + $0x2c8] sm:$0x33] }
 0x1d3   :  { %4282 = vmatmul.msk.bf16.vlgmr.msrb.gmra.mxu1 %vm601_vm1, %v5536_v6  ;;  %v712_v52 = vsel %vm614_vm0, %v525_v29, 0  ;;  %v4008_v29 = vld [vmem:[%s8007_s0 + $0x80] sm:$0xf] }
 0x1d4   :  { %4290 = vmatmul.msk.bf16.vlgmr.msrb.gmra.mxu3 %vm601_vm1, %v5536_v6  ;;  %1656 = vmatpush.bf16.msra.mxu0 %v712_v52  ;;  %v4515_v52 = vld [vmem:[%s8007_s0 + $0x10c] sm:$0xf0] }
 0x1d5   :  { %v5858_v39 = vpop.f32.mrf.mxu2 }
 0x1d6   :  { %8227 = vst [vmem:[#allocation41_spill] sm:$0xff] %v5858_v39  ;;  %v4009_v39 = vor.u32 %v4515_v52, %v4008_v29 }
 0x1d7   :  { %v5862_v42 = vpop.f32.mrf.mxu3  ;;  %v1319_v28 = vpop.f32.mrf.mxu0 }
 0x1d8   :  { %v1823_v62 = vmax.f32 %v1314_v44, %v1319_v28  ;;  %v5865_v38 = vpop.f32.mrf.mxu1  ;;  %1657 = vmatpush.bf16.msra.mxu0 %v4153_v16 }
 0x1dc   :  { %1658 = vmatpush.bf16.msra.mxu0 %v4009_v39 }
 0x1dd   :  { %v5873_v21 = vpop.f32.mrf.mxu2 }
 0x1de   :  { %8228 = vst [vmem:[#allocation42_spill] sm:$0xff] %v5873_v21 }
 0x1df   :  { %v5883_v28 = vpop.f32.mrf.mxu3  ;;  %v1322_v57 = vpop.f32.mrf.mxu0 }
 0x1e0   :  { %v5885_v55 = vmax.f32 %v1787_v12, %v1322_v57  ;;  %v1346_v8 = vpop.f32.mrf.mxu1  ;;  %v418_v12 = vunpack.c.h.b16 %v129_v59  ;;  %v420_v57 = vunpack.c.h.b16 %v130_v41 }
 0x1e1   :  { %v1788_v16 = vmax.f32 %v5845_v47, %v1346_v8 }
 0x1e2   :  { %4280 = vmatmul.msk.bf16.gmra.mxu0 %vm601_vm1, %v5634_v43  ;;  %4286 = vmatmul.msk.bf16.vlgmr.msra.gmra.mxu2 %vm601_vm1, %v5536_v6  ;;  %v526_v47 = vpack.c.b16 %v418_v12, %v418_v12  ;;  %v528_v29 = vpack.c.b16 %v420_v57, %v420_v57  ;;  %v4533_v12 = vld [vmem:[%s8007_s0 + $0x1a4] sm:$0xf]  ;;  %v4534_v57 = vld [vmem:[%s8007_s0 + $0x1ac] sm:$0xf] }
 0x1e3   :  { %4283 = vmatmul.msk.bf16.gmra.mxu1 %vm601_vm1, %v5582_v32 }
 0x1e4   :  { %4291 = vmatmul.msk.bf16.gmra.mxu3 %vm601_vm1, %v5582_v32  ;;  %v715_v21 = vsel %vm614_vm0, %v526_v47, 0  ;;  %v721_v49 = vsel %vm614_vm0, %v528_v29, 0 }
 0x1e5   :  { %v5899_v39 = vpop.f32.mrf.mxu2  ;;  %1685 = vmatpush.bf16.msra.mxu1 %v715_v21  ;;  %1743 = vmatpush.bf16.msra.mxu3 %v721_v49  ;;  %v4010_v21 = vld [vmem:[%s8007_s0 + $0x110] sm:$0xf0] }
 0x1e7   :  { %v1404_v52 = vpop.f32.mrf.mxu3  ;;  %v1324_v44 = vpop.f32.mrf.mxu0 }
 0x1e8   :  { %v1790_v8 = vmax.f32 %v5862_v42, %v1404_v52  ;;  %v5904_v19 = vmax.f32 %v1823_v62, %v1324_v44  ;;  %v1348_v31 = vpop.f32.mrf.mxu1  ;;  %v4154_v42 = vld [vmem:[%s8007_s0 + $0x230] sm:$0xf0]  ;;  %v4162_v62 = vld [vmem:[%s8007_s0 + $0x238] sm:$0xf0]  ;;  %v4498_v44 = vld [vmem:[%s8007_s0 + $0x8c] sm:$0xf] }
 0x1e9   :  { %v1824_v59 = vmax.f32 %v5865_v38, %v1348_v31  ;;  %v4157_v47 = vor.u32 %v4533_v12, %v4154_v42  ;;  %v4165_v49 = vor.u32 %v4534_v57, %v4162_v62  ;;  %v4497_v38 = vld [vmem:[%s8007_s0 + $0x84] sm:$0xf]  ;;  %v4018_v12 = vld [vmem:[%s8007_s0 + $0x118] sm:$0xf0] }
 0x1ea   :  { %v4013_v52 = vor.u32 %v4497_v38, %v4010_v21 }
 0x1eb   :  { %1686 = vmatpush.bf16.msra.mxu1 %v4157_v47  ;;  %1744 = vmatpush.bf16.msra.mxu3 %v4165_v49  ;;  %v4021_v47 = vor.u32 %v4498_v44, %v4018_v12 }
 0x1ed   :  { %v1372_v31 = vpop.f32.mrf.mxu2 }
 0x1ef   :  { %v1406_v29 = vpop.f32.mrf.mxu3  ;;  %v5932_v57 = vpop.f32.mrf.mxu0  ;;  %1687 = vmatpush.bf16.msra.mxu1 %v4013_v52  ;;  %1745 = vmatpush.bf16.msra.mxu3 %v4021_v47 }
 0x1f0   :  { %v1826_v42 = vmax.f32 %v5883_v28, %v1406_v29  ;;  %v1351_v49 = vpop.f32.mrf.mxu1  ;;  %v419_v28 = vunpack.c.l.b16 %v130_v41  ;;  %v4160_v41 = vld [vmem:[%s8007_s0 + $0x1a8] sm:$0xf] }
 0x1f1   :  { %v5936_v9 = vmax.f32 %v1788_v16, %v1351_v49 }
 0x1f2   :  { %4281 = vmatmul.msk.bf16.gmra.mxu0 %vm601_vm1, %v5524_v10  ;;  %4287 = vmatmul.msk.bf16.gmra.mxu2 %vm601_vm1, %v5582_v32  ;;  %v527_v21 = vpack.c.b16 %v419_v28, %v419_v28 }
 0x1f3   :  { %8229 = vst [vmem:[#allocation43_spill] sm:$0xff] %v5936_v9  ;;  %4284 = vmatmul.msk.bf16.gmra.mxu1 %vm601_vm1, %v5634_v43 }
 0x1f4   :  { %4292 = vmatmul.msk.bf16.gmra.mxu3 %vm601_vm1, %v5634_v43  ;;  %v718_v12 = vsel %vm614_vm0, %v527_v21, 0 }
 0x1f5   :  { %v1375_v38 = vpop.f32.mrf.mxu2  ;;  %1714 = vmatpush.bf16.msrb.mxu2 %v718_v12 }
 0x1f6   :  { %v1789_v44 = vmax.f32 %v5899_v39, %v1375_v38  ;;  %v4552_v39 = vld [vmem:[%s8007_s0 + $0x234] sm:$0xf0]  ;;  %v4016_v38 = vld [vmem:[%s8007_s0 + $0x88] sm:$0xf] }
 0x1f7   :  { %v1409_v16 = vpop.f32.mrf.mxu3  ;;  %v5949_v52 = vpop.f32.mrf.mxu0 }
 0x1f8   :  { %v5947_v29 = vmax.f32 %v1790_v8, %v1409_v16  ;;  %8231 = vst [vmem:[#allocation45_spill] sm:$0xff] %v5949_v52  ;;  %v1353_v49 = vpop.f32.mrf.mxu1  ;;  %v4161_v8 = vor.u32 %v4552_v39, %v4160_v41 }
 0x1f9   :  { %v5954_v62 = vmax.f32 %v1824_v59, %v1353_v49  ;;  %v4516_v59 = vld [vmem:[%s8007_s0 + $0x114] sm:$0xf0]  ;;  %s4744_s0 = smov 72  }
 0x1fa   :  { %8230 = vst [vmem:[#allocation44_spill] sm:$0xff] %v5947_v29  ;;  %1715 = vmatpush.bf16.msrb.mxu2 %v4161_v8  ;;  %v4017_v12 = vor.u32 %v4516_v59, %v4016_v38 }
 0x1fd   :  { %v1377_v28 = vpop.f32.mrf.mxu2 }
 0x1fe   :  { %v1825_v21 = vmax.f32 %v1372_v31, %v1377_v28  ;;  %1716 = vmatpush.bf16.msrb.mxu2 %v4017_v12 }
 0x1ff   :  { %v1411_v16 = vpop.f32.mrf.mxu3  ;;  %v1428_v47 = vpop.f32.mrf.mxu0 }
 0x200   :  { %v5968_v49 = vmax.f32 %v1826_v42, %v1411_v16  ;;  %v5970_v52 = vpop.f32.mrf.mxu1 }
 0x201   :  { %8233 = vst [vmem:[#allocation47_spill] sm:$0xff] %v5970_v52 }
 0x202   :  { %8232 = vst [vmem:[#allocation46_spill] sm:$0xff] %v5968_v49  ;;  %4288 = vmatmul.msk.bf16.gmra.mxu2 %vm601_vm1, %v5634_v43  ;;  %4294 = vmatmul.msk.bf16.vlgmr.msra.gmra.mxu0 %vm601_vm1, %v5536_v6 }
 0x203   :  { %4285 = vmatmul.msk.bf16.gmra.mxu1 %vm601_vm1, %v5524_v10 }
 0x204   :  { %4293 = vmatmul.msk.bf16.gmra.mxu3 %vm601_vm1, %v5524_v10 }
 0x205   :  { %v1380_v31 = vpop.f32.mrf.mxu2 }
 0x206   :  { %v5982_v42 = vmax.f32 %v1789_v44, %v1380_v31 }
 0x207   :  { %v5984_v39 = vpop.f32.mrf.mxu3  ;;  %v5988_v28 = vpop.f32.mrf.mxu0 }
 0x208   :  { %8234 = vst [vmem:[#allocation48_spill] sm:$0xff] %v5984_v39  ;;  %v5990_v38 = vpop.f32.mrf.mxu1 }
 0x209   :  { %8235 = vst [vmem:[#allocation49_spill] sm:$0xff] %v5988_v28 }
 0x20d   :  { %v1382_v16 = vpop.f32.mrf.mxu2 }
 0x20e   :  { %v5994_v12 = vmax.f32 %v1825_v21, %v1382_v16 }
 0x20f   :  { %v5996_v41 = vpop.f32.mrf.mxu3  ;;  %v1433_v31 = vpop.f32.mrf.mxu0 }
 0x210   :  { %8236 = vst [vmem:[#allocation50_spill] sm:$0xff] %v5994_v12  ;;  %v1791_v52 = vmax.f32 %v1428_v47, %v1433_v31  ;;  %v1457_v9 = vpop.f32.mrf.mxu1 }
 0x211   :  { %8237 = vst [vmem:[#allocation51_spill] sm:$0xff] %v5996_v41 }
 0x212   :  { %4289 = vmatmul.msk.bf16.gmra.mxu2 %vm601_vm1, %v5524_v10  ;;  %4295 = vmatmul.msk.bf16.gmra.mxu0 %vm601_vm1, %v5582_v32 }
 0x213   :  { %4298 = vmatmul.msk.bf16.vlgmr.msra.gmra.mxu1 %vm601_vm1, %v5536_v6 }
 0x214   :  { %4306 = vmatmul.msk.bf16.vlgmr.msra.gmra.mxu3 %vm601_vm1, %v5536_v6 }
 0x215   :  { %v6008_v21 = vpop.f32.mrf.mxu2 }
 0x217   :  { %v1515_v44 = vpop.f32.mrf.mxu3  ;;  %v6012_v47 = vpop.f32.mrf.mxu0 }
 0x218   :  { %v6014_v31 = vpop.f32.mrf.mxu1 }
 0x219   :  { %8238 = vst [vmem:[#allocation52_spill] sm:$0xff] %v6014_v31 }
 0x21d   :  { %v6016_v8 = vpop.f32.mrf.mxu2 }
 0x21e   :  { %8239 = vst [vmem:[#allocation53_spill] sm:$0xff] %v6016_v8 }
 0x21f   :  { %v6020_v41 = vpop.f32.mrf.mxu3  ;;  %v1438_v49 = vpop.f32.mrf.mxu0 }
 0x220   :  { %8240 = vst [vmem:[#allocation54_spill] sm:$0xff] %v6020_v41  ;;  %v6022_v28 = vmax.f32 %v1791_v52, %v1438_v49  ;;  %v1462_v39 = vpop.f32.mrf.mxu1 }
 0x221   :  { %v1792_v29 = vmax.f32 %v1457_v9, %v1462_v39 }
 0x222   :  { %8241 = vst [vmem:[#allocation55_spill] sm:$0xff] %v6022_v28  ;;  %4296 = vmatmul.msk.bf16.gmra.mxu0 %vm601_vm1, %v5634_v43  ;;  %4302 = vmatmul.msk.bf16.vlgmr.msrb.gmra.mxu2 %vm601_vm1, %v5536_v6 }
 0x223   :  { %4299 = vmatmul.msk.bf16.gmra.mxu1 %vm601_vm1, %v5582_v32 }
 0x224   :  { %4307 = vmatmul.msk.bf16.gmra.mxu3 %vm601_vm1, %v5582_v32 }
 0x225   :  { %v1486_v59 = vpop.f32.mrf.mxu2 }
 0x227   :  { %v1520_v16 = vpop.f32.mrf.mxu3  ;;  %v6032_v31 = vpop.f32.mrf.mxu0 }
 0x228   :  { %v1794_v41 = vmax.f32 %v1515_v44, %v1520_v16  ;;  %v6034_v52 = vpop.f32.mrf.mxu1 }
 0x229   :  { %8242 = vst [vmem:[#allocation56_spill] sm:$0xff] %v6034_v52 }
 0x22d   :  { %v6036_v9 = vpop.f32.mrf.mxu2 }
 0x22e   :  { %8243 = vst [vmem:[#allocation57_spill] sm:$0xff] %v6036_v9 }
 0x22f   :  { %v6038_v49 = vpop.f32.mrf.mxu3  ;;  %v6040_v39 = vpop.f32.mrf.mxu0 }
 0x230   :  { %8244 = vst [vmem:[#allocation58_spill] sm:$0xff] %v6038_v49  ;;  %v1467_v8 = vpop.f32.mrf.mxu1 }
 0x231   :  { %8245 = vst [vmem:[#allocation59_spill] sm:$0xff] %v6040_v39  ;;  %v6044_v12 = vmax.f32 %v1792_v29, %v1467_v8 }
 0x232   :  { %4297 = vmatmul.msk.bf16.gmra.mxu0 %vm601_vm1, %v5524_v10  ;;  %4303 = vmatmul.msk.bf16.gmra.mxu2 %vm601_vm1, %v5582_v32 }
 0x233   :  { %8246 = vst [vmem:[#allocation60_spill] sm:$0xff] %v6044_v12  ;;  %4300 = vmatmul.msk.bf16.gmra.mxu1 %vm601_vm1, %v5634_v43 }
 0x234   :  { %4308 = vmatmul.msk.bf16.gmra.mxu3 %vm601_vm1, %v5634_v43 }
 0x235   :  { %v1491_v44 = vpop.f32.mrf.mxu2 }
 0x236   :  { %v1793_v16 = vmax.f32 %v1486_v59, %v1491_v44 }
 0x237   :  { %v1525_v49 = vpop.f32.mrf.mxu3  ;;  %v6056_v6 = vpop.f32.mrf.mxu0 }
 0x238   :  { %v6054_v9 = vmax.f32 %v1794_v41, %v1525_v49  ;;  %8248 = vst [vmem:[#allocation62_spill] sm:$0xff] %v6056_v6  ;;  %v6058_v29 = vpop.f32.mrf.mxu1 }
 0x239   :  { %8249 = vst [vmem:[#allocation63_spill] sm:$0xff] %v6058_v29 }
 0x23a   :  { %8247 = vst [vmem:[#allocation61_spill] sm:$0xff] %v6054_v9 }
 0x23d   :  { %v6060_v8 = vpop.f32.mrf.mxu2 }
 0x23e   :  { %8250 = vst [vmem:[#allocation64_spill] sm:$0xff] %v6060_v8 }
 0x23f   :  { %v6062_v39 = vpop.f32.mrf.mxu3  ;;  %v1544_v32 = vpop.f32.mrf.mxu0 }
 0x240   :  { %8251 = vst [vmem:[#allocation65_spill] sm:$0xff] %v6062_v39  ;;  %v6064_v28 = vpop.f32.mrf.mxu1 }
 0x241   :  { %8252 = vst [vmem:[#allocation66_spill] sm:$0xff] %v6064_v28  ;;  %v6084_v28 = vpop.permute.xlu0 %1987 }
 0x242   :  { %4304 = vmatmul.msk.bf16.gmra.mxu2 %vm601_vm1, %v5634_v43 }
 0x243   :  { %4301 = vmatmul.msk.bf16.gmra.mxu1 %vm601_vm1, %v5524_v10 }
 0x244   :  { %4309 = vmatmul.msk.bf16.gmra.mxu3 %vm601_vm1, %v5524_v10 }
 0x245   :  { %v1496_v41 = vpop.f32.mrf.mxu2 }
 0x246   :  { %v6074_v59 = vmax.f32 %v1793_v16, %v1496_v41  ;;  %v8259_v41 = vmax.f32 %v5149_v56, %v5185_v20  ;;  %v6117_v56 = vld [vmem:[%s8010_s1] sm:$0xff] }
 0x247   :  { %v6076_v49 = vpop.f32.mrf.mxu3  ;;  %v6080_v39 = vpop.f32.mrf.mxu0 }
 0x248   :  { %8253 = vst [vmem:[#allocation67_spill] sm:$0xff] %v6074_v59  ;;  %v6082_v52 = vpop.f32.mrf.mxu1  ;;  %v1996_v44 = vadd.f32 %v6084_v28, %v8259_v41  ;;  %v2150_v41 = vperm.slane %v6117_v56, 1  ;;  %v8268_v59 = vmax.f32 %v5207_v30, %v5241_v53  ;;  %v8274_v30 = vmax.f32 %v5162_v63, %v5199_v24 }
 0x249   :  { %8254 = vst [vmem:[#allocation68_spill] sm:$0xff] %v6076_v49  ;;  %v6104_v9 = vpop.permute.xlu0 %1992 }
 0x24a   :  { %8255 = vst [vmem:[#allocation69_spill] sm:$0xff] %v6080_v39  ;;  %v6119_v20 = vmax.f32 %v1996_v44, 0.0  ;;  %v8264_v39 = vmax.f32 %v5165_v3, %v5092_v11  ;;  %v2149_v44 = vperm.slane %v6117_v56, 0  ;;  %v2033_v11 = vadd.f32 %v6104_v9, %v8268_v59 }
 0x24b   :  { %v1998_v53 = vadd.f32 %v6084_v28, %v8274_v30 }
 0x24c   :  { %8263 = vst [vmem:[#allocation75_spill] sm:$0xff] %v6119_v20  ;;  %v6158_v59 = vmax.f32 %v2033_v11, 0.0  ;;  %v2152_v11 = vperm.slane %v6117_v56, 3 }
 0x24d   :  { %v6086_v43 = vpop.f32.mrf.mxu2  ;;  %v6180_v30 = vmax.f32 %v1998_v53, 0.0 }
 0x24e   :  { %8256 = vst [vmem:[#allocation70_spill] sm:$0xff] %v6086_v43 }
 0x24f   :  { %v6088_v12 = vpop.f32.mrf.mxu3  ;;  %v1549_v8 = vpop.f32.mrf.mxu0  ;;  %8275 = vst [vmem:[#allocation82_spill] sm:$0xff] %v6158_v59 }
 0x250   :  { %8257 = vst [vmem:[#allocation71_spill] sm:$0xff] %v6088_v12  ;;  %v1795_v29 = vmax.f32 %v1544_v32, %v1549_v8  ;;  %v6090_v6 = vpop.f32.mrf.mxu1  ;;  %v8261_v32 = vmax.f32 %v5147_v54, %v5077_v1  ;;  %v8265_v1 = vmax.f32 %v5167_v5, %v5203_v27  ;;  %v2222_v5 = vmul.f32 %v2150_v41, %v6119_v20 }
 0x251   :  { %8279 = vst [vmem:[#allocation84_spill] sm:$0xff] %v6180_v30 }
 0x252   :  { %4305 = vmatmul.msk.bf16.gmra.mxu2 %vm601_vm1, %v5524_v10  ;;  %v1995_v10 = vadd.f32 %v6084_v28, %v8261_v32  ;;  %v2032_v54 = vadd.f32 %v6104_v9, %v8265_v1  ;;  %v8266_v32 = vmax.f32 %v5197_v23, %v5226_v40  ;;  %v2370_v43 = vmul.f32 %v2222_v5, %v6119_v20 }
 0x253   :  { %v8282_v20 = vmax.f32 %v5304_v7, %v5338_v48  ;;  %v2224_v48 = vmul.f32 %v2152_v11, %v6180_v30  ;;  %v2154_v7 = vperm.slane %v6117_v56, 5 }
 0x255   :  { %v6094_v16 = vpop.f32.mrf.mxu2 }
 0x256   :  { %8258 = vst [vmem:[#allocation72_spill] sm:$0xff] %v6094_v16  ;;  %v6134_v16 = vmax.f32 %v1995_v10, 0.0  ;;  %v2151_v10 = vperm.slane %v6117_v56, 2 }
 0x257   :  { %v6102_v49 = vpop.f32.mrf.mxu3  ;;  %v6106_v8 = vpop.f32.mrf.mxu0 }
 0x258   :  { %8260 = vst [vmem:[#allocation73_spill] sm:$0xff] %v6106_v8  ;;  %v6112_v12 = vpop.f32.mrf.mxu1  ;;  %v2031_v8 = vadd.f32 %v6104_v9, %v8264_v39  ;;  %v6146_v39 = vmax.f32 %v2032_v54, 0.0 }
 0x259   :  { %8262 = vst [vmem:[#allocation74_spill] sm:$0xff] %v6112_v12  ;;  %v1997_v12 = vadd.f32 %v6084_v28, %v8266_v32  ;;  %v2221_v32 = vmul.f32 %v2149_v44, %v6134_v16 }
 0x25a   :  { %8267 = vst [vmem:[#allocation76_spill] sm:$0xff] %v6134_v16  ;;  %v6144_v27 = vmax.f32 %v2031_v8, 0.0  ;;  %v2258_v24 = vmul.f32 %v2150_v41, %v6146_v39 }
 0x25b   :  { %8271 = vst [vmem:[#allocation79_spill] sm:$0xff] %v6146_v39  ;;  %v6150_v40 = vmax.f32 %v1997_v12, 0.0  ;;  %v8277_v12 = vmax.f32 %v5183_v18, %v5209_v33  ;;  %v2369_v33 = vmul.f32 %v2221_v32, %v6134_v16 }
 0x25c   :  { %8270 = vst [vmem:[#allocation78_spill] sm:$0xff] %v6144_v27  ;;  %v2257_v63 = vmul.f32 %v2149_v44, %v6144_v27  ;;  %v8280_v44 = vmax.f32 %v5272_v26, %v5317_v17 }
 0x25d   :  { %v6141_v3 = vpop.f32.mrf.mxu2  ;;  %8273 = vst [vmem:[#allocation81_spill] sm:$0xff] %v6150_v40  ;;  %v2441_v16 = vadd.f32 %v2370_v43, %v2369_v33 }
 0x25e   :  { %8269 = vst [vmem:[#allocation77_spill] sm:$0xff] %v6141_v3  ;;  %v2035_v41 = vadd.f32 %v6104_v9, %v8280_v44  ;;  %v2405_v53 = vmul.f32 %v2257_v63, %v6144_v27  ;;  %v2330_v44 = vadd.f32 %v2258_v24, %v2257_v63  ;;  %v8290_v63 = vmax.f32 %v5360_v13, %v5394_v46 }
 0x25f   :  { %v6148_v23 = vpop.f32.mrf.mxu3  ;;  %v1554_v1 = vpop.f32.mrf.mxu0 }
 0x260   :  { %8272 = vst [vmem:[#allocation80_spill] sm:$0xff] %v6148_v23  ;;  %v6160_v8 = vmax.f32 %v1795_v29, %v1554_v1  ;;  %v6162_v54 = vpop.f32.mrf.mxu1  ;;  %v2034_v23 = vadd.f32 %v6104_v9, %v8277_v12  ;;  %v2223_v29 = vmul.f32 %v2151_v10, %v6150_v40  ;;  %v8278_v1 = vmax.f32 %v5253_v0, %v5300_v58 }
 0x261   :  { %v2259_v12 = vmul.f32 %v2151_v10, %v6158_v59  ;;  %v2000_v0 = vadd.f32 %v6084_v28, %v8282_v20  ;;  %v2406_v10 = vmul.f32 %v2258_v24, %v6146_v39  ;;  %v6207_v43 = vmax.f32 %v2035_v41, 0.0 }
 0x262   :  { %8276 = vst [vmem:[#allocation83_spill] sm:$0xff] %v6160_v8  ;;  %v1999_v18 = vadd.f32 %v6084_v28, %v8278_v1  ;;  %v6187_v3 = vmax.f32 %v2034_v23, 0.0  ;;  %v2293_v1 = vadd.f32 %v2222_v5, %v2221_v32  ;;  %v2371_v26 = vmul.f32 %v2223_v29, %v6150_v40 }
 0x263   :  { %v2153_v23 = vperm.slane %v6117_v56, 4  ;;  %v2407_v20 = vmul.f32 %v2259_v12, %v6158_v59  ;;  %8284 = vst [vmem:[#allocation87_spill] sm:$0xff] %v6207_v43  ;;  %v8285_v5 = vmax.f32 %v5322_v36, %v5356_v2  ;;  %v6218_v39 = vmax.f32 %v2000_v0, 0.0 }
 0x264   :  { %8281 = vst [vmem:[#allocation85_spill] sm:$0xff] %v6187_v3  ;;  %v6200_v17 = vmax.f32 %v1999_v18, 0.0  ;;  %v2260_v27 = vmul.f32 %v2152_v11, %v6187_v3  ;;  %v2478_v40 = vadd.f32 %v2406_v10, %v2405_v53  ;;  %v2294_v59 = vadd.f32 %v2293_v1, %v2223_v29 }
 0x265   :  { %v6193_v58 = vpop.f32.mrf.mxu2  ;;  %v2036_v32 = vadd.f32 %v6104_v9, %v8285_v5  ;;  %8288 = vst [vmem:[#allocation90_spill] sm:$0xff] %v6218_v39  ;;  %v8289_v41 = vmax.f32 %v5350_v50, %v5379_v37  ;;  %v2442_v2 = vadd.f32 %v2441_v16, %v2371_v26  ;;  %v2331_v5 = vadd.f32 %v2330_v44, %v2259_v12 }
 0x266   :  { %8283 = vst [vmem:[#allocation86_spill] sm:$0xff] %v6200_v17  ;;  %v2037_v24 = vadd.f32 %v6104_v9, %v8290_v63  ;;  %v2479_v11 = vadd.f32 %v2478_v40, %v2407_v20  ;;  %v2261_v0 = vmul.f32 %v2153_v23, %v6207_v43  ;;  %v2372_v29 = vmul.f32 %v2224_v48, %v6180_v30 }
 0x267   :  { %v6197_v8 = vpop.f32.mrf.mxu3  ;;  %v6213_v33 = vpop.f32.mrf.mxu0  ;;  %v2001_v36 = vadd.f32 %v6084_v28, %v8289_v41  ;;  %v2408_v50 = vmul.f32 %v2260_v27, %v6187_v3  ;;  %v2226_v37 = vmul.f32 %v2154_v7, %v6218_v39  ;;  %v2295_v12 = vadd.f32 %v2294_v59, %v2224_v48  ;;  %v8332_v3 = vld [vmem:[#allocation14_spill] sm:$0xff] }
 0x268   :  { %8286 = vst [vmem:[#allocation88_spill] sm:$0xff] %v6213_v33  ;;  %v6215_v18 = vpop.f32.mrf.mxu1  ;;  %v2225_v33 = vmul.f32 %v2153_v23, %v6200_v17  ;;  %v8292_v1 = vmax.f32 %v5315_v15, %v5352_v51  ;;  %v2155_v40 = vperm.slane %v6117_v56, 6  ;;  %v2443_v26 = vadd.f32 %v2442_v2, %v2372_v29 }
 0x269   :  { %8287 = vst [vmem:[#allocation89_spill] sm:$0xff] %v6215_v18  ;;  %v6231_v18 = vmax.f32 %v2036_v32, 0.0  ;;  %v6242_v13 = vmax.f32 %v2001_v36, 0.0  ;;  %v2332_v23 = vadd.f32 %v2331_v5, %v2260_v27  ;;  %v6248_v20 = vmax.f32 %v2037_v24, 0.0 }
 0x26a   :  { %v2002_v46 = vadd.f32 %v6084_v28, %v8292_v1  ;;  %v2373_v10 = vmul.f32 %v2225_v33, %v6200_v17  ;;  %v2409_v32 = vmul.f32 %v2261_v0, %v6207_v43  ;;  %v2480_v59 = vadd.f32 %v2479_v11, %v2408_v50  ;;  %v8369_v17 = vld [vmem:[#allocation33_spill] sm:$0xff] }
 0x26b   :  { %8291 = vst [vmem:[#allocation91_spill] sm:$0xff] %v6231_v18  ;;  %v2156_v48 = vperm.slane %v6117_v56, 7  ;;  %v2262_v15 = vmul.f32 %v2154_v7, %v6231_v18  ;;  %v2374_v44 = vmul.f32 %v2226_v37, %v6218_v39  ;;  %v8295_v41 = vmax.f32 %v5336_v45, %v5362_v4  ;;  %v6273_v45 = vld [vmem:[%s8010_s1 + $0x8] sm:$0xff] }
 0x26c   :  { %8293 = vst [vmem:[#allocation92_spill] sm:$0xff] %v6242_v13  ;;  %v8296_v27 = vmax.f32 %v5406_v35, %v5453_v14  ;;  %v8297_v5 = vmax.f32 %v6090_v6, %v6162_v54  ;;  %v2296_v56 = vadd.f32 %v2295_v12, %v2225_v33  ;;  %v6267_v7 = vmax.f32 %v2002_v46, 0.0 }
 0x26d   :  { %v6236_v16 = vpop.f32.mrf.mxu2  ;;  %8294 = vst [vmem:[#allocation93_spill] sm:$0xff] %v6248_v20  ;;  %v2038_v36 = vadd.f32 %v6104_v9, %v8295_v41  ;;  %v2227_v24 = vmul.f32 %v2155_v40, %v6242_v13  ;;  %v8299_v4 = vmax.f32 %v5425_v22, %v5470_v61  ;;  %v2444_v6 = vadd.f32 %v2443_v26, %v2373_v10  ;;  %v8307_v41 = vld [vmem:[#allocation9_spill] sm:$0xff] }
 0x26e   :  { %v2003_v2 = vadd.f32 %v6084_v28, %v8296_v27  ;;  %8298 = vst [vmem:[#allocation94_spill] sm:$0xff] %v6267_v7  ;;  %v2333_v54 = vadd.f32 %v2332_v23, %v2261_v0  ;;  %v2263_v33 = vmul.f32 %v2155_v40, %v6248_v20  ;;  %v2481_v11 = vadd.f32 %v2480_v59, %v2409_v32  ;;  %v8304_v23 = vld [vmem:[#allocation6_spill] sm:$0xff] }
 0x26f   :  { %v6245_v53 = vpop.f32.mrf.mxu3  ;;  %v2039_v35 = vadd.f32 %v6104_v9, %v8299_v4  ;;  %v6279_v14 = vpop.f32.mrf.mxu0  ;;  %v2297_v29 = vadd.f32 %v2296_v56, %v2226_v37  ;;  %v2410_v50 = vmul.f32 %v2262_v15, %v6231_v18  ;;  %v8300_v12 = vmax.f32 %v5457_v34, %v5491_v25  ;;  %v8321_v25 = vld [vmem:[#allocation8_spill] sm:$0xff] }
 0x270   :  { %v1583_v51 = vpop.f32.mrf.mxu1  ;;  %v2445_v46 = vadd.f32 %v2444_v6, %v2374_v44  ;;  %v6289_v22 = vmax.f32 %v2003_v2, 0.0  ;;  %v2157_v61 = vperm.slane %v6273_v45, 0  ;;  %v2228_v0 = vmul.f32 %v2156_v48, %v6267_v7  ;;  %v8306_v44 = vld [vmem:[#allocation4_spill] sm:$0xff] }
 0x271   :  { %v6265_v63 = vmax.f32 %v8297_v5, %v1583_v51  ;;  %v2004_v1 = vadd.f32 %v6084_v28, %v8300_v12  ;;  %v6287_v51 = vmax.f32 %v2038_v36, 0.0  ;;  %v2375_v37 = vmul.f32 %v2227_v24, %v6242_v13 }
 0x272   :  { %8302 = vst [vmem:[#allocation96_spill] sm:$0xff] %v6289_v22  ;;  %v6296_v40 = vmax.f32 %v2039_v35, 0.0  ;;  %v2411_v26 = vmul.f32 %v2263_v33, %v6248_v20  ;;  %v8305_v32 = vmax.f32 %v5475_v60, %v8304_v23  ;;  %v8308_v36 = vmax.f32 %v8306_v44, %v8307_v41  ;;  %v8311_v44 = vld [vmem:[#allocation7_spill] sm:$0xff]  ;;  %v8312_v41 = vld [vmem:[#allocation10_spill] sm:$0xff] }
 0x273   :  { %8301 = vst [vmem:[#allocation95_spill] sm:$0xff] %v6287_v51  ;;  %v8309_v2 = vmax.f32 %v6102_v49, %v6197_v8  ;;  %v2334_v56 = vadd.f32 %v2333_v54, %v2262_v15  ;;  %v2482_v4 = vadd.f32 %v2481_v11, %v2410_v50  ;;  %v6314_v35 = vmax.f32 %v2004_v1, 0.0 }
 0x274   :  { %8303 = vst [vmem:[#allocation97_spill] sm:$0xff] %v6296_v40  ;;  %v2040_v59 = vadd.f32 %v6104_v9, %v8305_v32  ;;  %v2005_v27 = vadd.f32 %v6084_v28, %v8308_v36  ;;  %v2158_v6 = vperm.slane %v6273_v45, 1  ;;  %v2264_v60 = vmul.f32 %v2156_v48, %v6287_v51 }
 0x275   :  { %v6292_v10 = vpop.f32.mrf.mxu2  ;;  %8310 = vst [vmem:[#allocation6_spill] sm:$0xff] %v6314_v35  ;;  %v2298_v23 = vadd.f32 %v2297_v29, %v2227_v24  ;;  %v2229_v32 = vmul.f32 %v2157_v61, %v6289_v22  ;;  %v8313_v36 = vmax.f32 %v8311_v44, %v8312_v41  ;;  %v2446_v8 = vadd.f32 %v2445_v46, %v2375_v37  ;;  %v8316_v29 = vld [vmem:[#allocation2_spill] sm:$0xff] }
 0x276   :  { %v2265_v15 = vmul.f32 %v2157_v61, %v6296_v40  ;;  %v2483_v54 = vadd.f32 %v2482_v4, %v2411_v26  ;;  %v6326_v11 = vmax.f32 %v2040_v59, 0.0  ;;  %v6328_v50 = vmax.f32 %v2005_v27, 0.0 }
 0x277   :  { %v1641_v34 = vpop.f32.mrf.mxu3  ;;  %v2041_v49 = vadd.f32 %v6104_v9, %v8313_v36  ;;  %v2159_v1 = vperm.slane %v6273_v45, 2  ;;  %v2376_v48 = vmul.f32 %v2228_v0, %v6267_v7  ;;  %v2230_v24 = vmul.f32 %v2158_v6, %v6314_v35  ;;  %v6337_v46 = vpop.f32.mrf.mxu0  ;;  %v8320_v36 = vld [vmem:[#allocation3_spill] sm:$0xff] }
 0x278   :  { %v6312_v5 = vmax.f32 %v8309_v2, %v1641_v34  ;;  %v6317_v12 = vpop.f32.mrf.mxu1  ;;  %v2335_v34 = vadd.f32 %v2334_v56, %v2263_v33  ;;  %8314 = vst [vmem:[#allocation4_spill] sm:$0xff] %v6326_v11  ;;  %v8317_v2 = vld [vmem:[#allocation5_spill] sm:$0xff]  ;;  %v2412_v33 = vmul.f32 %v2264_v60, %v6287_v51  ;;  %v2299_v61 = vadd.f32 %v2298_v23, %v2228_v0 }
 0x279   :  { %8315 = vst [vmem:[#allocation9_spill] sm:$0xff] %v6328_v50  ;;  %v8318_v44 = vmax.f32 %v8316_v29, %v8317_v2  ;;  %v2377_v37 = vmul.f32 %v2229_v32, %v6289_v22  ;;  %v6341_v26 = vmax.f32 %v2041_v49, 0.0  ;;  %v2447_v27 = vadd.f32 %v2446_v8, %v2376_v48  ;;  %v8324_v49 = vld [vmem:[#allocation11_spill] sm:$0xff]  ;;  %v8325_v51 = vld [vmem:[#allocation13_spill] sm:$0xff]  ;;  %v8328_v48 = vld [vmem:[#allocation12_spill] sm:$0xff] }
 0x27a   :  { %v2336_v56 = vadd.f32 %v2335_v34, %v2264_v60  ;;  %v2413_v4 = vmul.f32 %v2265_v15, %v6296_v40  ;;  %v8322_v29 = vmax.f32 %v8320_v36, %v8321_v25  ;;  %v2484_v20 = vadd.f32 %v2483_v54, %v2412_v33  ;;  %v8329_v36 = vld [vmem:[#allocation16_spill] sm:$0xff] }
 0x27b   :  { %v2006_v41 = vadd.f32 %v6084_v28, %v8318_v44  ;;  %8319 = vst [vmem:[#allocation7_spill] sm:$0xff] %v6341_v26  ;;  %v2266_v0 = vmul.f32 %v2158_v6, %v6326_v11  ;;  %v2231_v23 = vmul.f32 %v2159_v1, %v6328_v50  ;;  %v8326_v18 = vmax.f32 %v8324_v49, %v8325_v51 }
 0x27c   :  { %v2042_v2 = vadd.f32 %v6104_v9, %v8322_v29  ;;  %v2378_v60 = vmul.f32 %v2230_v24, %v6314_v35  ;;  %v2160_v25 = vperm.slane %v6273_v45, 3  ;;  %v8330_v29 = vmax.f32 %v8328_v48, %v8329_v36 }
 0x27d   :  { %v6343_v59 = vpop.f32.mrf.mxu2  ;;  %v2007_v8 = vadd.f32 %v6084_v28, %v8326_v18  ;;  %v6359_v34 = vmax.f32 %v2006_v41, 0.0  ;;  %v2300_v6 = vadd.f32 %v2299_v61, %v2229_v32  ;;  %v2448_v40 = vadd.f32 %v2447_v27, %v2377_v37  ;;  %v8333_v41 = vld [vmem:[#allocation19_spill] sm:$0xff] }
 0x27e   :  { %v2043_v54 = vadd.f32 %v6104_v9, %v8330_v29  ;;  %v2267_v43 = vmul.f32 %v2159_v1, %v6341_v26  ;;  %v2337_v51 = vadd.f32 %v2336_v56, %v2265_v15  ;;  %v2485_v49 = vadd.f32 %v2484_v20, %v2413_v4  ;;  %v8338_v56 = vld [vmem:[#allocation22_spill] sm:$0xff]  ;;  %v8341_v29 = vld [vmem:[#allocation25_spill] sm:$0xff] }
 0x27f   :  { %v6350_v44 = vpop.f32.mrf.mxu3  ;;  %8327 = vst [vmem:[#allocation2_spill] sm:$0xff] %v6359_v34  ;;  %v6369_v18 = vmax.f32 %v2042_v2, 0.0  ;;  %v8334_v35 = vmax.f32 %v8332_v3, %v8333_v41  ;;  %v2414_v7 = vmul.f32 %v2266_v0, %v6326_v11  ;;  %v2379_v48 = vmul.f32 %v2231_v23, %v6328_v50  ;;  %v8337_v3 = vld [vmem:[#allocation17_spill] sm:$0xff]  ;;  %v8340_v2 = vld [vmem:[#allocation20_spill] sm:$0xff] }
 0x280   :  { %8323 = vst [vmem:[#allocation10_spill] sm:$0xff] %v6350_v44  ;;  %v6366_v33 = vpop.f32.mrf.mxu1  ;;  %v6377_v36 = vmax.f32 %v2007_v8, 0.0  ;;  %v2161_v32 = vperm.slane %v6273_v45, 4  ;;  %v2301_v61 = vadd.f32 %v2300_v6, %v2230_v24  ;;  %v2449_v37 = vadd.f32 %v2448_v40, %v2378_v60 }
 0x281   :  { %8331 = vst [vmem:[#allocation5_spill] sm:$0xff] %v6369_v18  ;;  %v2008_v22 = vadd.f32 %v6084_v28, %v8334_v35  ;;  %v2232_v15 = vmul.f32 %v2160_v25, %v6359_v34  ;;  %v6381_v20 = vmax.f32 %v2043_v54, 0.0  ;;  %v2338_v1 = vadd.f32 %v2337_v51, %v2266_v0  ;;  %v6396_v0 = vpop.f32.mrf.mxu0 }
 0x282   :  { %8335 = vst [vmem:[#allocation3_spill] sm:$0xff] %v6377_v36  ;;  %v2415_v27 = vmul.f32 %v2267_v43, %v6341_v26  ;;  %v8339_v35 = vmax.f32 %v8337_v3, %v8338_v56  ;;  %v8342_v8 = vmax.f32 %v8340_v2, %v8341_v29  ;;  %v2268_v40 = vmul.f32 %v2160_v25, %v6369_v18  ;;  %v8346_v26 = vld [vmem:[#allocation26_spill] sm:$0xff] }
 0x283   :  { %8336 = vst [vmem:[#allocation8_spill] sm:$0xff] %v6381_v20  ;;  %v6393_v24 = vmax.f32 %v2008_v22, 0.0  ;;  %v2162_v60 = vperm.slane %v6273_v45, 5  ;;  %v8344_v54 = vmax.f32 %v6193_v58, %v6292_v10  ;;  %v2486_v3 = vadd.f32 %v2485_v49, %v2414_v7 }
 0x284   :  { %v2044_v4 = vadd.f32 %v6104_v9, %v8339_v35  ;;  %v2009_v41 = vadd.f32 %v6084_v28, %v8342_v8  ;;  %v2302_v56 = vadd.f32 %v2301_v61, %v2231_v23  ;;  %v2450_v35 = vadd.f32 %v2449_v37, %v2379_v48  ;;  %v8345_v8 = vld [vmem:[#allocation23_spill] sm:$0xff]  ;;  %v8351_v37 = vld [vmem:[#allocation21_spill] sm:$0xff] }
 0x285   :  { %v1612_v11 = vpop.f32.mrf.mxu2  ;;  %8343 = vst [vmem:[#allocation11_spill] sm:$0xff] %v6393_v24  ;;  %v2233_v2 = vmul.f32 %v2161_v32, %v6377_v36  ;;  %v2380_v25 = vmul.f32 %v2232_v15, %v6359_v34  ;;  %v2339_v22 = vadd.f32 %v2338_v1, %v2267_v43  ;;  %v2269_v29 = vmul.f32 %v2161_v32, %v6381_v20 }
 0x286   :  { %v6401_v6 = vmax.f32 %v8344_v54, %v1612_v11  ;;  %v8347_v50 = vmax.f32 %v8345_v8, %v8346_v26  ;;  %v2487_v10 = vadd.f32 %v2486_v3, %v2415_v27  ;;  %v6414_v11 = vmax.f32 %v2044_v4, 0.0  ;;  %v8350_v26 = vld [vmem:[#allocation15_spill] sm:$0xff]  ;;  %v8354_v54 = vld [vmem:[#allocation24_spill] sm:$0xff] }
 0x287   :  { %v6403_v51 = vpop.f32.mrf.mxu3  ;;  %v6416_v7 = vmax.f32 %v2009_v41, 0.0  ;;  %v2163_v23 = vperm.slane %v6273_v45, 6  ;;  %v2416_v49 = vmul.f32 %v2268_v40, %v6369_v18  ;;  %v2234_v43 = vmul.f32 %v2162_v60, %v6393_v24  ;;  %v8353_v41 = vld [vmem:[#allocation18_spill] sm:$0xff] }
 0x288   :  { %v2045_v13 = vadd.f32 %v6104_v9, %v8347_v50  ;;  %v6412_v58 = vpop.f32.mrf.mxu1  ;;  %8348 = vst [vmem:[#allocation13_spill] sm:$0xff] %v6414_v11  ;;  %v2303_v48 = vadd.f32 %v2302_v56, %v2232_v15  ;;  %v2381_v32 = vmul.f32 %v2233_v2, %v6377_v36  ;;  %v2451_v61 = vadd.f32 %v2450_v35, %v2380_v25  ;;  %v8357_v35 = vld [vmem:[#allocation27_spill] sm:$0xff]  ;;  %v8358_v25 = vld [vmem:[#allocation29_spill] sm:$0xff] }
 0x289   :  { %8349 = vst [vmem:[#allocation12_spill] sm:$0xff] %v6416_v7  ;;  %v8352_v50 = vmax.f32 %v8350_v26, %v8351_v37  ;;  %v2340_v27 = vadd.f32 %v2339_v22, %v2268_v40  ;;  %v2417_v4 = vmul.f32 %v2269_v29, %v6381_v20  ;;  %v8355_v3 = vmax.f32 %v8353_v41, %v8354_v54  ;;  %v6467_v30 = vpop.f32.mrf.mxu0 }
 0x28a   :  { %v6431_v18 = vmax.f32 %v2045_v13, 0.0  ;;  %v2488_v34 = vadd.f32 %v2487_v10, %v2416_v49  ;;  %v2270_v15 = vmul.f32 %v2162_v60, %v6414_v11  ;;  %v2235_v56 = vmul.f32 %v2163_v23, %v6416_v7  ;;  %v6446_v13 = vld [vmem:[%s8010_s1 + $0x10] sm:$0xff]  ;;  %8372 = vst [vmem:[#allocation22_spill] sm:$0xff] %v6467_v30 }
 0x28b   :  { %v2010_v1 = vadd.f32 %v6084_v28, %v8352_v50  ;;  %v2046_v8 = vadd.f32 %v6104_v9, %v8355_v3  ;;  %v8359_v26 = vmax.f32 %v8357_v35, %v8358_v25  ;;  %v2304_v22 = vadd.f32 %v2303_v48, %v2233_v2  ;;  %v8360_v60 = vld [vmem:[#allocation28_spill] sm:$0xff]  ;;  %v8365_v2 = vld [vmem:[#allocation30_spill] sm:$0xff]  ;;  %v8366_v48 = vld [vmem:[#allocation35_spill] sm:$0xff] }
 0x28c   :  { %8356 = vst [vmem:[#allocation16_spill] sm:$0xff] %v6431_v18  ;;  %v2382_v50 = vmul.f32 %v2234_v43, %v6393_v24  ;;  %v2164_v41 = vperm.slane %v6273_v45, 7  ;;  %v8361_v10 = vld [vmem:[#allocation32_spill] sm:$0xff]  ;;  %v2452_v35 = vadd.f32 %v2451_v61, %v2381_v32  ;;  %v2341_v25 = vadd.f32 %v2340_v27, %v2269_v29 }
 0x28d   :  { %v2011_v37 = vadd.f32 %v6084_v28, %v8359_v26  ;;  %v6439_v40 = vpop.f32.mrf.mxu2  ;;  %v8362_v49 = vmax.f32 %v8360_v60, %v8361_v10  ;;  %v6454_v26 = vmax.f32 %v2010_v1, 0.0  ;;  %v8367_v20 = vmax.f32 %v8365_v2, %v8366_v48  ;;  %v8370_v60 = vld [vmem:[#allocation38_spill] sm:$0xff] }
 0x28e   :  { %v2489_v24 = vadd.f32 %v2488_v34, %v2417_v4  ;;  %v6460_v36 = vmax.f32 %v2046_v8, 0.0  ;;  %v2271_v39 = vmul.f32 %v2163_v23, %v6431_v18  ;;  %v8371_v10 = vmax.f32 %v8369_v17, %v8370_v60  ;;  %v8375_v4 = vld [vmem:[#allocation36_spill] sm:$0xff]  ;;  %v8376_v17 = vld [vmem:[#allocation41_spill] sm:$0xff] }
 0x28f   :  { %v2047_v54 = vadd.f32 %v6104_v9, %v8362_v49  ;;  %v6452_v3 = vpop.f32.mrf.mxu3  ;;  %8364 = vst [vmem:[#allocation19_spill] sm:$0xff] %v6454_v26  ;;  %v2012_v45 = vadd.f32 %v6084_v28, %v8367_v20  ;;  %v2418_v32 = vmul.f32 %v2270_v15, %v6414_v11  ;;  %v2383_v61 = vmul.f32 %v2235_v56, %v6416_v7  ;;  %v8379_v11 = vld [vmem:[#allocation39_spill] sm:$0xff] }
 0x290   :  { %8363 = vst [vmem:[#allocation14_spill] sm:$0xff] %v6452_v3  ;;  %v2048_v49 = vadd.f32 %v6104_v9, %v8371_v10  ;;  %v6469_v29 = vpop.f32.mrf.mxu1  ;;  %v6473_v1 = vmax.f32 %v2011_v37, 0.0  ;;  %v2165_v34 = vperm.slane %v6446_v13, 0  ;;  %v2305_v20 = vadd.f32 %v2304_v22, %v2234_v43  ;;  %v8380_v37 = vld [vmem:[#allocation42_spill] sm:$0xff] }
 0x291   :  { %8368 = vst [vmem:[#allocation17_spill] sm:$0xff] %v6460_v36  ;;  %v2453_v27 = vadd.f32 %v2452_v35, %v2382_v50  ;;  %v6476_v23 = vmax.f32 %v2047_v54, 0.0  ;;  %v8377_v8 = vmax.f32 %v8375_v4, %v8376_v17  ;;  %v2236_v48 = vmul.f32 %v2164_v41, %v6454_v26 }
 0x292   :  { %8373 = vst [vmem:[#allocation20_spill] sm:$0xff] %v6473_v1  ;;  %v6483_v60 = vmax.f32 %v2012_v45, 0.0  ;;  %v2166_v10 = vperm.slane %v6446_v13, 1  ;;  %v8381_v7 = vmax.f32 %v8379_v11, %v8380_v37  ;;  %v2342_v43 = vadd.f32 %v2341_v25, %v2270_v15 }
 0x293   :  { %8374 = vst [vmem:[#allocation25_spill] sm:$0xff] %v6476_v23  ;;  %v2013_v2 = vadd.f32 %v6084_v28, %v8377_v8  ;;  %v2272_v22 = vmul.f32 %v2164_v41, %v6460_v36  ;;  %v2419_v50 = vmul.f32 %v2271_v39, %v6431_v18  ;;  %v6492_v54 = vmax.f32 %v2048_v49, 0.0 }
 0x294   :  { %8378 = vst [vmem:[#allocation23_spill] sm:$0xff] %v6483_v60  ;;  %v2049_v3 = vadd.f32 %v6104_v9, %v8381_v7  ;;  %v2490_v35 = vadd.f32 %v2489_v24, %v2418_v32  ;;  %v2306_v4 = vadd.f32 %v2305_v20, %v2235_v56  ;;  %v2454_v17 = vadd.f32 %v2453_v27, %v2383_v61  ;;  %v8385_v24 = vld [vmem:[#allocation31_spill] sm:$0xff]  ;;  %v8386_v56 = vld [vmem:[#allocation37_spill] sm:$0xff]  ;;  %v8389_v27 = vld [vmem:[#allocation34_spill] sm:$0xff] }
 0x295   :  { %8382 = vst [vmem:[#allocation26_spill] sm:$0xff] %v6492_v54  ;;  %v2237_v45 = vmul.f32 %v2165_v34, %v6473_v1  ;;  %v6495_v8 = vpop.f32.mrf.mxu2  ;;  %v2343_v30 = vadd.f32 %v2342_v43, %v2271_v39  ;;  %v2273_v44 = vmul.f32 %v2165_v34, %v6476_v23  ;;  %v6498_v11 = vmax.f32 %v2013_v2, 0.0  ;;  %v8390_v2 = vld [vmem:[#allocation40_spill] sm:$0xff] }
 0x296   :  { %v2167_v7 = vperm.slane %v6446_v13, 2  ;;  %v2384_v41 = vmul.f32 %v2236_v48, %v6454_v26  ;;  %v2238_v25 = vmul.f32 %v2166_v10, %v6483_v60  ;;  %v8387_v49 = vmax.f32 %v8385_v24, %v8386_v56 }
 0x297   :  { %8383 = vst [vmem:[#allocation15_spill] sm:$0xff] %v6498_v11  ;;  %v6501_v15 = vpop.f32.mrf.mxu3  ;;  %v6509_v61 = vmax.f32 %v2049_v3, 0.0  ;;  %v2420_v39 = vmul.f32 %v2272_v22, %v6460_v36  ;;  %v2491_v34 = vadd.f32 %v2490_v35, %v2419_v50  ;;  %v2274_v20 = vmul.f32 %v2166_v10, %v6492_v54 }
 0x298   :  { %8384 = vst [vmem:[#allocation21_spill] sm:$0xff] %v6501_v15  ;;  %v2014_v32 = vadd.f32 %v6084_v28, %v8387_v49  ;;  %v8391_v37 = vmax.f32 %v8389_v27, %v8390_v2  ;;  %v6517_v18 = vpop.f32.mrf.mxu1  ;;  %v2307_v26 = vadd.f32 %v2306_v4, %v2236_v48  ;;  %v2385_v15 = vmul.f32 %v2237_v45, %v6473_v1  ;;  %v6527_v27 = vpop.f32.mrf.mxu0 }
 0x299   :  { %8388 = vst [vmem:[#allocation18_spill] sm:$0xff] %v6509_v61  ;;  %v2455_v24 = vadd.f32 %v2454_v17, %v2384_v41  ;;  %v8393_v3 = vmax.f32 %v5885_v55, %v5932_v57  ;;  %v2344_v49 = vadd.f32 %v2343_v30, %v2272_v22  ;;  %v2421_v50 = vmul.f32 %v2273_v44, %v6476_v23  ;;  %v8395_v17 = vld [vmem:[#allocation45_spill] sm:$0xff] }
 0x29a   :  { %v2050_v43 = vadd.f32 %v6104_v9, %v8391_v37  ;;  %8392 = vst [vmem:[#allocation24_spill] sm:$0xff] %v6517_v18  ;;  %v2168_v10 = vperm.slane %v6446_v13, 3  ;;  %v2239_v35 = vmul.f32 %v2167_v7, %v6498_v11  ;;  %v2386_v2 = vmul.f32 %v2238_v25, %v6483_v60  ;;  %v8400_v60 = vld [vmem:[#allocation47_spill] sm:$0xff] }
 0x29b   :  { %v2015_v56 = vadd.f32 %v6084_v28, %v8393_v3  ;;  %v6530_v48 = vmax.f32 %v2014_v32, 0.0  ;;  %v2275_v4 = vmul.f32 %v2167_v7, %v6509_v61  ;;  %v8396_v55 = vmax.f32 %v5904_v19, %v8395_v17  ;;  %v8399_v32 = vld [vmem:[#allocation43_spill] sm:$0xff] }
 0x29c   :  { %v2308_v30 = vadd.f32 %v2307_v26, %v2237_v45  ;;  %v2492_v22 = vadd.f32 %v2491_v34, %v2420_v39  ;;  %v2422_v41 = vmul.f32 %v2274_v20, %v6492_v54  ;;  %v6538_v37 = vmax.f32 %v2050_v43, 0.0 }
 0x29d   :  { %8394 = vst [vmem:[#allocation27_spill] sm:$0xff] %v6530_v48  ;;  %v2051_v57 = vadd.f32 %v6104_v9, %v8396_v55  ;;  %v2456_v3 = vadd.f32 %v2455_v24, %v2385_v15  ;;  %v6540_v23 = vmax.f32 %v2015_v56, 0.0  ;;  %v2169_v36 = vperm.slane %v6446_v13, 4  ;;  %v6547_v18 = vpop.f32.mrf.mxu2 }
 0x29e   :  { %8397 = vst [vmem:[#allocation29_spill] sm:$0xff] %v6538_v37  ;;  %v8401_v1 = vmax.f32 %v8399_v32, %v8400_v60  ;;  %v2345_v19 = vadd.f32 %v2344_v49, %v2273_v44  ;;  %v2493_v17 = vadd.f32 %v2492_v22, %v2421_v50  ;;  %v2309_v26 = vadd.f32 %v2308_v30, %v2238_v25 }
 0x29f   :  { %8398 = vst [vmem:[#allocation28_spill] sm:$0xff] %v6540_v23  ;;  %v2387_v45 = vmul.f32 %v2239_v35, %v6498_v11  ;;  %v6550_v39 = vpop.f32.mrf.mxu3  ;;  %v2457_v34 = vadd.f32 %v2456_v3, %v2386_v2  ;;  %v2240_v15 = vmul.f32 %v2168_v10, %v6530_v48  ;;  %v2423_v43 = vmul.f32 %v2275_v4, %v6509_v61  ;;  %v8429_v61 = vld [vmem:[#allocation46_spill] sm:$0xff] }
 0x2a0   :  { %v2016_v7 = vadd.f32 %v6084_v28, %v8401_v1  ;;  %8402 = vst [vmem:[#allocation32_spill] sm:$0xff] %v6550_v39  ;;  %v6554_v24 = vmax.f32 %v2051_v57, 0.0  ;;  %v2346_v56 = vadd.f32 %v2345_v19, %v2274_v20  ;;  %v2494_v60 = vadd.f32 %v2493_v17, %v2422_v41  ;;  %v6557_v32 = vpop.f32.mrf.mxu1  ;;  %v8447_v39 = vld [vmem:[#allocation65_spill] sm:$0xff] }
 0x2a1   :  { %v2276_v1 = vmul.f32 %v2168_v10, %v6538_v37  ;;  %v2310_v55 = vadd.f32 %v2309_v26, %v2239_v35  ;;  %v2241_v44 = vmul.f32 %v2169_v36, %v6540_v23  ;;  %v2170_v49 = vperm.slane %v6446_v13, 5  ;;  %v8406_v10 = vld [vmem:[#allocation44_spill] sm:$0xff] }
 0x2a2   :  { %8403 = vst [vmem:[#allocation30_spill] sm:$0xff] %v6554_v24  ;;  %v6560_v25 = vmax.f32 %v2016_v7, 0.0  ;;  %v8405_v50 = vmax.f32 %v5954_v62, %v5990_v38  ;;  %v2458_v57 = vadd.f32 %v2457_v34, %v2387_v45  ;;  %v2347_v30 = vadd.f32 %v2346_v56, %v2275_v4  ;;  %v8407_v35 = vld [vmem:[#allocation48_spill] sm:$0xff]  ;;  %v6578_v38 = vpop.f32.mrf.mxu0 }
 0x2a3   :  { %v2495_v20 = vadd.f32 %v2494_v60, %v2423_v43  ;;  %v2277_v22 = vmul.f32 %v2169_v36, %v6554_v24  ;;  %v8408_v41 = vmax.f32 %v8406_v10, %v8407_v35  ;;  %v2388_v7 = vmul.f32 %v2240_v15, %v6530_v48  ;;  %v8412_v60 = vld [vmem:[#allocation49_spill] sm:$0xff]  ;;  %v8413_v10 = vld [vmem:[#allocation50_spill] sm:$0xff] }
 0x2a4   :  { %8404 = vst [vmem:[#allocation35_spill] sm:$0xff] %v6560_v25  ;;  %v2052_v2 = vadd.f32 %v6104_v9, %v8405_v50  ;;  %v2424_v19 = vmul.f32 %v2276_v1, %v6538_v37  ;;  %v8409_v17 = vmax.f32 %v5982_v42, %v6008_v21  ;;  %v2311_v4 = vadd.f32 %v2310_v55, %v2240_v15  ;;  %v8414_v42 = vld [vmem:[#allocation53_spill] sm:$0xff] }
 0x2a5   :  { %v2018_v3 = vadd.f32 %v6084_v28, %v8408_v41  ;;  %v2389_v26 = vmul.f32 %v2241_v44, %v6540_v23  ;;  %v2242_v36 = vmul.f32 %v2170_v49, %v6560_v25  ;;  %v6584_v34 = vpop.f32.mrf.mxu2  ;;  %v2459_v43 = vadd.f32 %v2458_v57, %v2388_v7 }
 0x2a6   :  { %v2017_v62 = vadd.f32 %v6084_v28, %v8409_v17  ;;  %v6582_v45 = vmax.f32 %v2052_v2, 0.0  ;;  %8411 = vst [vmem:[#allocation38_spill] sm:$0xff] %v6584_v34  ;;  %v2348_v56 = vadd.f32 %v2347_v30, %v2276_v1  ;;  %v1827_v50 = vmax.f32 %v8412_v60, %v6012_v47 }
 0x2a7   :  { %v8415_v21 = vmax.f32 %v8413_v10, %v8414_v42  ;;  %v6592_v41 = vpop.f32.mrf.mxu3  ;;  %v2425_v15 = vmul.f32 %v2277_v22, %v6554_v24  ;;  %v2496_v55 = vadd.f32 %v2495_v20, %v2424_v19  ;;  %v6595_v17 = vmax.f32 %v2018_v3, 0.0  ;;  %v8419_v42 = vld [vmem:[#allocation56_spill] sm:$0xff]  ;;  %v8425_v24 = vld [vmem:[#allocation62_spill] sm:$0xff] }
 0x2a8   :  { %8410 = vst [vmem:[#allocation33_spill] sm:$0xff] %v6582_v45  ;;  %v2172_v2 = vperm.slane %v6446_v13, 7  ;;  %v2312_v37 = vadd.f32 %v2311_v4, %v2241_v44  ;;  %v6598_v57 = vmax.f32 %v2017_v62, 0.0  ;;  %v2171_v1 = vperm.slane %v6446_v13, 6  ;;  %v6602_v30 = vpop.f32.mrf.mxu1  ;;  %v8420_v20 = vld [vmem:[#allocation52_spill] sm:$0xff]  ;;  %v8422_v44 = vld [vmem:[#allocation55_spill] sm:$0xff] }
 0x2a9   :  { %v2053_v35 = vadd.f32 %v6104_v9, %v8415_v21  ;;  %8416 = vst [vmem:[#allocation36_spill] sm:$0xff] %v6595_v17  ;;  %v1899_v47 = vmax.f32 %v1827_v50, %v6032_v31  ;;  %v2460_v7 = vadd.f32 %v2459_v43, %v2389_v26  ;;  %v2390_v60 = vmul.f32 %v2242_v36, %v6560_v25  ;;  %v8423_v62 = vld [vmem:[#allocation59_spill] sm:$0xff] }
 0x2aa   :  { %8417 = vst [vmem:[#allocation41_spill] sm:$0xff] %v6598_v57  ;;  %v2278_v10 = vmul.f32 %v2170_v49, %v6582_v45  ;;  %v1828_v3 = vmax.f32 %v8420_v20, %v8419_v42  ;;  %v2349_v19 = vadd.f32 %v2348_v56, %v2277_v22  ;;  %v8424_v4 = vmax.f32 %v8422_v44, %v8423_v62  ;;  %v6619_v49 = vld [vmem:[%s8010_s1 + $0x18] sm:$0xff]  ;;  %v8426_v43 = vld [vmem:[#allocation63_spill] sm:$0xff]  ;;  %v8427_v22 = vld [vmem:[#allocation64_spill] sm:$0xff] }
 0x2ab   :  { %8418 = vst [vmem:[#allocation39_spill] sm:$0xff] %v6602_v30  ;;  %v6608_v21 = vmax.f32 %v2053_v35, 0.0  ;;  %v1971_v31 = vmax.f32 %v1899_v47, %v8425_v24  ;;  %v2497_v50 = vadd.f32 %v2496_v55, %v2425_v15  ;;  %v2244_v26 = vmul.f32 %v2172_v2, %v6595_v17  ;;  %v8428_v56 = vld [vmem:[#allocation57_spill] sm:$0xff]  ;;  %v8430_v44 = vld [vmem:[#allocation51_spill] sm:$0xff]  ;;  %v8432_v15 = vld [vmem:[#allocation60_spill] sm:$0xff] }
 0x2ac   :  { %v2019_v13 = vadd.f32 %v6084_v28, %v8424_v4  ;;  %v1900_v42 = vmax.f32 %v1828_v3, %v8426_v43  ;;  %v1829_v35 = vmax.f32 %v8428_v56, %v8427_v22  ;;  %v2313_v20 = vadd.f32 %v2312_v37, %v2242_v36  ;;  %v8433_v55 = vld [vmem:[#allocation66_spill] sm:$0xff] }
 0x2ad   :  { %8421 = vst [vmem:[#allocation42_spill] sm:$0xff] %v6608_v21  ;;  %v8431_v62 = vmax.f32 %v8429_v61, %v8430_v44  ;;  %v2243_v24 = vmul.f32 %v2171_v1, %v6598_v57  ;;  %v8434_v47 = vmax.f32 %v8432_v15, %v8433_v55  ;;  %v2461_v25 = vadd.f32 %v2460_v7, %v2390_v60  ;;  %v8435_v43 = vld [vmem:[#allocation70_spill] sm:$0xff]  ;;  %v6636_v37 = vpop.f32.mrf.mxu2  ;;  %v8442_v55 = vld [vmem:[#allocation72_spill] sm:$0xff] }
 0x2ae   :  { %v2426_v23 = vmul.f32 %v2278_v10, %v6582_v45  ;;  %v1972_v3 = vmax.f32 %v1900_v42, %v6082_v52  ;;  %v1901_v22 = vmax.f32 %v1829_v35, %v8435_v43  ;;  %8436 = vst [vmem:[#allocation31_spill] sm:$0xff] %v6636_v37  ;;  %v2279_v61 = vmul.f32 %v2171_v1, %v6608_v21  ;;  %v8439_v60 = vld [vmem:[#allocation58_spill] sm:$0xff]  ;;  %v8441_v35 = vld [vmem:[#allocation67_spill] sm:$0xff] }
 0x2af   :  { %v2054_v4 = vadd.f32 %v6104_v9, %v8431_v62  ;;  %v2020_v54 = vadd.f32 %v6084_v28, %v8434_v47  ;;  %v6639_v36 = vmax.f32 %v2019_v13, 0.0  ;;  %v2173_v56 = vperm.slane %v6619_v49, 0  ;;  %v6643_v62 = vpop.f32.mrf.mxu0  ;;  %v6645_v15 = vpop.f32.mrf.mxu3  ;;  %v8440_v52 = vld [vmem:[#allocation54_spill] sm:$0xff]  ;;  %v8444_v13 = vld [vmem:[#allocation77_spill] sm:$0xff] }
 0x2b0   :  { %v2055_v44 = vadd.f32 %v6104_v9, %v1971_v31  ;;  %8438 = vst [vmem:[#allocation34_spill] sm:$0xff] %v6645_v15  ;;  %v2392_v7 = vmul.f32 %v2244_v26, %v6595_v17  ;;  %v1830_v42 = vmax.f32 %v8440_v52, %v8439_v60  ;;  %v8443_v47 = vmax.f32 %v8441_v35, %v8442_v55  ;;  %v6663_v52 = vpop.f32.mrf.mxu1 }
 0x2b1   :  { %8437 = vst [vmem:[#allocation37_spill] sm:$0xff] %v6639_v36  ;;  %v1973_v43 = vmax.f32 %v1901_v22, %v8444_v13  ;;  %v6655_v45 = vmax.f32 %v2054_v4, 0.0  ;;  %v2391_v31 = vmul.f32 %v2243_v24, %v6598_v57  ;;  %v6658_v48 = vmax.f32 %v2020_v54, 0.0  ;;  %v8455_v57 = vld [vmem:[#allocation83_spill] sm:$0xff] }
 0x2b2   :  { %v2021_v1 = vadd.f32 %v6084_v28, %v8443_v47  ;;  %v2174_v11 = vperm.slane %v6619_v49, 1  ;;  %v2350_v37 = vadd.f32 %v2349_v19, %v2278_v10  ;;  %v2314_v17 = vadd.f32 %v2313_v20, %v2243_v24  ;;  %v8449_v47 = vld [vmem:[#allocation71_spill] sm:$0xff] }
 0x2b3   :  { %8445 = vst [vmem:[#allocation40_spill] sm:$0xff] %v6655_v45  ;;  %v1902_v15 = vmax.f32 %v1830_v42, %v8447_v39  ;;  %v2056_v60 = vadd.f32 %v6104_v9, %v1972_v3  ;;  %v2498_v35 = vadd.f32 %v2497_v50, %v2426_v23  ;;  %v2427_v55 = vmul.f32 %v2279_v61, %v6608_v21  ;;  %v8450_v23 = vld [vmem:[#allocation61_spill] sm:$0xff]  ;;  %v8451_v50 = vld [vmem:[#allocation68_spill] sm:$0xff] }
 0x2b4   :  { %8446 = vst [vmem:[#allocation45_spill] sm:$0xff] %v6658_v48  ;;  %v2245_v4 = vmul.f32 %v2173_v56, %v6639_v36  ;;  %v6667_v22 = vmax.f32 %v2055_v44, 0.0  ;;  %v6670_v13 = vmax.f32 %v2021_v1, 0.0  ;;  %v2175_v10 = vperm.slane %v6619_v49, 2  ;;  %v8454_v1 = vld [vmem:[#allocation69_spill] sm:$0xff] }
 0x2b5   :  { %v1974_v54 = vmax.f32 %v1902_v15, %v8449_v47  ;;  %v2057_v19 = vadd.f32 %v6104_v9, %v1973_v43  ;;  %v2280_v39 = vmul.f32 %v2172_v2, %v6655_v45  ;;  %v2462_v20 = vadd.f32 %v2461_v25, %v2391_v31  ;;  %v8453_v15 = vld [vmem:[#allocation73_spill] sm:$0xff]  ;;  %v6686_v43 = vpop.f32.mrf.mxu2 }
 0x2b6   :  { %8448 = vst [vmem:[#allocation43_spill] sm:$0xff] %v6667_v22  ;;  %v2246_v24 = vmul.f32 %v2174_v11, %v6658_v48  ;;  %v8452_v3 = vmax.f32 %v8450_v23, %v8451_v50  ;;  %v2315_v44 = vadd.f32 %v2314_v17, %v2244_v26  ;;  %v6680_v21 = vmax.f32 %v2056_v60, 0.0  ;;  %v8457_v60 = vld [vmem:[#allocation88_spill] sm:$0xff] }
 0x2b7   :  { %v1831_v47 = vmax.f32 %v8454_v1, %v8453_v15  ;;  %v1939_v34 = vmax.f32 %v8455_v57, %v6279_v14  ;;  %8456 = vst [vmem:[#allocation47_spill] sm:$0xff] %v6686_v43  ;;  %v2351_v2 = vadd.f32 %v2350_v37, %v2279_v61  ;;  %v2499_v25 = vadd.f32 %v2498_v35, %v2427_v55  ;;  %v6701_v61 = vpop.f32.mrf.mxu0 }
 0x2b8   :  { %v2022_v42 = vadd.f32 %v6084_v28, %v8452_v3  ;;  %v2393_v31 = vmul.f32 %v2245_v4, %v6639_v36  ;;  %v2281_v30 = vmul.f32 %v2173_v56, %v6667_v22  ;;  %v2058_v23 = vadd.f32 %v6104_v9, %v1974_v54  ;;  %v6695_v3 = vpop.f32.mrf.mxu3  ;;  %v6712_v36 = vpop.f32.mrf.mxu1 }
 0x2b9   :  { %v2247_v17 = vmul.f32 %v2175_v10, %v6670_v13  ;;  %v6692_v26 = vmax.f32 %v2057_v19, 0.0  ;;  %v1903_v50 = vmax.f32 %v1831_v47, %v8457_v60  ;;  %v2463_v15 = vadd.f32 %v2462_v20, %v2392_v7 }
 0x2ba   :  { %v2394_v14 = vmul.f32 %v2246_v24, %v6658_v48  ;;  %v6698_v57 = vmax.f32 %v2022_v42, 0.0  ;;  %v2176_v37 = vperm.slane %v6619_v49, 3  ;;  %v2428_v56 = vmul.f32 %v2280_v39, %v6655_v45 }
 0x2bb   :  { %v2282_v35 = vmul.f32 %v2174_v11, %v6680_v21  ;;  %v2023_v55 = vadd.f32 %v6084_v28, %v1939_v34  ;;  %v1975_v54 = vmax.f32 %v1903_v50, %v6337_v46  ;;  %v2316_v19 = vadd.f32 %v2315_v44, %v2245_v4 }
 0x2bc   :  { %v2464_v1 = vadd.f32 %v2463_v15, %v2393_v31  ;;  %v2352_v47 = vadd.f32 %v2351_v2, %v2280_v39  ;;  %v2429_v7 = vmul.f32 %v2281_v30, %v6667_v22  ;;  %v2500_v20 = vadd.f32 %v2499_v25, %v2428_v56 }
 0x2bd   :  { %v6708_v42 = vmax.f32 %v2058_v23, 0.0  ;;  %v2395_v60 = vmul.f32 %v2247_v17, %v6670_v13  ;;  %v2283_v48 = vmul.f32 %v2175_v10, %v6692_v26  ;;  %v2317_v11 = vadd.f32 %v2316_v19, %v2246_v24  ;;  %v6720_v2 = vpop.f32.mrf.mxu2  ;;  %v8458_v10 = vld [vmem:[#allocation89_spill] sm:$0xff]  ;;  %v8459_v23 = vld [vmem:[#allocation74_spill] sm:$0xff] }
 0x2be   :  { %v2353_v45 = vadd.f32 %v2352_v47, %v2281_v30  ;;  %v2465_v43 = vadd.f32 %v2464_v1, %v2394_v14  ;;  %v2248_v34 = vmul.f32 %v2176_v37, %v6698_v57  ;;  %v2430_v46 = vmul.f32 %v2282_v35, %v6680_v21 }
 0x2bf   :  { %v6716_v4 = vmax.f32 %v2023_v55, 0.0  ;;  %v2177_v39 = vperm.slane %v6619_v49, 4  ;;  %v2059_v44 = vadd.f32 %v6104_v9, %v1975_v54  ;;  %v2501_v25 = vadd.f32 %v2500_v20, %v2429_v7 }
 0x2c0   :  { %v2354_v31 = vadd.f32 %v2353_v45, %v2282_v35  ;;  %v1832_v50 = vmax.f32 %v8459_v23, %v8458_v10  ;;  %v1940_v30 = vmax.f32 %v6265_v63, %v6366_v33  ;;  %v2284_v24 = vmul.f32 %v2176_v37, %v6708_v42  ;;  %v6737_v33 = vpop.f32.mrf.mxu3 }
 0x2c1   :  { %v2318_v15 = vadd.f32 %v2317_v11, %v2247_v17  ;;  %v2466_v14 = vadd.f32 %v2465_v43, %v2395_v60  ;;  %v2431_v56 = vmul.f32 %v2283_v48, %v6692_v26  ;;  %v2396_v55 = vmul.f32 %v2248_v34, %v6698_v57  ;;  %v1675_v17 = vpop.f32.mrf.mxu0 }
 0x2c2   :  { %v2355_v19 = vadd.f32 %v2354_v31, %v2283_v48  ;;  %v1904_v54 = vmax.f32 %v1832_v50, %v6317_v12  ;;  %v1941_v45 = vmax.f32 %v6401_v6, %v6495_v8  ;;  %v2502_v35 = vadd.f32 %v2501_v25, %v2430_v46  ;;  %v1704_v46 = vpop.f32.mrf.mxu1  ;;  %v8460_v31 = vld [vmem:[#allocation80_spill] sm:$0xff] }
 0x2c3   :  { %v2249_v1 = vmul.f32 %v2177_v39, %v6716_v4  ;;  %v6733_v47 = vmax.f32 %v2059_v44, 0.0  ;;  %v1799_v63 = vmax.f32 %v6396_v0, %v6527_v27  ;;  %v2024_v43 = vadd.f32 %v6084_v28, %v1940_v30 }
 0x2c4   :  { %v1942_v48 = vmax.f32 %v6312_v5, %v6403_v51  ;;  %v1976_v12 = vmax.f32 %v1904_v54, %v6412_v58  ;;  %v2432_v6 = vmul.f32 %v2284_v24, %v6708_v42  ;;  %v2503_v8 = vadd.f32 %v2502_v35, %v2431_v56 }
 0x2c5   :  { %v2319_v37 = vadd.f32 %v2318_v15, %v2248_v34  ;;  %v2467_v7 = vadd.f32 %v2466_v14, %v2396_v55  ;;  %v2356_v20 = vadd.f32 %v2355_v19, %v2284_v24  ;;  %v1833_v60 = vmax.f32 %v6236_v16, %v6343_v59  ;;  %v6753_v34 = vpop.f32.mrf.mxu2  ;;  %v8461_v14 = vld [vmem:[#allocation10_spill] sm:$0xff] }
 0x2c6   :  { %v2178_v0 = vperm.slane %v6619_v49, 5  ;;  %v2025_v27 = vadd.f32 %v6084_v28, %v1941_v45  ;;  %v2397_v11 = vmul.f32 %v2249_v1, %v6716_v4  ;;  %v2285_v5 = vmul.f32 %v2177_v39, %v6733_v47  ;;  %v8462_v45 = vld [vmem:[#allocation22_spill] sm:$0xff] }
 0x2c7   :  { %v1871_v51 = vmax.f32 %v1799_v63, %v6643_v62  ;;  %v1800_v58 = vmax.f32 %v6469_v29, %v6557_v32  ;;  %v6755_v44 = vmax.f32 %v2024_v43, 0.0  ;;  %v2026_v16 = vadd.f32 %v6084_v28, %v1942_v48  ;;  %v8463_v63 = vld [vmem:[#allocation21_spill] sm:$0xff]  ;;  %v8464_v48 = vld [vmem:[#allocation14_spill] sm:$0xff] }
 0x2c8   :  { %v2060_v59 = vadd.f32 %v6104_v9, %v1976_v12  ;;  %v1905_v25 = vmax.f32 %v1833_v60, %v6439_v40  ;;  %v1834_v10 = vmax.f32 %v8460_v31, %v6245_v53  ;;  %v2504_v39 = vadd.f32 %v2503_v8, %v2432_v6  ;;  %v1762_v43 = vpop.f32.mrf.mxu3  ;;  %v6786_v8 = vld [vmem:[%s8010_s1 + $0x20] sm:$0xf] }
 0x2c9   :  { %v1943_v23 = vmax.f32 %v1871_v51, %v1675_v17  ;;  %v1872_v62 = vmax.f32 %v1800_v58, %v6663_v52  ;;  %v2180_v29 = vperm.slane %v6619_v49, 7  ;;  %v6764_v32 = vmax.f32 %v2025_v27, 0.0  ;;  %v8466_v51 = vld [vmem:[#allocation24_spill] sm:$0xff]  ;;  %v6805_v58 = vld [vmem:[%s8009_s6] sm:$0xff] }
 0x2ca   :  { %v2179_v50 = vperm.slane %v6619_v49, 6  ;;  %v1977_v30 = vmax.f32 %v1905_v25, %v6547_v18  ;;  %v2320_v24 = vadd.f32 %v2319_v37, %v2249_v1  ;;  %v2468_v15 = vadd.f32 %v2467_v7, %v2397_v11  ;;  %v1677_v37 = vpop.f32.mrf.mxu0  ;;  %v1706_v31 = vpop.f32.mrf.mxu1 }
 0x2cb   :  { %v1906_v56 = vmax.f32 %v1834_v10, %v8461_v14  ;;  %v1944_v40 = vmax.f32 %v1872_v62, %v1704_v46  ;;  %v2357_v55 = vadd.f32 %v2356_v20, %v2285_v5  ;;  %v2250_v53 = vmul.f32 %v2178_v0, %v6755_v44 }
 0x2cc   :  { %v6770_v19 = vmax.f32 %v2026_v16, 0.0  ;;  %v6772_v54 = vmax.f32 %v2060_v59, 0.0  ;;  %v2433_v52 = vmul.f32 %v2285_v5, %v6733_v47  ;;  %v1835_v35 = vmax.f32 %v8462_v45, %v6578_v38 }
 0x2cd   :  { %v1802_v18 = vmax.f32 %v8463_v63, %v6592_v41  ;;  %v2027_v1 = vadd.f32 %v6084_v28, %v1943_v23  ;;  %v1978_v12 = vmax.f32 %v1906_v56, %v8464_v48  ;;  %v2251_v17 = vmul.f32 %v2179_v50, %v6764_v32  ;;  %v6791_v20 = vpop.f32.mrf.mxu2  ;;  %v8469_v63 = vld [vmem:[#allocation47_spill] sm:$0xff] }
 0x2ce   :  { %v2061_v6 = vadd.f32 %v6104_v9, %v1977_v30  ;;  %v1907_v38 = vmax.f32 %v1835_v35, %v6701_v61  ;;  %v2028_v41 = vadd.f32 %v6084_v28, %v1944_v40  ;;  %v8179_v60 = vmov 1   ;;  %v8465_v61 = vld [vmem:[#allocation39_spill] sm:$0xff] }
 0x2cf   :  { %v1874_v7 = vmax.f32 %v1802_v18, %v6695_v3  ;;  %4615 = vset.pattern.permute.xlu0 %v8179_v60  ;;  %4616 = vset.pattern.permute.xlu1 %v8179_v60  ;;  %v2398_v27 = vmul.f32 %v2250_v53, %v6755_v44  ;;  %v2252_v11 = vmul.f32 %v2180_v29, %v6770_v19  ;;  %v6808_v46 = vmax.f32 %v2027_v1, 0.0  ;;  %v8470_v18 = vld [vmem:[#allocation38_spill] sm:$0xff] }
 0x2d0   :  { %v2286_v5 = vmul.f32 %v2178_v0, %v6772_v54  ;;  %v1836_v3 = vmax.f32 %v8466_v51, %v8465_v61  ;;  %2690 = vperm.xlu0 %4615, %v6805_v58   ;;  %v2181_v16 = vperm.slane %v6786_v8, 0  ;;  %v1979_v59 = vmax.f32 %v1907_v38, %v1677_v37 }
 0x2d1   :  { %8467 = vst [vmem:[#allocation44_spill] sm:$0xff] %v6808_v46  ;;  %v1946_v25 = vmax.f32 %v1874_v7, %v1762_v43  ;;  %v2505_v10 = vadd.f32 %v2504_v39, %v2433_v52  ;;  %v2321_v23 = vadd.f32 %v2320_v24, %v2250_v53  ;;  %v2062_v0 = vadd.f32 %v6104_v9, %v1978_v12  ;;  %v8471_v12 = vld [vmem:[#allocation34_spill] sm:$0xff] }
 0x2d2   :  { %v1908_v62 = vmax.f32 %v1836_v3, %v6712_v36  ;;  %v2399_v30 = vmul.f32 %v2251_v17, %v6764_v32  ;;  %v6814_v14 = vmax.f32 %v2061_v6, 0.0  ;;  %v6816_v56 = vmax.f32 %v2028_v41, 0.0  ;;  %v8472_v6 = vld [vmem:[#allocation32_spill] sm:$0xff] }
 0x2d3   :  { %v2182_v40 = vperm.slane %v6786_v8, 1  ;;  %v2469_v45 = vadd.f32 %v2468_v15, %v2398_v27  ;;  %v2434_v35 = vmul.f32 %v2286_v5, %v6772_v54  ;;  %v1801_v1 = vmax.f32 %v8470_v18, %v8469_v63  ;;  %v1764_v27 = vpop.f32.mrf.mxu3 }
 0x2d4   :  { %8468 = vst [vmem:[#allocation48_spill] sm:$0xff] %v6816_v56  ;;  %v1980_v39 = vmax.f32 %v1908_v62, %v1706_v31  ;;  %v2400_v24 = vmul.f32 %v2252_v11, %v6770_v19  ;;  %v2253_v53 = vmul.f32 %v2181_v16, %v6808_v46  ;;  %v2063_v36 = vadd.f32 %v6104_v9, %v1979_v59 }
 0x2d5   :  { %v2030_v52 = vadd.f32 %v6084_v28, %v1946_v25  ;;  %v2358_v43 = vadd.f32 %v2357_v55, %v2286_v5  ;;  %v2322_v48 = vadd.f32 %v2321_v23, %v2251_v17  ;;  %v1838_v37 = vmax.f32 %v8472_v6, %v8471_v12  ;;  %v1733_v61 = vpop.f32.mrf.mxu2 }
 0x2d6   :  { %v1873_v15 = vmax.f32 %v1801_v1, %v6753_v34  ;;  %v6829_v38 = vmax.f32 %v2062_v0, 0.0  ;;  %v2470_v7 = vadd.f32 %v2469_v45, %v2399_v30  ;;  %v2287_v41 = vmul.f32 %v2179_v50, %v6814_v14 }
 0x2d7   :  { %v2254_v51 = vmul.f32 %v2182_v40, %v6816_v56  ;;  %v2506_v3 = vadd.f32 %v2505_v10, %v2434_v35  ;;  %v1910_v59 = vmax.f32 %v1838_v37, %v6737_v33  ;;  %v2064_v55 = vadd.f32 %v6104_v9, %v1980_v39  ;;  %v8475_v35 = vld [vmem:[#allocation31_spill] sm:$0xff] }
 0x2d8   :  { %v1945_v17 = vmax.f32 %v1873_v15, %v1733_v61  ;;  %v2401_v5 = vmul.f32 %v2253_v53, %v6808_v46  ;;  %v6836_v25 = vmax.f32 %v2063_v36, 0.0  ;;  %v6838_v34 = vmax.f32 %v2030_v52, 0.0 }
 0x2d9   :  { %v2184_v31 = vperm.slane %v6786_v8, 3  ;;  %v1982_v23 = vmax.f32 %v1910_v59, %v1764_v27  ;;  %v2183_v0 = vperm.slane %v6786_v8, 2  ;;  %v2323_v62 = vadd.f32 %v2322_v48, %v2252_v11 }
 0x2da   :  { %8473 = vst [vmem:[#allocation49_spill] sm:$0xff] %v6836_v25  ;;  %v2029_v50 = vadd.f32 %v6084_v28, %v1945_v17  ;;  %v2288_v33 = vmul.f32 %v2180_v29, %v6829_v38  ;;  %v2435_v10 = vmul.f32 %v2287_v41, %v6814_v14  ;;  %v2402_v30 = vmul.f32 %v2254_v51, %v6816_v56 }
 0x2db   :  { %8474 = vst [vmem:[#allocation50_spill] sm:$0xff] %v6838_v34  ;;  %v2471_v45 = vadd.f32 %v2470_v7, %v2400_v24  ;;  %v1837_v63 = vmax.f32 %v8475_v35, %v6720_v2  ;;  %v6850_v18 = vmax.f32 %v2064_v55, 0.0  ;;  %v2324_v28 = vadd.f32 %v2323_v62, %v2253_v53 }
 0x2dc   :  { %v6852_v1 = vmax.f32 %v2029_v50, 0.0  ;;  %v2359_v39 = vadd.f32 %v2358_v43, %v2287_v41  ;;  %v2289_v8 = vmul.f32 %v2181_v16, %v6836_v25  ;;  %v2256_v11 = vmul.f32 %v2184_v31, %v6838_v34 }
 0x2dd   :  { %v2472_v49 = vadd.f32 %v2471_v45, %v2401_v5  ;;  %v1909_v29 = vmax.f32 %v1837_v63, %v6791_v20  ;;  %v2066_v36 = vadd.f32 %v6104_v9, %v1982_v23  ;;  %v2325_v52 = vadd.f32 %v2324_v28, %v2254_v51  ;;  %v1735_v2 = vpop.f32.mrf.mxu2 }
 0x2de   :  { %8476 = vst [vmem:[#allocation53_spill] sm:$0xff] %v6852_v1  ;;  %v2255_v24 = vmul.f32 %v2183_v0, %v6852_v1  ;;  %v2507_v48 = vadd.f32 %v2506_v3, %v2435_v10  ;;  %v2290_v43 = vmul.f32 %v2182_v40, %v6850_v18  ;;  %v2436_v16 = vmul.f32 %v2288_v33, %v6829_v38 }
 0x2df   :  { %v2473_v12 = vadd.f32 %v2472_v49, %v2402_v30  ;;  %v1981_v6 = vmax.f32 %v1909_v29, %v1735_v2  ;;  %v2437_v15 = vmul.f32 %v2289_v8, %v6836_v25  ;;  %v2404_v20 = vmul.f32 %v2256_v11, %v6838_v34 }
 0x2e0   :  { %v2326_v37 = vadd.f32 %v2325_v52, %v2255_v24  ;;  %v2403_v53 = vmul.f32 %v2255_v24, %v6852_v1  ;;  %v2360_v7 = vadd.f32 %v2359_v39, %v2288_v33  ;;  %v6864_v41 = vmax.f32 %v2066_v36, 0.0  ;;  %v8478_v24 = vld [vmem:[#allocation75_spill] sm:$0xff]  ;;  %v8521_v1 = vld [vmem:[#allocation29_spill] sm:$0xff]  ;;  %v8525_v52 = vld [vmem:[#allocation40_spill] sm:$0xff] }
 0x2e1   :  { %v2065_v27 = vadd.f32 %v6104_v9, %v1981_v6  ;;  %v2508_v3 = vadd.f32 %v2507_v48, %v2436_v16  ;;  %v2438_v40 = vmul.f32 %v2290_v43, %v6850_v18  ;;  %v8177_v33 = vmov 2   ;;  %v4728_v9 = vld [vmem:[%s8009_s6 + $0x8] sm:$0xff]  ;;  %v8479_v48 = vld [vmem:[#allocation81_spill] sm:$0xff]  ;;  %v8481_v6 = vld [vmem:[#allocation86_spill] sm:$0xff] }
 0x2e2   :  { %v2327_v61 = vadd.f32 %v2326_v37, %v2256_v11  ;;  %v2474_v51 = vadd.f32 %v2473_v12, %v2403_v53  ;;  %v2361_v17 = vadd.f32 %v2360_v7, %v2289_v8  ;;  %v2292_v50 = vmul.f32 %v2184_v31, %v6864_v41  ;;  %4618 = vset.pattern.permute.xlu0 %v8177_v33  ;;  %v8482_v53 = vld [vmem:[#allocation90_spill] sm:$0xff]  ;;  %v8517_v12 = vld [vmem:[#allocation17_spill] sm:$0xff] }
 0x2e3   :  { %v6867_v59 = vmax.f32 %v2065_v27, 0.0  ;;  %v2509_v5 = vadd.f32 %v2508_v3, %v2437_v15  ;;  %2774 = vperm.xlu0 %4618, %v4728_v9   ;;  %4617 = vset.pattern.permute.xlu2 %v8177_v33  ;;  %v8477_v28 = vmov 0   ;;  %v8483_v15 = vld [vmem:[#allocation92_spill] sm:$0xff]  ;;  %v8484_v7 = vld [vmem:[#allocation94_spill] sm:$0xff]  ;;  %v8495_v33 = vld [vmem:[#allocation15_spill] sm:$0xff] }
 0x2e4   :  { %2328 = vadd.xlane.f32.xlu1 %v2327_v61  ;;  %v2475_v55 = vadd.f32 %v2474_v51, %v2404_v20  ;;  %v2362_v62 = vadd.f32 %v2361_v17, %v2290_v43  ;;  %v8485_v61 = vld [vmem:[#allocation96_spill] sm:$0xff]  ;;  %v8486_v3 = vld [vmem:[#allocation6_spill] sm:$0xff]  ;;  %v8523_v27 = vld [vmem:[#allocation33_spill] sm:$0xff] }
 0x2e5   :  { %v2291_v23 = vmul.f32 %v2183_v0, %v6867_v59  ;;  %v2510_v45 = vadd.f32 %v2509_v5, %v2438_v40  ;;  %v2440_v0 = vmul.f32 %v2292_v50, %v6864_v41  ;;  %v8487_v40 = vld [vmem:[#allocation9_spill] sm:$0xff]  ;;  %v8516_v20 = vld [vmem:[#allocation16_spill] sm:$0xff] }
 0x2e6   :  { %2476 = vadd.xlane.f32.xlu2 %v2475_v55  ;;  %v8499_v5 = vld [vmem:[#allocation41_spill] sm:$0xff] }
 0x2e7   :  { %v2363_v10 = vadd.f32 %v2362_v62, %v2291_v23  ;;  %v2439_v30 = vmul.f32 %v2291_v23, %v6867_v59  ;;  %v8488_v23 = vld [vmem:[#allocation2_spill] sm:$0xff]  ;;  %v8489_v62 = vld [vmem:[#allocation3_spill] sm:$0xff] }
 0x2e9   :  { %v2364_v35 = vadd.f32 %v2363_v10, %v2292_v50  ;;  %v2511_v63 = vadd.f32 %v2510_v45, %v2439_v30  ;;  %v8490_v30 = vld [vmem:[#allocation11_spill] sm:$0xff] }
 0x2ea   :  { %v8496_v45 = vld [vmem:[#allocation27_spill] sm:$0xff] }
 0x2eb   :  { %v2512_v31 = vadd.f32 %v2511_v63, %v2440_v0  ;;  %4621 = vset.pattern.permute.xlu0 %v8477_v28  ;;  %v8492_v63 = vld [vmem:[#allocation19_spill] sm:$0xff] }
 0x2ec   :  { %2365 = vadd.xlane.f32.xlu1 %v2364_v35  ;;  %v8491_v35 = vld [vmem:[#allocation12_spill] sm:$0xff]  ;;  %v8498_v50 = vld [vmem:[#allocation35_spill] sm:$0xff] }
 0x2ee   :  { %2513 = vadd.xlane.f32.xlu2 %v2512_v31 }
 0x305   :  { %2694 = vperm.xlu1 %4616, %v4728_v9   ;;  %v8497_v9 = vld [vmem:[#allocation28_spill] sm:$0xff] }
 0x306   :  { %2770 = vperm.xlu2 %4617, %v6805_v58   ;;  %v8480_v58 = vld [vmem:[#allocation84_spill] sm:$0xff] }
 0x30d   :  { %4620 = vset.pattern.permute.xlu1 %v8477_v28 }
 0x30e   :  { %4619 = vset.pattern.permute.xlu2 %v8477_v28 }
 0x357   :  { %v2329_v39 = vpop.xlane.xlu1 %2328 }
 0x358   :  { %v6883_v8 = vmul.f32 0.00086805556, %v2329_v39  ;;  %v8493_v39 = vld [vmem:[#allocation20_spill] sm:$0xff] }
 0x359   :  { %v2477_v11 = vpop.xlane.xlu2 %2476 }
 0x35a   :  { %v2515_v49 = vmul.f32 0.00086805556, %v2477_v11  ;;  %v2517_v29 = vmul.f32 %v6883_v8, %v6883_v8  ;;  %v8528_v34 = vsub.f32 %v8478_v24, %v6883_v8  ;;  %v8531_v11 = vsub.f32 %v8481_v6, %v6883_v8 }
 0x35b   :  { %v8535_v6 = vsub.f32 %v8485_v61, %v6883_v8 }
 0x35c   :  { %v2519_v36 = vsub.f32 %v2515_v49, %v2517_v29  ;;  %v8494_v29 = vld [vmem:[#allocation23_spill] sm:$0xff] }
 0x35e   :  { %v2521_v16 = vmax.f32 %v2519_v36, 0.0  ;;  %v8500_v36 = vld [vmem:[#allocation36_spill] sm:$0xff] }
 0x35f   :  { %v2366_v17 = vpop.xlane.xlu1 %2365 }
 0x360   :  { %v6911_v10 = vadd.f32 1e-05, %v2521_v16  ;;  %v6926_v60 = vmul.f32 0.00086805556, %v2366_v17  ;;  %v8501_v16 = vld [vmem:[#allocation37_spill] sm:$0xff] }
 0x361   :  { %v2514_v49 = vpop.xlane.xlu2 %2513  ;;  %v8502_v17 = vld [vmem:[#allocation45_spill] sm:$0xff] }
 0x362   :  { %4707 = vrsqrt.f32 %v6911_v10  ;;  %v2516_v43 = vmul.f32 0.00086805556, %v2514_v49  ;;  %v2518_v0 = vmul.f32 %v6926_v60, %v6926_v60  ;;  %vm2603_vm2 = vweird.f32 %v6911_v10 }
 0x364   :  { %v2520_v31 = vsub.f32 %v2516_v43, %v2518_v0  ;;  %v8524_v43 = vld [vmem:[#allocation42_spill] sm:$0xff] }
 0x366   :  { %v2522_v51 = vmax.f32 %v2520_v31, 0.0  ;;  %v8522_v31 = vld [vmem:[#allocation30_spill] sm:$0xff] }
 0x368   :  { %v4708_v37 = vpop.eup %4707  ;;  %v7014_v55 = vadd.f32 1e-05, %v2522_v51 }
 0x369   :  { %v2598_v56 = vmul.f32 %v4708_v37, %v6911_v10  ;;  %vm2604_vm3 = vweird.f32 %v4708_v37 }
 0x36a   :  { %vm2605_vm4 = vmor %vm2603_vm2, %vm2604_vm3  ;;  %4709 = vrsqrt.f32 %v7014_v55  ;;  %vm2613_vm5 = vweird.f32 %v7014_v55  ;;  %vm3808_vm2 = vcmask 1040384   ;;  %vm3804_vm3 = vcmask 408576  }
 0x36b   :  { %v2599_v46 = vmul.f32 %v4708_v37, %v2598_v56 }
 0x36d   :  { %v2600_v56 = vmul.f32 0.5, %v2599_v46 }
 0x36f   :  { %v2601_v28 = vsub.f32 1.5, %v2600_v56  ;;  %v8526_v56 = vld [vmem:[#allocation76_spill] sm:$0xff] }
 0x371   :  { %v2602_v46 = vmul.f32 %v4708_v37, %v2601_v28  ;;  %v8529_v28 = vsub.f32 %v8479_v48, %v6883_v8  ;;  %v8533_v48 = vsub.f32 %v8483_v15, %v6883_v8  ;;  %v8538_v15 = vsub.f32 %v8487_v40, %v6883_v8 }
 0x372   :  { %v8542_v40 = vsub.f32 %v8491_v35, %v6883_v8  ;;  %v8547_v35 = vsub.f32 %v8495_v33, %v6883_v8  ;;  %v8551_v33 = vsub.f32 %v8499_v5, %v6883_v8  ;;  %v8556_v5 = vsub.f32 %v6670_v13, %v6883_v8 }
 0x373   :  { %v7040_v2 = vsel %vm2605_vm4, %v4708_v37, %v2602_v46  ;;  %v8530_v46 = vsub.f32 %v8480_v58, %v6883_v8  ;;  %v8534_v58 = vsub.f32 %v8484_v7, %v6883_v8  ;;  %v8539_v7 = vsub.f32 %v8488_v23, %v6883_v8 }
 0x374   :  { %v7051_v0 = vmul.f32 %v7040_v2, %v8528_v34  ;;  %v7057_v37 = vmul.f32 %v7040_v2, %v8529_v28  ;;  %v2621_v24 = vmul.f32 %v7040_v2, %v8531_v11  ;;  %v8532_v34 = vsub.f32 %v8482_v53, %v6883_v8 }
 0x375   :  { %v7063_v10 = vmul.f32 %v7040_v2, %v8530_v46  ;;  %v2623_v28 = vmul.f32 %v7040_v2, %v8533_v48  ;;  %v2624_v46 = vmul.f32 %v7040_v2, %v8534_v58  ;;  %v7085_v11 = vmul.f32 %v7040_v2, %v8535_v6 }
 0x376   :  { %v2622_v49 = vmul.f32 %v7040_v2, %v8532_v34  ;;  %v8537_v53 = vsub.f32 %v8486_v3, %v6883_v8  ;;  %v7097_v48 = vmul.f32 %v7040_v2, %v8538_v15  ;;  %v7103_v61 = vmul.f32 %v7040_v2, %v8539_v7 }
 0x377   :  { %8536 = vst [vmem:[#allocation56_spill] sm:$0xff] %v7085_v11  ;;  %v8540_v58 = vsub.f32 %v8489_v62, %v6883_v8  ;;  %v8541_v6 = vsub.f32 %v8490_v30, %v6883_v8  ;;  %v2631_v15 = vmul.f32 %v7040_v2, %v8542_v40  ;;  %v8543_v23 = vsub.f32 %v8492_v63, %v6883_v8 }
 0x378   :  { %v7091_v34 = vmul.f32 %v7040_v2, %v8537_v53  ;;  %v8544_v62 = vsub.f32 %v8493_v39, %v6883_v8  ;;  %v8546_v30 = vsub.f32 %v8494_v29, %v6883_v8  ;;  %v7137_v40 = vmul.f32 %v7040_v2, %v8547_v35  ;;  %v4710_v29 = vpop.eup %4709 }
 0x379   :  { %v2629_v3 = vmul.f32 %v7040_v2, %v8540_v58  ;;  %v2630_v53 = vmul.f32 %v7040_v2, %v8541_v6  ;;  %v2632_v7 = vmul.f32 %v7040_v2, %v8543_v23  ;;  %v8548_v63 = vsub.f32 %v8496_v45, %v6883_v8 }
 0x37a   :  { %v7125_v58 = vmul.f32 %v7040_v2, %v8544_v62  ;;  %v7131_v6 = vmul.f32 %v7040_v2, %v8546_v30  ;;  %v8549_v23 = vsub.f32 %v8497_v9, %v6883_v8  ;;  %v8550_v30 = vsub.f32 %v8498_v50, %v6883_v8 }
 0x37b   :  { %v2636_v39 = vmul.f32 %v7040_v2, %v8548_v63  ;;  %v2639_v35 = vmul.f32 %v7040_v2, %v8551_v33  ;;  %v8552_v45 = vsub.f32 %v8500_v36, %v6883_v8  ;;  %v8553_v9 = vsub.f32 %v8501_v16, %v6883_v8 }
 0x37c   :  { %8545 = vst [vmem:[#allocation52_spill] sm:$0xff] %v7125_v58  ;;  %v2637_v62 = vmul.f32 %v7040_v2, %v8549_v23  ;;  %v2638_v25 = vmul.f32 %v7040_v2, %v8550_v30  ;;  %v8555_v50 = vsub.f32 %v8502_v17, %v6883_v8  ;;  %v7175_v33 = vmul.f32 %v7040_v2, %v8556_v5  ;;  %v7185_v17 = vpop.permute.xlu0 %2690  ;;  %v8565_v58 = vld [vmem:[#allocation48_spill] sm:$0xff] }
 0x37d   :  { %v2640_v63 = vmul.f32 %v7040_v2, %v8552_v45  ;;  %v7163_v23 = vmul.f32 %v7040_v2, %v8553_v9  ;;  %v8557_v36 = vsub.f32 %v6698_v57, %v6883_v8  ;;  %v8558_v45 = vsub.f32 %v6716_v4, %v6883_v8  ;;  %v8562_v4 = vld [vmem:[#allocation44_spill] sm:$0xff] }
 0x37e   :  { %v7169_v30 = vmul.f32 %v7040_v2, %v8555_v50  ;;  %v8559_v50 = vsub.f32 %v6755_v44, %v6883_v8  ;;  %v8560_v5 = vsub.f32 %v6764_v32, %v6883_v8  ;;  %v8561_v57 = vsub.f32 %v6770_v19, %v6883_v8  ;;  %v8568_v32 = vld [vmem:[#allocation53_spill] sm:$0xff]  ;;  %v8571_v19 = vld [vmem:[#allocation50_spill] sm:$0xff] }
 0x37f   :  { %8554 = vst [vmem:[#allocation55_spill] sm:$0xff] %v7163_v23  ;;  %v2644_v16 = vmul.f32 %v7040_v2, %v8557_v36  ;;  %v2645_v9 = vmul.f32 %v7040_v2, %v8558_v45  ;;  %v8563_v45 = vsub.f32 %v8562_v4, %v6883_v8  ;;  %v8566_v44 = vsub.f32 %v8565_v58, %v6883_v8  ;;  %v7225_v58 = vpop.permute.xlu2 %2770 }
 0x380   :  { %v2646_v13 = vmul.f32 %v7040_v2, %v8559_v50  ;;  %v2647_v23 = vmul.f32 %v7040_v2, %v8560_v5  ;;  %v2648_v36 = vmul.f32 %v7040_v2, %v8561_v57  ;;  %v8569_v5 = vsub.f32 %v8568_v32, %v6883_v8 }
 0x381   :  { %v7203_v22 = vmul.f32 %v7040_v2, %v8563_v45  ;;  %v7209_v50 = vmul.f32 %v7040_v2, %v8566_v44  ;;  %v8572_v57 = vsub.f32 %v8571_v19, %v6883_v8  ;;  %v2608_v45 = vmul.f32 %v4710_v29, %v7014_v55 }
 0x382   :  { %v7215_v11 = vmul.f32 %v7040_v2, %v8569_v5  ;;  %vm2614_vm6 = vweird.f32 %v4710_v29  ;;  %v2704_v44 = vmul.f32 %v7185_v17, %v2624_v46  ;;  %v2712_v32 = vmul.f32 %v7185_v17, %v2632_v7 }
 0x383   :  { %8564 = vst [vmem:[#allocation59_spill] sm:$0xff] %v7203_v22  ;;  %v7221_v4 = vmul.f32 %v7040_v2, %v8572_v57  ;;  %v2720_v5 = vmul.f32 %v7185_v17, %v2640_v63  ;;  %v2609_v22 = vmul.f32 %v4710_v29, %v2608_v45  ;;  %v2703_v19 = vmul.f32 %v7185_v17, %v2623_v28  ;;  %vm2615_vm7 = vmor %vm2613_vm5, %vm2614_vm6 }
 0x384   :  { %8567 = vst [vmem:[#allocation62_spill] sm:$0xff] %v7209_v50  ;;  %v2728_v50 = vmul.f32 %v7185_v17, %v2648_v36  ;;  %v2711_v57 = vmul.f32 %v7185_v17, %v2631_v15  ;;  %v2719_v46 = vmul.f32 %v7185_v17, %v2639_v35  ;;  %v2727_v45 = vmul.f32 %v7185_v17, %v2647_v23 }
 0x385   :  { %8570 = vst [vmem:[#allocation63_spill] sm:$0xff] %v7215_v11  ;;  %v7234_v11 = vadd.f32 %v7225_v58, %v2704_v44  ;;  %v7240_v51 = vadd.f32 %v7225_v58, %v2720_v5  ;;  %v2610_v7 = vmul.f32 0.5, %v2609_v22  ;;  %v7247_v36 = vadd.f32 %v7225_v58, %v2703_v19 }
 0x386   :  { %8573 = vst [vmem:[#allocation64_spill] sm:$0xff] %v7221_v4  ;;  %v7237_v4 = vadd.f32 %v7225_v58, %v2712_v32  ;;  %v7244_v63 = vadd.f32 %v7225_v58, %v2728_v50  ;;  %v7250_v28 = vadd.f32 %v7225_v58, %v2711_v57  ;;  %v7253_v15 = vadd.f32 %v7225_v58, %v2719_v46 }
 0x387   :  { %v2702_v44 = vmul.f32 %v7185_v17, %v2622_v49  ;;  %v2710_v32 = vmul.f32 %v7185_v17, %v2630_v53  ;;  %v2611_v35 = vsub.f32 1.5, %v2610_v7  ;;  %v2718_v22 = vmul.f32 %v7185_v17, %v2638_v25 }
 0x388   :  { %v2726_v50 = vmul.f32 %v7185_v17, %v2646_v13  ;;  %v2701_v5 = vmul.f32 %v7185_v17, %v2621_v24  ;;  %v7262_v19 = vadd.f32 %v7225_v58, %v2727_v45  ;;  %v2709_v49 = vmul.f32 %v7185_v17, %v2629_v3 }
 0x389   :  { %v7265_v57 = vadd.f32 %v7225_v58, %v2702_v44  ;;  %v7268_v46 = vadd.f32 %v7225_v58, %v2710_v32  ;;  %v2612_v23 = vmul.f32 %v4710_v29, %v2611_v35  ;;  %v7272_v53 = vadd.f32 %v7225_v58, %v2718_v22  ;;  %v7296_v32 = vpop.permute.xlu1 %2694 }
 0x38a   :  { %v7275_v25 = vadd.f32 %v7225_v58, %v2726_v50  ;;  %v7278_v24 = vadd.f32 %v7225_v58, %v2701_v5  ;;  %v7284_v13 = vadd.f32 %v7225_v58, %v2709_v49  ;;  %v2717_v7 = vmul.f32 %v7185_v17, %v2637_v62 }
 0x38b   :  { %v7288_v3 = vmul.f32 %v7185_v17, %v2645_v9  ;;  %v7292_v45 = vmul.f32 %v7185_v17, %v7063_v10  ;;  %v7294_v44 = vsel %vm2615_vm7, %v4710_v29, %v2612_v23  ;;  %v7300_v55 = vmul.f32 %v7185_v17, %v7103_v61  ;;  %v8574_v9 = vld [vmem:[#allocation95_spill] sm:$0xff] }
 0x38c   :  { %v7303_v35 = vmul.f32 %v7185_v17, %v2636_v39  ;;  %v7306_v62 = vmul.f32 %v7185_v17, %v2644_v16  ;;  %v8575_v22 = vsub.f32 %v8574_v9, %v6926_v60  ;;  %v8576_v29 = vsub.f32 %v8517_v12, %v6926_v60 }
 0x38d   :  { %v8577_v61 = vsub.f32 %v8525_v52, %v6926_v60  ;;  %v8578_v39 = vsub.f32 %v6829_v38, %v6926_v60  ;;  %v8579_v49 = vsub.f32 %v6850_v18, %v6926_v60  ;;  %v8581_v12 = vsub.f32 %v6867_v59, %v6926_v60  ;;  %v7342_v38 = vpop.permute.xlu0 %2774 }
 0x38e   :  { %v2660_v10 = vmul.f32 %v7294_v44, %v8575_v22  ;;  %v2668_v50 = vmul.f32 %v7294_v44, %v8576_v29  ;;  %v8583_v52 = vsub.f32 %v6864_v41, %v6926_v60  ;;  %v8584_v29 = vld [vmem:[#allocation93_spill] sm:$0xff]  ;;  %vm3826_vm4 = vcmask 64512  }
 0x38f   :  { %v2676_v5 = vmul.f32 %v7294_v44, %v8577_v61  ;;  %v2684_v16 = vmul.f32 %v7294_v44, %v8578_v39  ;;  %v7328_v23 = vmul.f32 %v7294_v44, %v8579_v49  ;;  %v7334_v9 = vmul.f32 %v7294_v44, %v8581_v12 }
 0x390   :  { %v7340_v22 = vmul.f32 %v7294_v44, %v8583_v52  ;;  %v8585_v18 = vsub.f32 %v8584_v29, %v6926_v60  ;;  %v2740_v39 = vmul.f32 %v7296_v32, %v2660_v10  ;;  %v2748_v59 = vmul.f32 %v7296_v32, %v2668_v50 }
 0x391   :  { %8580 = vst [vmem:[#allocation57_spill] sm:$0xff] %v7328_v23  ;;  %v2756_v49 = vmul.f32 %v7296_v32, %v2676_v5  ;;  %v2764_v12 = vmul.f32 %v7296_v32, %v2684_v16  ;;  %v8586_v52 = vsub.f32 %v8516_v20, %v6926_v60  ;;  %v8587_v29 = vsub.f32 %v8524_v43, %v6926_v60 }
 0x392   :  { %8582 = vst [vmem:[#allocation46_spill] sm:$0xff] %v7334_v9  ;;  %v2659_v61 = vmul.f32 %v7294_v44, %v8585_v18  ;;  %v8588_v10 = vsub.f32 %v6814_v14, %v6926_v60  ;;  %v2820_v5 = vadd.f32 %v7342_v38, %v2740_v39  ;;  %v2828_v16 = vadd.f32 %v7342_v38, %v2748_v59 }
 0x393   :  { %v2667_v23 = vmul.f32 %v7294_v44, %v8586_v52  ;;  %v2675_v18 = vmul.f32 %v7294_v44, %v8587_v29  ;;  %v2844_v20 = vadd.f32 %v7342_v38, %v2764_v12  ;;  %vm3828_vm5 = vcmask 58368  }
 0x394   :  { %v2739_v41 = vmul.f32 %v7296_v32, %v2659_v61  ;;  %v2683_v50 = vmul.f32 %v7294_v44, %v8588_v10  ;;  %v2836_v61 = vadd.f32 %v7342_v38, %v2756_v49  ;;  %v2856_v14 = vpack.c.bf16 %v2820_v5, %v7234_v11 }
 0x395   :  { %v2747_v9 = vmul.f32 %v7296_v32, %v2667_v23  ;;  %v2755_v43 = vmul.f32 %v7296_v32, %v2675_v18  ;;  %v2864_v10 = vpack.c.bf16 %v2828_v16, %v7237_v4  ;;  %v2880_v59 = vpack.c.bf16 %v2844_v20, %v7244_v63  ;;  %v8589_v18 = vld [vmem:[#allocation91_spill] sm:$0xff]  ;;  %v8591_v4 = vld [vmem:[#allocation13_spill] sm:$0xff] }
 0x396   :  { %v2819_v52 = vadd.f32 %v7342_v38, %v2739_v41  ;;  %v2763_v29 = vmul.f32 %v7296_v32, %v2683_v50  ;;  %v2872_v39 = vpack.c.bf16 %v2836_v61, %v7240_v51  ;;  %3090 = vmatpush.bf16.msrb.mxu0 %v2856_v14  ;;  %v8590_v50 = vsub.f32 %v8589_v18, %v6926_v60  ;;  %v8595_v14 = vld [vmem:[#allocation87_spill] sm:$0xff] }
 0x397   :  { %v2827_v12 = vadd.f32 %v7342_v38, %v2747_v9  ;;  %v2835_v41 = vadd.f32 %v7342_v38, %v2755_v43  ;;  %3129 = vmatpush.bf16.msrb.mxu1 %v2864_v10  ;;  %v8592_v51 = vsub.f32 %v8591_v4, %v6926_v60  ;;  %3207 = vmatpush.bf16.msrb.mxu3 %v2880_v59 }
 0x398   :  { %v2855_v49 = vpack.c.bf16 %v2819_v52, %v7247_v36  ;;  %v2843_v23 = vadd.f32 %v7342_v38, %v2763_v29  ;;  %v2658_v11 = vmul.f32 %v7294_v44, %v8590_v50  ;;  %v8593_v36 = vsub.f32 %v8523_v27, %v6926_v60  ;;  %3168 = vmatpush.bf16.msra.mxu2 %v2872_v39  ;;  %v8597_v39 = vld [vmem:[#allocation8_spill] sm:$0xff] }
 0x399   :  { %v2666_v63 = vmul.f32 %v7294_v44, %v8592_v51  ;;  %v2863_v5 = vpack.c.bf16 %v2827_v12, %v7250_v28  ;;  %v2871_v16 = vpack.c.bf16 %v2835_v41, %v7253_v15  ;;  %v8594_v29 = vsub.f32 %v6772_v54, %v6926_v60 }
 0x39a   :  { %v2674_v9 = vmul.f32 %v7294_v44, %v8593_v36  ;;  %v2879_v61 = vpack.c.bf16 %v2843_v23, %v7262_v19  ;;  %v2738_v20 = vmul.f32 %v7296_v32, %v2658_v11  ;;  %v8596_v10 = vsub.f32 %v8595_v14, %v6926_v60  ;;  %3091 = vmatpush.bf16.msrb.mxu0 %v2855_v49 }
 0x39b   :  { %v2746_v52 = vmul.f32 %v7296_v32, %v2666_v63  ;;  %v2682_v27 = vmul.f32 %v7294_v44, %v8594_v29  ;;  %v8598_v15 = vsub.f32 %v8597_v39, %v6926_v60  ;;  %v8599_v59 = vsub.f32 %v8522_v31, %v6926_v60  ;;  %3130 = vmatpush.bf16.msrb.mxu1 %v2863_v5 }
 0x39c   :  { %v2754_v43 = vmul.f32 %v7296_v32, %v2674_v9  ;;  %v2657_v28 = vmul.f32 %v7294_v44, %v8596_v10  ;;  %v2797_v41 = vadd.f32 %v7225_v58, %v2717_v7  ;;  %v2818_v54 = vadd.f32 %v7342_v38, %v2738_v20  ;;  %3169 = vmatpush.bf16.msra.mxu2 %v2871_v16  ;;  %v8603_v10 = vld [vmem:[#allocation5_spill] sm:$0xff] }
 0x39d   :  { %v2665_v19 = vmul.f32 %v7294_v44, %v8598_v15  ;;  %v2673_v12 = vmul.f32 %v7294_v44, %v8599_v59  ;;  %v2826_v23 = vadd.f32 %v7342_v38, %v2746_v52  ;;  %3208 = vmatpush.bf16.msrb.mxu3 %v2879_v61  ;;  %v2762_v50 = vmul.f32 %v7296_v32, %v2682_v27 }
 0x39e   :  { %v2834_v18 = vadd.f32 %v7342_v38, %v2754_v43  ;;  %v2737_v11 = vmul.f32 %v7296_v32, %v2657_v28  ;;  %v2854_v4 = vpack.c.bf16 %v2818_v54, %v7265_v57  ;;  %v8600_v5 = vsub.f32 %v6733_v47, %v6926_v60 }
 0x39f   :  { %v2745_v31 = vmul.f32 %v7296_v32, %v2665_v19  ;;  %v2862_v7 = vpack.c.bf16 %v2826_v23, %v7268_v46  ;;  %v2753_v51 = vmul.f32 %v7296_v32, %v2673_v12  ;;  %v2842_v63 = vadd.f32 %v7342_v38, %v2762_v50  ;;  %v8607_v23 = vld [vmem:[#allocation82_spill] sm:$0xff] }
 0x3a0   :  { %v2870_v49 = vpack.c.bf16 %v2834_v18, %v7272_v53  ;;  %v2817_v36 = vadd.f32 %v7342_v38, %v2737_v11  ;;  %v2681_v16 = vmul.f32 %v7294_v44, %v8600_v5  ;;  %3092 = vmatpush.bf16.msrb.mxu0 %v2854_v4  ;;  %v2805_v46 = vadd.f32 %v7225_v58, %v7288_v3  ;;  %v8601_v53 = vld [vmem:[#allocation85_spill] sm:$0xff] }
 0x3a1   :  { %v2825_v9 = vadd.f32 %v7342_v38, %v2745_v31  ;;  %3131 = vmatpush.bf16.msrb.mxu1 %v2862_v7  ;;  %v2833_v57 = vadd.f32 %v7342_v38, %v2753_v51  ;;  %v8602_v61 = vsub.f32 %v8601_v53, %v6926_v60  ;;  %v2878_v52 = vpack.c.bf16 %v2842_v63, %v7275_v25 }
 0x3a2   :  { %3170 = vmatpush.bf16.msra.mxu2 %v2870_v49  ;;  %v2853_v43 = vpack.c.bf16 %v2817_v36, %v7278_v24  ;;  %v2761_v29 = vmul.f32 %v7296_v32, %v2681_v16  ;;  %v2780_v3 = vadd.f32 %v7225_v58, %v7292_v45  ;;  %v8604_v28 = vsub.f32 %v8603_v10, %v6926_v60  ;;  %v8609_v49 = vld [vmem:[#allocation7_spill] sm:$0xff] }
 0x3a3   :  { %v2656_v20 = vmul.f32 %v7294_v44, %v8602_v61  ;;  %v2861_v47 = vpack.c.bf16 %v2825_v9, %v7284_v13  ;;  %v2869_v27 = vpack.c.bf16 %v2833_v57, %v2797_v41  ;;  %3209 = vmatpush.bf16.msrb.mxu3 %v2878_v52  ;;  %v2788_v24 = vadd.f32 %v7225_v58, %v7300_v55  ;;  %v8614_v10 = vld [vmem:[#allocation79_spill] sm:$0xff] }
 0x3a4   :  { %v2664_v39 = vmul.f32 %v7294_v44, %v8604_v28  ;;  %v2841_v25 = vadd.f32 %v7342_v38, %v2761_v29  ;;  %v8605_v13 = vsub.f32 %v8521_v1, %v6926_v60  ;;  %v2796_v19 = vadd.f32 %v7225_v58, %v7303_v35  ;;  %3093 = vmatpush.bf16.msrb.mxu0 %v2853_v43 }
 0x3a5   :  { %v2736_v14 = vmul.f32 %v7296_v32, %v2656_v20  ;;  %3132 = vmatpush.bf16.msrb.mxu1 %v2861_v47  ;;  %v8606_v12 = vsub.f32 %v6708_v42, %v6926_v60  ;;  %v2804_v54 = vadd.f32 %v7225_v58, %v7306_v62  ;;  %v8608_v35 = vsub.f32 %v8607_v23, %v6926_v60  ;;  %v8618_v23 = vld [vmem:[#allocation26_spill] sm:$0xff] }
 0x3a6   :  { %v2672_v15 = vmul.f32 %v7294_v44, %v8605_v13  ;;  %v2744_v59 = vmul.f32 %v7296_v32, %v2664_v39  ;;  %3171 = vmatpush.bf16.msra.mxu2 %v2869_v27  ;;  %v2877_v55 = vpack.c.bf16 %v2841_v25, %v2805_v46  ;;  %v2699_v42 = vmul.f32 %v7185_v17, %v7057_v37  ;;  %v8611_v37 = vld [vmem:[#allocation18_spill] sm:$0xff] }
 0x3a7   :  { %v2816_v45 = vadd.f32 %v7342_v38, %v2736_v14  ;;  %v2680_v41 = vmul.f32 %v7294_v44, %v8606_v12  ;;  %v2655_v18 = vmul.f32 %v7294_v44, %v8608_v35  ;;  %v8610_v62 = vsub.f32 %v8609_v49, %v6926_v60 }
 0x3a8   :  { %v2752_v1 = vmul.f32 %v7296_v32, %v2672_v15  ;;  %v2824_v11 = vadd.f32 %v7342_v38, %v2744_v59  ;;  %3210 = vmatpush.bf16.msrb.mxu3 %v2877_v55  ;;  %v2707_v63 = vmul.f32 %v7185_v17, %v7097_v48  ;;  %v2779_v5 = vadd.f32 %v7225_v58, %v2699_v42 }
 0x3a9   :  { %v2852_v50 = vpack.c.bf16 %v2816_v45, %v2780_v3  ;;  %v2760_v31 = vmul.f32 %v7296_v32, %v2680_v41  ;;  %v2735_v7 = vmul.f32 %v7296_v32, %v2655_v18  ;;  %v2663_v51 = vmul.f32 %v7294_v44, %v8610_v62 }
 0x3aa   :  { %v2832_v4 = vadd.f32 %v7342_v38, %v2752_v1  ;;  %v2860_v36 = vpack.c.bf16 %v2824_v11, %v2788_v24  ;;  %v8612_v16 = vsub.f32 %v8611_v37, %v6926_v60  ;;  %v2787_v20 = vadd.f32 %v7225_v58, %v2707_v63 }
 0x3ab   :  { %3094 = vmatpush.bf16.msrb.mxu0 %v2852_v50  ;;  %v2840_v9 = vadd.f32 %v7342_v38, %v2760_v31  ;;  %v2815_v53 = vadd.f32 %v7342_v38, %v2735_v7  ;;  %v2743_v61 = vmul.f32 %v7296_v32, %v2663_v51  ;;  %v2715_v52 = vmul.f32 %v7185_v17, %v7137_v40 }
 0x3ac   :  { %v2671_v57 = vmul.f32 %v7294_v44, %v8612_v16  ;;  %v2868_v46 = vpack.c.bf16 %v2832_v4, %v2796_v19  ;;  %3133 = vmatpush.bf16.msrb.mxu1 %v2860_v36  ;;  %v8613_v47 = vsub.f32 %v6692_v26, %v6926_v60  ;;  %v2723_v3 = vmul.f32 %v7185_v17, %v7175_v33  ;;  %v8616_v19 = vld [vmem:[#allocation4_spill] sm:$0xff] }
 0x3ad   :  { %v2876_v48 = vpack.c.bf16 %v2840_v9, %v2804_v54  ;;  %v2851_v27 = vpack.c.bf16 %v2815_v53, %v2779_v5  ;;  %v2823_v14 = vadd.f32 %v7342_v38, %v2743_v61  ;;  %v8615_v28 = vsub.f32 %v8614_v10, %v6926_v60  ;;  %v8622_v9 = vld [vmem:[#allocation78_spill] sm:$0xff]  ;;  %v8626_v61 = vld [vmem:[#allocation56_spill] sm:$0xff] }
 0x3ae   :  { %v2751_v43 = vmul.f32 %v7296_v32, %v2671_v57  ;;  %v2679_v29 = vmul.f32 %v7294_v44, %v8613_v47  ;;  %3172 = vmatpush.bf16.msra.mxu2 %v2868_v46  ;;  %v2795_v40 = vadd.f32 %v7225_v58, %v2715_v52  ;;  %v2698_v24 = vmul.f32 %v7185_v17, %v7051_v0  ;;  %v8624_v57 = vld [vmem:[#allocation97_spill] sm:$0xff] }
 0x3af   :  { %v2654_v39 = vmul.f32 %v7294_v44, %v8615_v28  ;;  %3211 = vmatpush.bf16.msrb.mxu3 %v2876_v48  ;;  %3095 = vmatpush.bf16.msrb.mxu0 %v2851_v27  ;;  %v2859_v13 = vpack.c.bf16 %v2823_v14, %v2787_v20  ;;  %v2803_v15 = vadd.f32 %v7225_v58, %v2723_v3  ;;  %v8627_v48 = vld [vmem:[#allocation25_spill] sm:$0xff]  ;;  %v8629_v14 = vld [vmem:[#allocation52_spill] sm:$0xff] }
 0x3b0   :  { %v2831_v25 = vadd.f32 %v7342_v38, %v2751_v43  ;;  %v2759_v26 = vmul.f32 %v7296_v32, %v2679_v29  ;;  %v8617_v45 = vsub.f32 %v8616_v19, %v6926_v60  ;;  %v2778_v55 = vadd.f32 %v7225_v58, %v2698_v24 }
 0x3b1   :  { %v2734_v33 = vmul.f32 %v7296_v32, %v2654_v39  ;;  %v2706_v1 = vmul.f32 %v7185_v17, %v7091_v34  ;;  %3134 = vmatpush.bf16.msrb.mxu1 %v2859_v13  ;;  %v8619_v35 = vsub.f32 %v8618_v23, %v6926_v60  ;;  %v2714_v50 = vmul.f32 %v7185_v17, %v7131_v6 }
 0x3b2   :  { %v2662_v59 = vmul.f32 %v7294_v44, %v8617_v45  ;;  %v2867_v12 = vpack.c.bf16 %v2831_v25, %v2795_v40  ;;  %v2839_v41 = vadd.f32 %v7342_v38, %v2759_v26  ;;  %v8620_v34 = vsub.f32 %v6680_v21, %v6926_v60  ;;  %v4312_v25 = vld [vmem:[%s8011_s3] sm:$0xf]  ;;  %v4555_v26 = vld [vmem:[%s8011_s3 + $0x10] sm:$0xf0]  ;;  %v8632_v45 = vld [vmem:[#allocation55_spill] sm:$0xff] }
 0x3b3   :  { %v2814_v0 = vadd.f32 %v7342_v38, %v2734_v33  ;;  %v2670_v18 = vmul.f32 %v7294_v44, %v8619_v35  ;;  %v2786_v31 = vadd.f32 %v7225_v58, %v2706_v1  ;;  %v2722_v4 = vmul.f32 %v7185_v17, %v7169_v30 }
 0x3b4   :  { %v2742_v54 = vmul.f32 %v7296_v32, %v2662_v59  ;;  %3173 = vmatpush.bf16.msra.mxu2 %v2867_v12  ;;  %v2875_v11 = vpack.c.bf16 %v2839_v41, %v2803_v15  ;;  %v2678_v42 = vmul.f32 %v7294_v44, %v8620_v34  ;;  %v2794_v51 = vadd.f32 %v7225_v58, %v2714_v50  ;;  %v8630_v15 = vld [vmem:[#allocation43_spill] sm:$0xff]  ;;  %v4553_v12 = vld [vmem:[%s8011_s3 + $0x4] sm:$0xf]  ;;  %v4314_v41 = vld [vmem:[%s8011_s3 + $0x14] sm:$0xf0] }
 0x3b5   :  { %v2850_v7 = vpack.c.bf16 %v2814_v0, %v2778_v55  ;;  %v2750_v62 = vmul.f32 %v7296_v32, %v2670_v18  ;;  %v2802_v63 = vadd.f32 %v7225_v58, %v2722_v4  ;;  %v8621_v21 = vsub.f32 %v8526_v56, %v6883_v8  ;;  %v4320_v55 = vld [vmem:[%s8011_s3 + $0x8] sm:$0xf]  ;;  %v4556_v18 = vld [vmem:[%s8011_s3 + $0x18] sm:$0xf0]  ;;  %v4554_v50 = vld [vmem:[%s8011_s3 + $0xc] sm:$0xf] }
 0x3b6   :  { %v2822_v49 = vadd.f32 %v7342_v38, %v2742_v54  ;;  %3212 = vmatpush.bf16.msrb.mxu3 %v2875_v11  ;;  %v2758_v6 = vmul.f32 %v7296_v32, %v2678_v42  ;;  %v8623_v30 = vsub.f32 %v8622_v9, %v6926_v60  ;;  %v8625_v46 = vsub.f32 %v8624_v57, %v6926_v60  ;;  %v8633_v54 = vld [vmem:[#allocation64_spill] sm:$0xff]  ;;  %v4322_v11 = vld [vmem:[%s8011_s3 + $0x1c] sm:$0xf0]  ;;  %v8637_v57 = vld [vmem:[#allocation57_spill] sm:$0xff] }
 0x3b7   :  { %v2617_v36 = vmul.f32 %v7040_v2, %v8621_v21  ;;  %3096 = vmatpush.bf16.msrb.mxu0 %v2850_v7  ;;  %v2830_v16 = vadd.f32 %v7342_v38, %v2750_v62  ;;  %v2705_v20 = vmul.f32 %v7185_v17, %v8626_v61  ;;  %v8628_v52 = vsub.f32 %v8627_v48, %v6926_v60  ;;  %v8634_v21 = vld [vmem:[#allocation63_spill] sm:$0xff] }
 0x3b8   :  { %v2653_v5 = vmul.f32 %v7294_v44, %v8623_v30  ;;  %v2858_v37 = vpack.c.bf16 %v2822_v49, %v2786_v31  ;;  %v2661_v53 = vmul.f32 %v7294_v44, %v8625_v46  ;;  %v2838_v8 = vadd.f32 %v7342_v38, %v2758_v6  ;;  %v8635_v30 = vld [vmem:[#allocation46_spill] sm:$0xff] }
 0x3b9   :  { %v2697_v2 = vmul.f32 %v7185_v17, %v2617_v36  ;;  %v2669_v43 = vmul.f32 %v7294_v44, %v8628_v52  ;;  %v2866_v47 = vpack.c.bf16 %v2830_v16, %v2794_v51  ;;  %v2785_v27 = vadd.f32 %v7225_v58, %v2705_v20  ;;  %v8638_v20 = vld [vmem:[#allocation49_spill] sm:$0xff] }
 0x3ba   :  { %v2733_v56 = vmul.f32 %v7296_v32, %v2653_v5  ;;  %3135 = vmatpush.bf16.msrb.mxu1 %v2858_v37  ;;  %v2741_v29 = vmul.f32 %v7296_v32, %v2661_v53  ;;  %v2713_v3 = vmul.f32 %v7185_v17, %v8629_v14  ;;  %v2874_v10 = vpack.c.bf16 %v2838_v8, %v2802_v63  ;;  %v8636_v37 = vld [vmem:[#allocation62_spill] sm:$0xff] }
 0x3bb   :  { %v2777_v28 = vadd.f32 %v7225_v58, %v2697_v2  ;;  %v2749_v40 = vmul.f32 %v7296_v32, %v2669_v43  ;;  %3174 = vmatpush.bf16.msra.mxu2 %v2866_v47  ;;  %v8631_v33 = vsub.f32 %v8630_v15, %v6926_v60  ;;  %v2721_v59 = vmul.f32 %v7185_v17, %v8632_v45  ;;  %v4352_v15 = vld [vmem:[%s8011_s3 + $0x50] sm:$0xf]  ;;  %v4354_v45 = vld [vmem:[%s8011_s3 + $0x64] sm:$0xf0] }
 0x3bc   :  { %v2813_v39 = vadd.f32 %v7342_v38, %v2733_v56  ;;  %v2821_v24 = vadd.f32 %v7342_v38, %v2741_v29  ;;  %v2793_v13 = vadd.f32 %v7225_v58, %v2713_v3  ;;  %3213 = vmatpush.bf16.msrb.mxu3 %v2874_v10  ;;  %v2732_v23 = vmul.f32 %v7185_v17, %v8633_v54  ;;  %v8640_v56 = vld [vmem:[#allocation59_spill] sm:$0xff]  ;;  %v4560_v10 = vld [vmem:[%s8011_s3 + $0x38] sm:$0xf0]  ;;  %v4362_v54 = vld [vmem:[%s8011_s3 + $0x6c] sm:$0xf0] }
 0x3bd   :  { %v2677_v19 = vmul.f32 %v7294_v44, %v8631_v33  ;;  %v2829_v0 = vadd.f32 %v7342_v38, %v2749_v40  ;;  %v2768_v35 = vmul.f32 %v7296_v32, %v7340_v22  ;;  %v2801_v42 = vadd.f32 %v7225_v58, %v2721_v59  ;;  %v4332_v3 = vld [vmem:[%s8011_s3 + $0x28] sm:$0xf]  ;;  %v4565_v33 = vld [vmem:[%s8011_s3 + $0x60] sm:$0xf0]  ;;  %v4360_v59 = vld [vmem:[%s8011_s3 + $0x58] sm:$0xf] }
 0x3be   :  { %v2849_v1 = vpack.c.bf16 %v2813_v39, %v2777_v28  ;;  %v2857_v31 = vpack.c.bf16 %v2821_v24, %v2785_v27  ;;  %v4313_v4 = vor.u32 %v4555_v26, %v4312_v25  ;;  %v2812_v7 = vadd.f32 %v7225_v58, %v2732_v23  ;;  %v4561_v28 = vld [vmem:[%s8011_s3 + $0x40] sm:$0xf0]  ;;  %v4559_v26 = vld [vmem:[%s8011_s3 + $0x34] sm:$0xf]  ;;  %v4342_v24 = vld [vmem:[%s8011_s3 + $0x44] sm:$0xf0] }
 0x3bf   :  { %v2757_v34 = vmul.f32 %v7296_v32, %v2677_v19  ;;  %v2865_v22 = vpack.c.bf16 %v2829_v0, %v2793_v13  ;;  %v2848_v49 = vadd.f32 %v7342_v38, %v2768_v35  ;;  %v4317_v62 = vor.u32 %v4553_v12, %v4314_v41  ;;  %v4563_v19 = vld [vmem:[%s8011_s3 + $0x54] sm:$0xf]  ;;  %v4566_v12 = vld [vmem:[%s8011_s3 + $0x68] sm:$0xf0]  ;;  %v4564_v0 = vld [vmem:[%s8011_s3 + $0x5c] sm:$0xf] }
 0x3c0   :  { %3097 = vmatpush.bf16.msrb.mxu0 %v2849_v1  ;;  %3136 = vmatpush.bf16.msrb.mxu1 %v2857_v31  ;;  %v4321_v6 = vor.u32 %v4556_v18, %v4320_v55  ;;  %v4325_v63 = vor.u32 %v4554_v50, %v4322_v11  ;;  %v2731_v36 = vmul.f32 %v7185_v17, %v8634_v21  ;;  %v4372_v35 = vld [vmem:[%s8011_s3 + $0x78] sm:$0xf]  ;;  %v4570_v18 = vld [vmem:[%s8011_s3 + $0x88] sm:$0xf0]  ;;  %v4568_v50 = vld [vmem:[%s8011_s3 + $0x7c] sm:$0xf] }
 0x3c1   :  { %v2837_v51 = vadd.f32 %v7342_v38, %v2757_v34  ;;  %3175 = vmatpush.bf16.msra.mxu2 %v2865_v22  ;;  %v2884_v9 = vpack.c.bf16 %v2848_v49, %v2812_v7  ;;  %v2767_v5 = vmul.f32 %v7296_v32, %v8635_v30  ;;  %v2730_v16 = vmul.f32 %v7185_v17, %v8636_v37  ;;  %v4374_v11 = vld [vmem:[%s8011_s3 + $0x8c] sm:$0xf0]  ;;  %v4380_v31 = vld [vmem:[%s8011_s3 + $0x80] sm:$0xf]  ;;  %v4571_v34 = vld [vmem:[%s8011_s3 + $0x90] sm:$0xf0] }
 0x3c2   :  { %v2766_v46 = vmul.f32 %v7296_v32, %v8637_v57  ;;  %v2811_v61 = vadd.f32 %v7225_v58, %v2731_v36  ;;  %v8639_v8 = vsub.f32 %v8638_v20, %v6926_v60  ;;  %v2729_v48 = vmul.f32 %v7185_v17, %v8640_v56  ;;  %v4569_v7 = vld [vmem:[%s8011_s3 + $0x84] sm:$0xf]  ;;  %v4382_v49 = vld [vmem:[%s8011_s3 + $0x94] sm:$0xf0]  ;;  %v4400_v36 = vld [vmem:[%s8011_s3 + $0xa8] sm:$0xf] }
 0x3c3   :  { %v2873_v53 = vpack.c.bf16 %v2837_v51, %v2801_v42  ;;  %3098 = vmatmul.bf16.vlgmr.msrb.gmra.mxu0 %v4313_v4  ;;  %3137 = vmatmul.bf16.vlgmr.msrb.gmra.mxu1 %v4317_v62  ;;  %v2847_v52 = vadd.f32 %v7342_v38, %v2767_v5  ;;  %v2810_v43 = vadd.f32 %v7225_v58, %v2730_v16  ;;  %v4392_v51 = vld [vmem:[%s8011_s3 + $0xa0] sm:$0xf]  ;;  %v4394_v21 = vld [vmem:[%s8011_s3 + $0xb4] sm:$0xf0]  ;;  %v4574_v16 = vld [vmem:[%s8011_s3 + $0xac] sm:$0xf] }
 0x3c4   :  { %v2685_v2 = vmul.f32 %v7294_v44, %v8639_v8  ;;  %3250 = vmatpush.bf16.msra.mxu0 %v2884_v9  ;;  %v2846_v47 = vadd.f32 %v7342_v38, %v2766_v46  ;;  %3176 = vmatmul.bf16.vlgmr.msra.gmra.mxu2 %v4321_v6  ;;  %v2809_v60 = vadd.f32 %v7225_v58, %v2729_v48  ;;  %v4334_v58 = vld [vmem:[%s8011_s3 + $0x3c] sm:$0xf0]  ;;  %v4575_v6 = vld [vmem:[%s8011_s3 + $0xb0] sm:$0xf0]  ;;  %v4576_v9 = vld [vmem:[%s8011_s3 + $0xb8] sm:$0xf0] }
 0x3c5   :  { %3214 = vmatpush.bf16.msrb.mxu3 %v2873_v53  ;;  %v2883_v27 = vpack.c.bf16 %v2847_v52, %v2811_v61  ;;  %v4333_v39 = vor.u32 %v4560_v10, %v4332_v3  ;;  %v4345_v13 = vor.u32 %v4559_v26, %v4342_v24  ;;  %v4353_v41 = vor.u32 %v4565_v33, %v4352_v15  ;;  %v4402_v57 = vld [vmem:[%s8011_s3 + $0xbc] sm:$0xf0]  ;;  %v4412_v53 = vld [vmem:[%s8011_s3 + $0xc8] sm:$0xf]  ;;  %v4580_v61 = vld [vmem:[%s8011_s3 + $0xd8] sm:$0xf0] }
 0x3c6   :  { %v2765_v29 = vmul.f32 %v7296_v32, %v2685_v2  ;;  %v2882_v14 = vpack.c.bf16 %v2846_v47, %v2810_v43  ;;  %v4558_v32 = vld [vmem:[%s8011_s3 + $0x2c] sm:$0xf]  ;;  %v4357_v55 = vor.u32 %v4563_v19, %v4354_v45  ;;  %v4361_v1 = vor.u32 %v4566_v12, %v4360_v59  ;;  %v4414_v8 = vld [vmem:[%s8011_s3 + $0xdc] sm:$0xf0]  ;;  %v4420_v2 = vld [vmem:[%s8011_s3 + $0xd0] sm:$0xf] }
 0x3c7   :  { %v4337_v40 = vor.u32 %v4558_v32, %v4334_v58  ;;  %v4365_v23 = vor.u32 %v4564_v0, %v4362_v54  ;;  %v4373_v42 = vor.u32 %v4570_v18, %v4372_v35  ;;  %v4377_v4 = vor.u32 %v4568_v50, %v4374_v11  ;;  %v4578_v20 = vld [vmem:[%s8011_s3 + $0xcc] sm:$0xf]  ;;  %v4581_v56 = vld [vmem:[%s8011_s3 + $0xe0] sm:$0xf0]  ;;  %v4579_v47 = vld [vmem:[%s8011_s3 + $0xd4] sm:$0xf] }
 0x3c8   :  { %v2845_v44 = vadd.f32 %v7342_v38, %v2765_v29  ;;  %3215 = vmatmul.bf16.vlgmr.msrb.gmra.mxu3 %v4325_v63  ;;  %3251 = vmatpush.bf16.msra.mxu0 %v2883_v27  ;;  %v4340_v38 = vld [vmem:[%s8011_s3 + $0x30] sm:$0xf]  ;;  %v4381_v22 = vor.u32 %v4571_v34, %v4380_v31  ;;  %v4385_v62 = vor.u32 %v4569_v7, %v4382_v49  ;;  %v4573_v63 = vld [vmem:[%s8011_s3 + $0xa4] sm:$0xf]  ;;  %v4422_v29 = vld [vmem:[%s8011_s3 + $0xe4] sm:$0xf0] }
 0x3c9   :  { %v4341_v25 = vor.u32 %v4561_v28, %v4340_v38  ;;  %v4393_v30 = vor.u32 %v4575_v6, %v4392_v51  ;;  %v4397_v5 = vor.u32 %v4573_v63, %v4394_v21  ;;  %v4401_v37 = vor.u32 %v4576_v9, %v4400_v36  ;;  %v4562_v3 = vld [vmem:[%s8011_s3 + $0x48] sm:$0xf0]  ;;  %v4368_v32 = vld [vmem:[%s8011_s3 + $0x60] sm:$0xf]  ;;  %v4567_v58 = vld [vmem:[%s8011_s3 + $0x70] sm:$0xf0] }
 0x3ca   :  { %v2881_v17 = vpack.c.bf16 %v2845_v44, %v2809_v60  ;;  %v4405_v46 = vor.u32 %v4574_v16, %v4402_v57  ;;  %v4413_v48 = vor.u32 %v4580_v61, %v4412_v53  ;;  %v4417_v52 = vor.u32 %v4578_v20, %v4414_v8  ;;  %v4557_v60 = vld [vmem:[%s8011_s3 + $0x20] sm:$0xf0]  ;;  %v4388_v45 = vld [vmem:[%s8011_s3 + $0x88] sm:$0xf]  ;;  %v4572_v59 = vld [vmem:[%s8011_s3 + $0x98] sm:$0xf0] }
 0x3cb   :  { %v4421_v43 = vor.u32 %v4581_v56, %v4420_v2  ;;  %v4425_v27 = vor.u32 %v4579_v47, %v4422_v29  ;;  %v4369_v38 = vor.u32 %v4567_v58, %v4368_v32  ;;  %v4389_v12 = vor.u32 %v4572_v59, %v4388_v45  ;;  %v3295_v49 = vld [vmem:[%s8012_s7 + $0x8] sm:$0xff]  ;;  %v4428_v51 = vld [vmem:[%s8011_s3 + $0xd8] sm:$0xf]  ;;  %v3296_v63 = vld [vmem:[%s8012_s7 + $0x10] sm:$0xff] }
 0x3cc   :  { %3252 = vmatpush.bf16.msra.mxu0 %v2882_v14  ;;  %v4328_v14 = vld [vmem:[%s8011_s3 + $0x10] sm:$0xf]  ;;  %3304 = vperm.xlu1 %4620, %v3295_v49   ;;  %v4582_v6 = vld [vmem:[%s8011_s3 + $0xe8] sm:$0xf0]  ;;  %v8641_v21 = vmov 1   ;;  %v8643_v16 = vmov 0  }
 0x3cd   :  { %v4329_v44 = vor.u32 %v4557_v60, %v4328_v14  ;;  %3309 = vperm.xlu0 %4621, %v3296_v63   ;;  %v4429_v36 = vor.u32 %v4582_v6, %v4428_v51 }
 0x3d0   :  { %3253 = vmatpush.bf16.msra.mxu0 %v2881_v17  ;;  %v4348_v17 = vld [vmem:[%s8011_s3 + $0x38] sm:$0xf] }
 0x3d1   :  { %v4349_v10 = vor.u32 %v4562_v3, %v4348_v17 }
 0x3d3   :  { %3103 = vmatmul.bf16.gmra.mxu0 %v4333_v39  ;;  %3142 = vmatmul.bf16.gmra.mxu1 %v4337_v40 }
 0x3d4   :  { %3181 = vmatmul.bf16.gmra.mxu2 %v4341_v25  ;;  %4622 = vset.pattern.permute.xlu1 %v8641_v21 }
 0x3d5   :  { %4624 = vset.pattern.permute.xlu0 %v8641_v21 }
 0x3d6   :  { %3396 = vperm.xlu0 %4624, %v3296_v63  }
 0x3d8   :  { %3220 = vmatmul.bf16.gmra.mxu3 %v4345_v13 }
 0x3de   :  { %4702 = vset.pattern.permute.xlu0 %v8643_v16 }
 0x3e3   :  { %3108 = vmatmul.bf16.gmra.mxu0 %v4353_v41  ;;  %3147 = vmatmul.bf16.gmra.mxu1 %v4357_v55 }
 0x3e4   :  { %3186 = vmatmul.bf16.gmra.mxu2 %v4361_v1 }
 0x3e8   :  { %3225 = vmatmul.bf16.gmra.mxu3 %v4365_v23 }
 0x3f3   :  { %3113 = vmatmul.bf16.gmra.mxu0 %v4373_v42  ;;  %3152 = vmatmul.bf16.gmra.mxu1 %v4377_v4  ;;  %v4408_v42 = vld [vmem:[%s8011_s3 + $0xb0] sm:$0xf]  ;;  %v4577_v4 = vld [vmem:[%s8011_s3 + $0xc0] sm:$0xf0]  ;;  %s4732_s3 = smov 120  }
 0x3f4   :  { %3191 = vmatmul.bf16.gmra.mxu2 %v4381_v22  ;;  %v4409_v22 = vor.u32 %v4577_v4, %v4408_v42 }
 0x3f8   :  { %3230 = vmatmul.bf16.gmra.mxu3 %v4385_v62 }
 0x403   :  { %3118 = vmatmul.bf16.gmra.mxu0 %v4393_v30  ;;  %3157 = vmatmul.bf16.gmra.mxu1 %v4397_v5  ;;  %v3294_v30 = vld [vmem:[%s8012_s7] sm:$0xff]  ;;  %s4733_s7 = smov 88  }
 0x404   :  { %3196 = vmatmul.bf16.gmra.mxu2 %v4401_v37  ;;  %3299 = vperm.xlu2 %4619, %v3294_v30   ;;  %v8642_v37 = vmov 2  }
 0x405   :  { %3388 = vperm.xlu1 %4622, %v3294_v30  }
 0x408   :  { %3235 = vmatmul.bf16.gmra.mxu3 %v4405_v46 }
 0x40c   :  { %4623 = vset.pattern.permute.xlu2 %v8641_v21 }
 0x40d   :  { %4625 = vset.pattern.permute.xlu1 %v8642_v37  ;;  %3392 = vperm.xlu2 %4623, %v3295_v49  }
 0x40e   :  { %3403 = vperm.xlu1 %4625, %v3294_v30  }
 0x413   :  { %3123 = vmatmul.bf16.gmra.mxu0 %v4413_v48  ;;  %3162 = vmatmul.bf16.gmra.mxu1 %v4417_v52 }
 0x414   :  { %3201 = vmatmul.bf16.gmra.mxu2 %v4421_v43 }
 0x415   :  { %4626 = vset.pattern.permute.xlu2 %v8642_v37 }
 0x416   :  { %3411 = vperm.xlu1 %4625, %v3296_v63   ;;  %3407 = vperm.xlu2 %4626, %v3295_v49  }
 0x418   :  { %3240 = vmatmul.bf16.gmra.mxu3 %v4425_v27 }
 0x41e   :  { %4703 = vset.pattern.permute.xlu1 %v8643_v16  ;;  %4704 = vset.pattern.permute.xlu2 %v8643_v16 }
 0x423   :  { %4430 = vmatmul.msk.bf16.vlgmr.msra.gmra.mxu0 %vm3071_vm8, %v4329_v44 }
 0x433   :  { %4431 = vmatmul.msk.bf16.gmra.mxu0 %vm3071_vm8, %v4349_v10 }
 0x440   :  { %v3099_v28 = vpop.f32.mrf.mxu0  ;;  %v3138_v39 = vpop.f32.mrf.mxu1 }
 0x441   :  { %v3139_v40 = vadd.f32 %v3138_v39, %v3099_v28 }
 0x443   :  { %4432 = vmatmul.msk.bf16.gmra.mxu0 %vm3071_vm8, %v4369_v38 }
 0x447   :  { %v3177_v25 = vpop.f32.mrf.mxu2 }
 0x448   :  { %v3101_v26 = vpop.f32.mrf.mxu0  ;;  %v3178_v24 = vadd.f32 %v3177_v25, %v3139_v40  ;;  %v3140_v13 = vpop.f32.mrf.mxu1 }
 0x449   :  { %v3141_v15 = vadd.f32 %v3140_v13, %v3101_v26 }
 0x44b   :  { %v3216_v33 = vpop.f32.mrf.mxu3 }
 0x44c   :  { %v3217_v19 = vadd.f32 %v3216_v33, %v3178_v24 }
 0x44f   :  { %v3179_v41 = vpop.f32.mrf.mxu2 }
 0x450   :  { %v3104_v55 = vpop.f32.mrf.mxu0  ;;  %v3180_v1 = vadd.f32 %v3179_v41, %v3141_v15  ;;  %v3143_v0 = vpop.f32.mrf.mxu1 }
 0x451   :  { %v3144_v54 = vadd.f32 %v3143_v0, %v3104_v55 }
 0x453   :  { %v3218_v23 = vpop.f32.mrf.mxu3  ;;  %4433 = vmatmul.msk.bf16.gmra.mxu0 %vm3071_vm8, %v4389_v12 }
 0x454   :  { %v3219_v35 = vadd.f32 %v3218_v23, %v3180_v1 }
 0x457   :  { %v3182_v18 = vpop.f32.mrf.mxu2 }
 0x458   :  { %v3106_v50 = vpop.f32.mrf.mxu0  ;;  %v3183_v11 = vadd.f32 %v3182_v18, %v3144_v54  ;;  %v3145_v20 = vpop.f32.mrf.mxu1 }
 0x459   :  { %v3146_v60 = vadd.f32 %v3145_v20, %v3106_v50 }
 0x45b   :  { %v3221_v31 = vpop.f32.mrf.mxu3 }
 0x45c   :  { %v3222_v34 = vadd.f32 %v3221_v31, %v3183_v11 }
 0x45f   :  { %v3184_v8 = vpop.f32.mrf.mxu2 }
 0x460   :  { %v3109_v7 = vpop.f32.mrf.mxu0  ;;  %v3148_v52 = vpop.f32.mrf.mxu1  ;;  %v3185_v3 = vadd.f32 %v3184_v8, %v3146_v60 }
 0x461   :  { %v3149_v28 = vadd.f32 %v3148_v52, %v3109_v7 }
 0x463   :  { %4434 = vmatmul.msk.bf16.gmra.mxu0 %vm3071_vm8, %v4409_v22  ;;  %v3223_v48 = vpop.f32.mrf.mxu3 }
 0x464   :  { %v3224_v32 = vadd.f32 %v3223_v48, %v3185_v3 }
 0x467   :  { %v3187_v29 = vpop.f32.mrf.mxu2 }
 0x468   :  { %v3111_v62 = vpop.f32.mrf.mxu0  ;;  %v3150_v17 = vpop.f32.mrf.mxu1  ;;  %v3188_v40 = vadd.f32 %v3187_v29, %v3149_v28 }
 0x469   :  { %v3151_v33 = vadd.f32 %v3150_v17, %v3111_v62 }
 0x46b   :  { %v3226_v27 = vpop.f32.mrf.mxu3 }
 0x46c   :  { %v3227_v13 = vadd.f32 %v3226_v27, %v3188_v40 }
 0x46f   :  { %v3189_v10 = vpop.f32.mrf.mxu2 }
 0x470   :  { %v3114_v9 = vpop.f32.mrf.mxu0  ;;  %v3153_v26 = vpop.f32.mrf.mxu1  ;;  %v3190_v59 = vadd.f32 %v3189_v10, %v3151_v33 }
 0x471   :  { %v3154_v54 = vadd.f32 %v3153_v26, %v3114_v9 }
 0x473   :  { %4435 = vmatmul.msk.bf16.gmra.mxu0 %vm3071_vm8, %v4429_v36  ;;  %v3228_v58 = vpop.f32.mrf.mxu3 }
 0x474   :  { %v3229_v55 = vadd.f32 %v3228_v58, %v3190_v59 }
 0x477   :  { %v3192_v24 = vpop.f32.mrf.mxu2 }
 0x478   :  { %v3116_v5 = vpop.f32.mrf.mxu0  ;;  %v3155_v41 = vpop.f32.mrf.mxu1 }
 0x479   :  { %v3156_v42 = vadd.f32 %v3155_v41, %v3116_v5 }
 0x47b   :  { %v3231_v45 = vpop.f32.mrf.mxu3 }
 0x47f   :  { %v3194_v1 = vpop.f32.mrf.mxu2 }
 0x480   :  { %v3119_v57 = vpop.f32.mrf.mxu0  ;;  %v3158_v31 = vpop.f32.mrf.mxu1  ;;  %v3195_v7 = vadd.f32 %v3194_v1, %v3156_v42 }
 0x481   :  { %v3159_v63 = vadd.f32 %v3158_v31, %v3119_v57 }
 0x483   :  { %v3233_v50 = vpop.f32.mrf.mxu3 }
 0x484   :  { %v3234_v51 = vadd.f32 %v3233_v50, %v3195_v7 }
 0x487   :  { %v3197_v22 = vpop.f32.mrf.mxu2 }
 0x488   :  { %v7812_v46 = vpop.f32.mrf.mxu0  ;;  %v3160_v30 = vpop.f32.mrf.mxu1  ;;  %v3198_v37 = vadd.f32 %v3197_v22, %v3159_v63 }
 0x48b   :  { %v3236_v62 = vpop.f32.mrf.mxu3 }
 0x48c   :  { %v3237_v20 = vadd.f32 %v3236_v62, %v3198_v37 }
 0x48f   :  { %v3199_v16 = vpop.f32.mrf.mxu2 }
 0x490   :  { %v7816_v53 = vpop.f32.mrf.mxu0 }
 0x493   :  { %v3238_v8 = vpop.f32.mrf.mxu3 }
 0x498   :  { %v7818_v61 = vpop.f32.mrf.mxu0 }
 0x49b   :  { %v3241_v60 = vpop.f32.mrf.mxu3 }
 0x4a0   :  { %v3255_v2 = vpop.f32.mrf.mxu0 }
 0x4a1   :  { %v3256_v56 = vadd.f32 %v3255_v2, %v3217_v19 }
 0x4a8   :  { %v3257_v43 = vpop.f32.mrf.mxu0 }
 0x4a9   :  { %v3258_v47 = vadd.f32 %v3257_v43, %v3219_v35  ;;  %v3193_v35 = vadd.f32 %v3192_v24, %v3154_v54  ;;  %v3163_v43 = vpop.f32.mrf.mxu1  ;;  %v3243_v24 = vpop.f32.mrf.mxu3 }
 0x4ab   :  { %v3232_v11 = vadd.f32 %v3231_v45, %v3193_v35 }
 0x4b0   :  { %v3260_v14 = vpop.f32.mrf.mxu0 }
 0x4b1   :  { %v3261_v44 = vadd.f32 %v3260_v14, %v3222_v34  ;;  %v3164_v14 = vadd.f32 %v3163_v43, %v7816_v53 }
 0x4b8   :  { %v3262_v38 = vpop.f32.mrf.mxu0 }
 0x4b9   :  { %v3263_v39 = vadd.f32 %v3262_v38, %v3224_v32  ;;  %v3165_v32 = vpop.f32.mrf.mxu1 }
 0x4bb   :  { %v3285_v25 = vmax.f32 %v3256_v56, %v3263_v39  ;;  %v3161_v56 = vadd.f32 %v3160_v30, %v7812_v46  ;;  %v3166_v39 = vadd.f32 %v3165_v32, %v7818_v61  ;;  %v3310_v61 = vpop.permute.xlu0 %3309 }
 0x4bd   :  { %v3200_v5 = vadd.f32 %v3199_v16, %v3161_v56 }
 0x4bf   :  { %v3239_v29 = vadd.f32 %v3238_v8, %v3200_v5 }
 0x4c0   :  { %v3265_v15 = vpop.f32.mrf.mxu0 }
 0x4c1   :  { %v3266_v19 = vadd.f32 %v3265_v15, %v3227_v13 }
 0x4c3   :  { %v3286_v12 = vmax.f32 %v3258_v47, %v3266_v19  ;;  %v3202_v47 = vpop.f32.mrf.mxu2 }
 0x4c4   :  { %v3203_v17 = vadd.f32 %v3202_v47, %v3164_v14 }
 0x4c6   :  { %v3242_v58 = vadd.f32 %v3241_v60, %v3203_v17 }
 0x4c8   :  { %v3267_v0 = vpop.f32.mrf.mxu0 }
 0x4c9   :  { %v3268_v23 = vadd.f32 %v3267_v0, %v3229_v55 }
 0x4cb   :  { %v3287_v18 = vmax.f32 %v3261_v44, %v3268_v23  ;;  %v3300_v44 = vpop.permute.xlu2 %3299  ;;  %v3204_v46 = vpop.f32.mrf.mxu2 }
 0x4cc   :  { %v3205_v26 = vadd.f32 %v3204_v46, %v3166_v39 }
 0x4ce   :  { %v3244_v15 = vadd.f32 %v3243_v24, %v3205_v26 }
 0x4d0   :  { %v3270_v34 = vpop.f32.mrf.mxu0 }
 0x4d1   :  { %v3271_v4 = vadd.f32 %v3270_v34, %v3232_v11  ;;  %v7844_v34 = vpop.permute.xlu0 %3396 }
 0x4d3   :  { %v3288_v49 = vmax.f32 %v3285_v25, %v3271_v4  ;;  %v3305_v25 = vpop.permute.xlu1 %3304  ;;  %v7838_v23 = vpop.permute.xlu2 %3392 }
 0x4d8   :  { %v3272_v6 = vpop.f32.mrf.mxu0 }
 0x4d9   :  { %v3273_v36 = vadd.f32 %v3272_v6, %v3234_v51 }
 0x4db   :  { %v3289_v9 = vmax.f32 %v3286_v12, %v3273_v36  ;;  %v3389_v54 = vpop.permute.xlu1 %3388 }
 0x4e0   :  { %v3275_v2 = vpop.f32.mrf.mxu0 }
 0x4e1   :  { %v3276_v48 = vadd.f32 %v3275_v2, %v3237_v20 }
 0x4e3   :  { %v3290_v52 = vmax.f32 %v3287_v18, %v3276_v48  ;;  %v3404_v35 = vpop.permute.xlu1 %3403  ;;  %v7840_v18 = vpop.permute.xlu2 %3407 }
 0x4e8   :  { %v3277_v27 = vpop.f32.mrf.mxu0 }
 0x4e9   :  { %v3278_v57 = vadd.f32 %v3277_v27, %v3239_v29 }
 0x4eb   :  { %v3291_v3 = vmax.f32 %v3288_v49, %v3278_v57  ;;  %v7842_v50 = vpop.permute.xlu1 %3411 }
 0x4ed   :  { %v3312_v10 = vadd.f32 %v3300_v44, %v3291_v3 }
 0x4ef   :  { %v7822_v38 = vmax.f32 %v3312_v10, 0.0 }
 0x4f0   :  { %v3280_v28 = vpop.f32.mrf.mxu0 }
 0x4f1   :  { %v3281_v40 = vadd.f32 %v3280_v28, %v3242_v58  ;;  %3318 = vadd.xlane.f32.xlu2 %v7822_v38  ;;  %v3327_v19 = vmul.f32 %v7822_v38, %v7822_v38 }
 0x4f3   :  { %v3292_v53 = vmax.f32 %v3289_v9, %v3281_v40 }
 0x4f5   :  { %v3313_v13 = vadd.f32 %v3305_v25, %v3292_v53 }
 0x4f7   :  { %v7826_v33 = vmax.f32 %v3313_v13, 0.0 }
 0x4f8   :  { %v3282_v45 = vpop.f32.mrf.mxu0 }
 0x4f9   :  { %v3283_v59 = vadd.f32 %v3282_v45, %v3244_v15  ;;  %3330 = vadd.xlane.f32.xlu2 %v3327_v19  ;;  %3320 = vadd.xlane.f32.xlu1 %v7826_v33  ;;  %v3328_v1 = vmul.f32 %v7826_v33, %v7826_v33 }
 0x4fb   :  { %v3293_v12 = vmax.f32 %v3290_v52, %v3283_v59 }
 0x4fd   :  { %v3314_v41 = vadd.f32 %v3310_v61, %v3293_v12 }
 0x4ff   :  { %v7831_v55 = vmax.f32 %v3314_v41, 0.0 }
 0x501   :  { %3322 = vadd.xlane.f32.xlu0 %v7831_v55  ;;  %3332 = vadd.xlane.f32.xlu1 %v3328_v1  ;;  %v3329_v0 = vmul.f32 %v7831_v55, %v7831_v55 }
 0x503   :  { %3334 = vadd.xlane.f32.xlu2 %v3329_v0 }
 0x564   :  { %v3319_v11 = vpop.xlane.xlu2 %3318 }
 0x565   :  { %v3324_v31 = vmul.f32 0.0078125, %v3319_v11 }
 0x567   :  { %v3339_v22 = vmul.f32 %v3324_v31, %v3324_v31  ;;  %v3348_v10 = vsub.f32 %v7822_v38, %v3324_v31 }
 0x56c   :  { %v3331_v42 = vpop.xlane.xlu2 %3330  ;;  %v3321_v4 = vpop.xlane.xlu1 %3320 }
 0x56d   :  { %v3336_v7 = vmul.f32 0.0078125, %v3331_v42  ;;  %v3325_v51 = vmul.f32 0.0078125, %v3321_v4 }
 0x56f   :  { %v3342_v49 = vsub.f32 %v3336_v7, %v3339_v22  ;;  %v3340_v30 = vmul.f32 %v3325_v51, %v3325_v51  ;;  %v3349_v19 = vsub.f32 %v7826_v33, %v3325_v51 }
 0x571   :  { %v3345_v62 = vmax.f32 %v3342_v49, 0.0 }
 0x573   :  { %v3351_v6 = vadd.f32 1e-05, %v3345_v62 }
 0x574   :  { %v3323_v63 = vpop.xlane.xlu0 %3322  ;;  %v3333_v36 = vpop.xlane.xlu1 %3332 }
 0x575   :  { %4711 = vrsqrt.f32 %v3351_v6  ;;  %v3326_v37 = vmul.f32 0.0078125, %v3323_v63  ;;  %v3337_v9 = vmul.f32 0.0078125, %v3333_v36  ;;  %vm3360_vm10 = vweird.f32 %v3351_v6 }
 0x576   :  { %v3335_v16 = vpop.xlane.xlu2 %3334 }
 0x577   :  { %v3341_v20 = vmul.f32 %v3326_v37, %v3326_v37  ;;  %v3343_v8 = vsub.f32 %v3337_v9, %v3340_v30  ;;  %v3338_v2 = vmul.f32 0.0078125, %v3335_v16  ;;  %v3350_v59 = vsub.f32 %v7831_v55, %v3326_v37 }
 0x579   :  { %v3346_v56 = vmax.f32 %v3343_v8, 0.0  ;;  %v3344_v48 = vsub.f32 %v3338_v2, %v3341_v20 }
 0x57b   :  { %v4712_v5 = vpop.eup %4711  ;;  %v3352_v52 = vadd.f32 1e-05, %v3346_v56  ;;  %v3347_v43 = vmax.f32 %v3344_v48, 0.0 }
 0x57c   :  { %v3355_v47 = vmul.f32 %v4712_v5, %v3351_v6  ;;  %vm3361_vm9 = vweird.f32 %v4712_v5 }
 0x57d   :  { %4713 = vrsqrt.f32 %v3352_v52  ;;  %v3353_v29 = vadd.f32 1e-05, %v3347_v43  ;;  %vm3362_vm11 = vmor %vm3360_vm10, %vm3361_vm9  ;;  %vm3370_vm13 = vweird.f32 %v3352_v52 }
 0x57e   :  { %v3356_v27 = vmul.f32 %v4712_v5, %v3355_v47 }
 0x57f   :  { %4715 = vrsqrt.f32 %v3353_v29  ;;  %vm3380_vm0 = vweird.f32 %v3353_v29 }
 0x580   :  { %v3357_v14 = vmul.f32 0.5, %v3356_v27 }
 0x582   :  { %v3358_v57 = vsub.f32 1.5, %v3357_v14 }
 0x583   :  { %v4714_v60 = vpop.eup %4713 }
 0x584   :  { %v3359_v44 = vmul.f32 %v4712_v5, %v3358_v57  ;;  %v3365_v17 = vmul.f32 %v4714_v60, %v3352_v52  ;;  %vm3371_vm12 = vweird.f32 %v4714_v60 }
 0x585   :  { %v4716_v3 = vpop.eup %4715  ;;  %vm3372_vm15 = vmor %vm3370_vm13, %vm3371_vm12 }
 0x586   :  { %v3363_v32 = vsel %vm3362_vm11, %v4712_v5, %v3359_v44  ;;  %v3366_v58 = vmul.f32 %v4714_v60, %v3365_v17  ;;  %v3375_v46 = vmul.f32 %v4716_v3, %v3353_v29  ;;  %vm3381_vm14 = vweird.f32 %v4716_v3 }
 0x587   :  { %v3384_v28 = vmul.f32 %v3363_v32, %v3348_v10  ;;  %vm3382_vm1 = vmor %vm3380_vm0, %vm3381_vm14 }
 0x588   :  { %v3367_v39 = vmul.f32 0.5, %v3366_v58  ;;  %v3376_v40 = vmul.f32 %v4716_v3, %v3375_v46 }
 0x589   :  { %v3399_v25 = vmul.f32 %v3389_v54, %v3384_v28 }
 0x58a   :  { %v3368_v26 = vsub.f32 1.5, %v3367_v39  ;;  %v3377_v53 = vmul.f32 0.5, %v3376_v40 }
 0x58b   :  { %v7847_v24 = vadd.f32 %v3404_v35, %v3399_v25 }
 0x58c   :  { %v3369_v13 = vmul.f32 %v4714_v60, %v3368_v26  ;;  %v3378_v15 = vsub.f32 1.5, %v3377_v53 }
 0x58d   :  { %3420 = vrot.lane.b32.xlu2 %v7847_v24, %s4732_s3  ;;  %3456 = vrot.lane.b32.xlu0 %v7847_v24, %s4733_s7 }
 0x58e   :  { %v3373_v38 = vsel %vm3372_vm15, %v4714_v60, %v3369_v13  ;;  %v3379_v45 = vmul.f32 %v4716_v3, %v3378_v15 }
 0x58f   :  { %v3385_v61 = vmul.f32 %v3373_v38, %v3349_v19 }
 0x590   :  { %v3383_v12 = vsel %vm3382_vm1, %v4716_v3, %v3379_v45 }
 0x591   :  { %v3400_v41 = vmul.f32 %v7838_v23, %v3385_v61  ;;  %v3386_v33 = vmul.f32 %v3383_v12, %v3350_v59  ;;  %v3583_v59 = vld [vmem:[%s8013_s8 + $0x20] sm:$0xff]  ;;  %v3585_v61 = vld [vmem:[%s8013_s8 + $0x30] sm:$0xff] }
 0x593   :  { %v7857_v1 = vadd.f32 %v7840_v18, %v3400_v41  ;;  %v3401_v0 = vmul.f32 %v7844_v34, %v3386_v33 }
 0x595   :  { %3546 = vrot.lane.b32.xlu0 %v7847_v24, %s4734_s24  ;;  %3449 = vrot.lane.b32.xlu1 %v7857_v1, %s4735_s25  ;;  %v4627_v55 = vpack.i.bf16 %v7857_v1, %v7847_v24  ;;  %v7866_v54 = vadd.f32 %v7842_v50, %v3401_v0 }
 0x597   :  { %4628 = vrot.lane.b32.xlu2 %v4627_v55, %s4736_s26  ;;  %v4637_v23 = vpack.i.bf16 %v7847_v24, %v7866_v54  ;;  %v4632_v35 = vpack.i.bf16 %v7866_v54, %v7857_v1 }
 0x59d   :  { %3492 = vrot.lane.b32.xlu0 %v7847_v24, %s4737_s27  ;;  %3539 = vrot.lane.b32.xlu1 %v7857_v1, %s4738_s28 }
 0x59f   :  { %4638 = vrot.lane.b32.xlu2 %v4637_v23, %s4735_s25 }
 0x5a5   :  { %3438 = vrot.lane.b32.xlu0 %v7847_v24, %s4739_s29  ;;  %3431 = vrot.lane.b32.xlu1 %v7857_v1, %s4740_s30 }
 0x5a7   :  { %4648 = vrot.lane.b32.xlu2 %v4637_v23, %s4738_s28 }
 0x5ad   :  { %3528 = vrot.lane.b32.xlu0 %v7847_v24, %s4741_s10  ;;  %3521 = vrot.lane.b32.xlu1 %v7857_v1, %s4742_s11 }
 0x5af   :  { %4653 = vrot.lane.b32.xlu2 %v4637_v23, %s4743_s12 }
 0x5b5   :  { %3474 = vrot.lane.b32.xlu0 %v7847_v24, %s4744_s0  ;;  %4633 = vrot.lane.b32.xlu1 %v4632_v35, %s4734_s24 }
 0x5b7   :  { %4658 = vrot.lane.b32.xlu2 %v4632_v35, %s4739_s29 }
 0x5bd   :  { %3485 = vrot.lane.b32.xlu0 %v7857_v1, %s4743_s12  ;;  %4643 = vrot.lane.b32.xlu1 %v4632_v35, %s4737_s27 }
 0x5bf   :  { %4668 = vrot.lane.b32.xlu2 %v4637_v23, %s4740_s30 }
 0x5c5   :  { %3467 = vrot.lane.b32.xlu0 %v7857_v1, %s4745_s13  ;;  %4663 = vrot.lane.b32.xlu1 %v4632_v35, %s4741_s10 }
 0x5c7   :  { %4678 = vrot.lane.b32.xlu2 %v4637_v23, %s4742_s11 }
 0x5cd   :  { %4698 = vrot.lane.b32.xlu0 %v4632_v35, %s4733_s7  ;;  %4673 = vrot.lane.b32.xlu1 %v4632_v35, %s4744_s0 }
 0x5cf   :  { %4683 = vrot.lane.b32.xlu2 %v4637_v23, %s4745_s13 }
 0x5d5   :  { %4693 = vrot.lane.b32.xlu1 %v4632_v35, %s4746_s14  ;;  %3632 = vperm.xlu0 %4702, %v3585_v61   ;;  %v4464_v61 = vld [vmem:[%s8014_s4 + $0x3c] sm:$0xf0] }
 0x5d7   :  { %4688 = vrot.lane.b32.xlu2 %v4632_v35, %s4732_s3 }
 0x5dd   :  { %3505 = vrot.lane.b32.xlu1 %v7866_v54, %s4736_s26 }
 0x5df   :  { %3510 = vrot.lane.b32.xlu2 %v7847_v24, %s4746_s14 }
 0x5e5   :  { %3622 = vperm.xlu1 %4703, %v3583_v59   ;;  %v4589_v59 = vld [vmem:[%s8014_s4 + $0x34] sm:$0xf] }
 0x5e7   :  { %v7886_v18 = vpop.permute.xlu2 %3420 }
 0x5e8   :  { %v3556_v33 = vpack.c.bf16 %v7886_v18, %v7866_v54  ;;  %v3581_v54 = vld [vmem:[%s8013_s8 + $0x10] sm:$0xff]  ;;  %v3555_v18 = vpack.c.bf16 %v7857_v1, %v7847_v24  ;;  %v7918_v24 = vld [vmem:[%s8013_s8] sm:$0xff]  ;;  %v3580_v1 = vld [vmem:[%s8013_s8 + $0x8] sm:$0xff] }
 0x5e9   :  { %3602 = vperm.xlu0 %4702, %v7918_v24  }
 0x5ed   :  { %3612 = vperm.xlu1 %4703, %v3581_v54  }
 0x5f1   :  { %v4629_v50 = vpop.permute.xlu2 %4628  ;;  %4706 = vset.pattern.permute.xlu0 %v8641_v21 }
 0x5f2   :  { %v4631_v11 = vunpack.i.h.bf16 %v4629_v50  ;;  %v4630_v31 = vunpack.i.l.bf16 %v4629_v50  ;;  %3796 = vperm.xlu0 %4706, %v3580_v1  }
 0x5f4   :  { %v3570_v34 = vpack.c.bf16 %v4631_v11, %v4630_v31  ;;  %v4438_v31 = vld [vmem:[%s8014_s4] sm:$0xf] }
 0x5f5   :  { %3607 = vperm.xlu1 %4703, %v3580_v1  }
 0x5f6   :  { %3722 = vmatpush.bf16.msrb.mxu2 %v3570_v34  ;;  %v4584_v34 = vld [vmem:[%s8014_s4 + $0x8] sm:$0xf0] }
 0x5f9   :  { %v4639_v42 = vpop.permute.xlu2 %4638 }
 0x5fa   :  { %v4640_v4 = vunpack.i.l.bf16 %v4639_v42  ;;  %v4641_v62 = vunpack.i.h.bf16 %v4639_v42 }
 0x5ff   :  { %v3457_v22 = vpop.permute.xlu0 %3456 }
 0x600   :  { %v3562_v7 = vpack.c.bf16 %v3457_v22, %v4640_v4  ;;  %v4439_v4 = vor.u32 %v4584_v34, %v4438_v31 }
 0x601   :  { %v4649_v49 = vpop.permute.xlu2 %4648 }
 0x602   :  { %3694 = vmatpush.bf16.msra.mxu1 %v3562_v7  ;;  %v4650_v32 = vunpack.i.l.bf16 %v4649_v49  ;;  %v4651_v28 = vunpack.i.h.bf16 %v4649_v49 }
 0x607   :  { %v3547_v51 = vpop.permute.xlu0 %3546  ;;  %v3450_v6 = vpop.permute.xlu1 %3449 }
 0x608   :  { %v3561_v63 = vpack.c.bf16 %v3450_v6, %v4641_v62  ;;  %v3577_v58 = vpack.c.bf16 %v3547_v51, %v4650_v32 }
 0x609   :  { %v4654_v36 = vpop.permute.xlu2 %4653 }
 0x60a   :  { %3695 = vmatpush.bf16.msra.mxu1 %v3561_v63  ;;  %v4655_v38 = vunpack.i.l.bf16 %v4654_v36  ;;  %v4656_v0 = vunpack.i.h.bf16 %v4654_v36 }
 0x60f   :  { %v3493_v30 = vpop.permute.xlu0 %3492  ;;  %v3540_v37 = vpop.permute.xlu1 %3539 }
 0x610   :  { %v3576_v26 = vpack.c.bf16 %v3540_v37, %v4651_v28  ;;  %v3568_v12 = vpack.c.bf16 %v3493_v30, %v4655_v38  ;;  %v4586_v28 = vld [vmem:[%s8014_s4 + $0x1c] sm:$0xf] }
 0x611   :  { %v4659_v9 = vpop.permute.xlu2 %4658 }
 0x612   :  { %v4661_v16 = vunpack.i.h.bf16 %v4659_v9  ;;  %v4660_v20 = vunpack.i.l.bf16 %v4659_v9 }
 0x614   :  { %v3560_v8 = vpack.c.bf16 %v4661_v16, %v4660_v20 }
 0x616   :  { %3696 = vmatpush.bf16.msra.mxu1 %v3560_v8 }
 0x617   :  { %v3439_v2 = vpop.permute.xlu0 %3438  ;;  %v3432_v56 = vpop.permute.xlu1 %3431 }
 0x619   :  { %v4669_v48 = vpop.permute.xlu2 %4668 }
 0x61a   :  { %v4670_v5 = vunpack.i.l.bf16 %v4669_v48  ;;  %v4671_v52 = vunpack.i.h.bf16 %v4669_v48 }
 0x61c   :  { %v3559_v43 = vpack.c.bf16 %v3439_v2, %v4670_v5  ;;  %v3558_v27 = vpack.c.bf16 %v3432_v56, %v4671_v52  ;;  %v4450_v52 = vld [vmem:[%s8014_s4 + $0x18] sm:$0xf] }
 0x61e   :  { %3697 = vmatpush.bf16.msra.mxu1 %v3559_v43  ;;  %v4587_v43 = vld [vmem:[%s8014_s4 + $0x20] sm:$0xf0] }
 0x61f   :  { %v3529_v47 = vpop.permute.xlu0 %3528  ;;  %v7888_v29 = vpop.permute.xlu1 %3521 }
 0x621   :  { %v4679_v14 = vpop.permute.xlu2 %4678 }
 0x622   :  { %3698 = vmatpush.bf16.msra.mxu1 %v3558_v27  ;;  %v4680_v35 = vunpack.i.l.bf16 %v4679_v14  ;;  %v4681_v22 = vunpack.i.h.bf16 %v4679_v14  ;;  %v4451_v27 = vor.u32 %v4587_v43, %v4450_v52 }
 0x624   :  { %v3574_v7 = vpack.c.bf16 %v3529_v47, %v4680_v35  ;;  %v3573_v6 = vpack.c.bf16 %v7888_v29, %v4681_v22  ;;  %v4583_v47 = vld [vmem:[%s8014_s4 + $0x4] sm:$0xf]  ;;  %v4440_v29 = vld [vmem:[%s8014_s4 + $0xc] sm:$0xf0] }
 0x627   :  { %v4634_v57 = vpop.permute.xlu1 %4633  ;;  %v7890_v17 = vpop.permute.xlu0 %3474 }
 0x628   :  { %v4636_v60 = vunpack.i.h.bf16 %v4634_v57  ;;  %v4635_v44 = vunpack.i.l.bf16 %v4634_v57  ;;  %v4446_v57 = vld [vmem:[%s8014_s4 + $0x8] sm:$0xf] }
 0x629   :  { %v7892_v3 = vpop.permute.xlu2 %4683 }
 0x62a   :  { %v3578_v10 = vpack.c.bf16 %v4636_v60, %v4635_v44  ;;  %v4685_v63 = vunpack.i.l.bf16 %v7892_v3  ;;  %v4686_v16 = vunpack.i.h.bf16 %v7892_v3  ;;  %v4585_v60 = vld [vmem:[%s8014_s4 + $0x10] sm:$0xf0]  ;;  %v4443_v3 = vor.u32 %v4583_v47, %v4440_v29 }
 0x62b   :  { %v4447_v32 = vor.u32 %v4585_v60, %v4446_v57 }
 0x62c   :  { %3750 = vmatpush.bf16.msra.mxu3 %v3578_v10  ;;  %v3565_v30 = vpack.c.bf16 %v7890_v17, %v4685_v63 }
 0x62f   :  { %v4644_v46 = vpop.permute.xlu1 %4643  ;;  %v3486_v19 = vpop.permute.xlu0 %3485 }
 0x630   :  { %v4646_v39 = vunpack.i.h.bf16 %v4644_v46  ;;  %v4645_v40 = vunpack.i.l.bf16 %v4644_v46  ;;  %3751 = vmatpush.bf16.msra.mxu3 %v3577_v58  ;;  %v3567_v50 = vpack.c.bf16 %v3486_v19, %v4656_v0  ;;  %v4462_v58 = vld [vmem:[%s8014_s4 + $0x30] sm:$0xf]  ;;  %v4590_v46 = vld [vmem:[%s8014_s4 + $0x38] sm:$0xf0]  ;;  %v3598_v19 = vld [vmem:[%s8014_s4 + $0x48] sm:$0x11]  ;;  %v4467_v0 = vor.u32 %v4589_v59, %v4464_v61 }
 0x631   :  { %v4689_v25 = vpop.permute.xlu2 %4688  ;;  %v3667_v38 = vunpack.c.l.b16 %v3598_v19  ;;  %v3668_v35 = vunpack.c.h.b16 %v3598_v19 }
 0x632   :  { %v3569_v53 = vpack.c.bf16 %v4646_v39, %v4645_v40  ;;  %v4691_v13 = vunpack.i.h.bf16 %v4689_v25  ;;  %v4690_v15 = vunpack.i.l.bf16 %v4689_v25  ;;  %v4452_v39 = vld [vmem:[%s8014_s4 + $0x24] sm:$0xf0]  ;;  %v4463_v40 = vor.u32 %v4590_v46, %v4462_v58  ;;  %v4458_v25 = vld [vmem:[%s8014_s4 + $0x20] sm:$0xf] }
 0x634   :  { %v3557_v45 = vpack.c.bf16 %v4691_v13, %v4690_v15  ;;  %3723 = vmatpush.bf16.msrb.mxu2 %v3569_v53  ;;  %3752 = vmatpush.bf16.msra.mxu3 %v3576_v26  ;;  %v4588_v26 = vld [vmem:[%s8014_s4 + $0x28] sm:$0xf0]  ;;  %v4455_v53 = vor.u32 %v4586_v28, %v4452_v39 }
 0x635   :  { %v4459_v13 = vor.u32 %v4588_v26, %v4458_v25  ;;  %v3584_v15 = vld [vmem:[%s8013_s8 + $0x28] sm:$0xff] }
 0x636   :  { %3699 = vmatpush.bf16.msra.mxu1 %v3557_v45  ;;  %3627 = vperm.xlu2 %4704, %v3584_v15   ;;  %v3582_v45 = vld [vmem:[%s8013_s8 + $0x18] sm:$0xff] }
 0x637   :  { %v4664_v41 = vpop.permute.xlu1 %4663  ;;  %v3468_v42 = vpop.permute.xlu0 %3467 }
 0x638   :  { %v4666_v55 = vunpack.i.h.bf16 %v4664_v41  ;;  %v4665_v23 = vunpack.i.l.bf16 %v4664_v41  ;;  %3724 = vmatpush.bf16.msrb.mxu2 %v3568_v12  ;;  %v3564_v2 = vpack.c.bf16 %v3468_v42, %v4686_v16  ;;  %v3679_v12 = vpack.c.b16 %v3667_v38, %v3667_v38  ;;  %v4470_v41 = vld [vmem:[%s8014_s4 + $0x38] sm:$0xf] }
 0x639   :  { %v3511_v44 = vpop.permute.xlu2 %3510 }
 0x63a   :  { %v3575_v11 = vpack.c.bf16 %v4666_v55, %v4665_v23  ;;  %3700 = vmatpush.bf16.msra.mxu1 %v3556_v33  ;;  %v4591_v33 = vld [vmem:[%s8014_s4 + $0x40] sm:$0xf0]  ;;  %v3599_v23 = vld [vmem:[%s8014_s4 + $0x50] sm:$0x1] }
 0x63b   :  { %v4471_v55 = vor.u32 %v4591_v33, %v4470_v41 }
 0x63c   :  { %3725 = vmatpush.bf16.msrb.mxu2 %v3567_v50  ;;  %3753 = vmatpush.bf16.msra.mxu3 %v3575_v11  ;;  %v3669_v50 = vunpack.c.l.b16 %v3599_v23  ;;  %v3680_v11 = vpack.c.b16 %v3668_v35, %v3668_v35 }
 0x63e   :  { %3701 = vmatpush.bf16.msra.mxu1 %v3555_v18  ;;  %3617 = vperm.xlu2 %4704, %v3582_v45   ;;  %v3681_v31 = vpack.c.b16 %v3669_v50, %v3669_v50 }
 0x63f   :  { %v4674_v49 = vpop.permute.xlu1 %4673  ;;  %v4699_v37 = vpop.permute.xlu0 %4698 }
 0x640   :  { %v4676_v62 = vunpack.i.h.bf16 %v4674_v49  ;;  %v4675_v51 = vunpack.i.l.bf16 %v4674_v49  ;;  %3754 = vmatpush.bf16.msra.mxu3 %v3574_v7  ;;  %v4701_v56 = vunpack.i.h.bf16 %v4699_v37  ;;  %v4700_v48 = vunpack.i.l.bf16 %v4699_v37 }
 0x641   :  { %3702 = vmatmul.bf16.vlgmr.msra.gmra.mxu1 %v4439_v4 }
 0x642   :  { %v3566_v36 = vpack.c.bf16 %v4676_v62, %v4675_v51  ;;  %v3563_v14 = vpack.c.bf16 %v4701_v56, %v4700_v48 }
 0x644   :  { %3726 = vmatpush.bf16.msrb.mxu2 %v3566_v36  ;;  %3755 = vmatpush.bf16.msra.mxu3 %v3573_v6 }
 0x646   :  { %4705 = vset.pattern.permute.xlu2 %v8641_v21 }
 0x647   :  { %v4694_v9 = vpop.permute.xlu1 %4693  ;;  %3792 = vperm.xlu2 %4705, %v7918_v24   ;;  %v3633_v42 = vpop.permute.xlu0 %3632 }
 0x648   :  { %v4696_v20 = vunpack.i.h.bf16 %v4694_v9  ;;  %v4695_v8 = vunpack.i.l.bf16 %v4694_v9  ;;  %3727 = vmatpush.bf16.msrb.mxu2 %v3565_v30 }
 0x64a   :  { %v3572_v5 = vpack.c.bf16 %v4696_v20, %v4695_v8 }
 0x64c   :  { %3728 = vmatpush.bf16.msrb.mxu2 %v3564_v2  ;;  %3756 = vmatpush.bf16.msra.mxu3 %v3572_v5 }
 0x64f   :  { %v3506_v17 = vpop.permute.xlu1 %3505 }
 0x650   :  { %v3571_v10 = vpack.c.bf16 %v3511_v44, %v3506_v17  ;;  %3729 = vmatpush.bf16.msrb.mxu2 %v3563_v14 }
 0x651   :  { %3707 = vmatmul.bf16.gmra.mxu1 %v4451_v27 }
 0x652   :  { %3757 = vmatpush.bf16.msra.mxu3 %v3571_v10 }
 0x653   :  { %3730 = vmatmul.bf16.vlgmr.msrb.gmra.mxu2 %v4443_v3 }
 0x655   :  { %3758 = vmatmul.bf16.vlgmr.msra.gmra.mxu3 %v4447_v32 }
 0x657   :  { %v3623_v54 = vpop.permute.xlu1 %3622 }
 0x65b   :  { %v3603_v7 = vpop.permute.xlu0 %3602 }
 0x65f   :  { %v3613_v22 = vpop.permute.xlu1 %3612 }
 0x661   :  { %3712 = vmatmul.bf16.gmra.mxu1 %v4463_v40 }
 0x663   :  { %3735 = vmatmul.bf16.gmra.mxu2 %v4455_v53 }
 0x665   :  { %3763 = vmatmul.bf16.gmra.mxu3 %v4459_v13 }
 0x667   :  { %v3608_v6 = vpop.permute.xlu1 %3607 }
 0x671   :  { %3717 = vmatmul.bf16.gmra.mxu1 %v3679_v12 }
 0x673   :  { %3740 = vmatmul.bf16.gmra.mxu2 %v4467_v0 }
 0x675   :  { %3768 = vmatmul.bf16.gmra.mxu3 %v4471_v55 }
 0x683   :  { %3745 = vmatmul.bf16.gmra.mxu2 %v3680_v11 }
 0x685   :  { %3773 = vmatmul.bf16.gmra.mxu3 %v3681_v31 }
 0x690   :  { %v3628_v57 = vpop.permute.xlu2 %3627 }
 0x698   :  { %v3618_v32 = vpop.permute.xlu2 %3617 }
 0x6be   :  { %v3703_v34 = vpop.f32.mrf.mxu1 }
 0x6bf   :  { %v3704_v62 = vadd.f32 %v3703_v34, %v3603_v7  ;;  %v4474_v34 = vld [vmem:[%s8015_s5] sm:$0xf] }
 0x6c6   :  { %v3705_v18 = vpop.f32.mrf.mxu1 }
 0x6c7   :  { %v3706_v36 = vadd.f32 %v3705_v18, %v3608_v6 }
 0x6ce   :  { %v3708_v4 = vpop.f32.mrf.mxu1 }
 0x6cf   :  { %v3709_v39 = vadd.f32 %v3708_v4, %v3613_v22  ;;  %v3793_v4 = vpop.permute.xlu2 %3792  ;;  %v3797_v22 = vpop.permute.xlu0 %3796 }
 0x6d6   :  { %v3731_v21 = vpop.f32.mrf.mxu2  ;;  %v3710_v49 = vpop.f32.mrf.mxu1 }
 0x6d7   :  { %v3732_v63 = vadd.f32 %v3731_v21, %v3704_v62  ;;  %v3711_v40 = vadd.f32 %v3710_v49, %v3618_v32 }
 0x6d8   :  { %v3759_v51 = vpop.f32.mrf.mxu3 }
 0x6d9   :  { %v3760_v30 = vadd.f32 %v3759_v51, %v3732_v63 }
 0x6db   :  { %v3778_v20 = vmax.f32 %v3760_v30, 0.0 }
 0x6de   :  { %v3733_v24 = vpop.f32.mrf.mxu2  ;;  %v3713_v1 = vpop.f32.mrf.mxu1 }
 0x6df   :  { %v3734_v37 = vadd.f32 %v3733_v24, %v3706_v36  ;;  %v3714_v3 = vadd.f32 %v3713_v1, %v3623_v54  ;;  %v4592_v54 = vld [vmem:[%s8015_s5] sm:$0x10] }
 0x6e0   :  { %v3761_v9 = vpop.f32.mrf.mxu3  ;;  %v4475_v18 = vor.u32 %v4592_v54, %v4474_v34 }
 0x6e1   :  { %v3762_v16 = vadd.f32 %v3761_v9, %v3734_v37 }
 0x6e3   :  { %v3779_v8 = vmax.f32 %v3762_v16, 0.0 }
 0x6e5   :  { %v3787_v2 = vpack.c.bf16 %v3779_v8, %v3778_v20 }
 0x6e6   :  { %v3736_v56 = vpop.f32.mrf.mxu2  ;;  %v3715_v48 = vpop.f32.mrf.mxu1 }
 0x6e7   :  { %v3716_v10 = vadd.f32 %v3715_v48, %v3628_v57  ;;  %v3737_v38 = vadd.f32 %v3736_v56, %v3709_v39 }
 0x6e8   :  { %v3764_v5 = vpop.f32.mrf.mxu3 }
 0x6e9   :  { %v3765_v0 = vadd.f32 %v3764_v5, %v3737_v38 }
 0x6eb   :  { %v3780_v11 = vmax.f32 %v3765_v0, 0.0 }
 0x6ee   :  { %v3738_v52 = vpop.f32.mrf.mxu2  ;;  %v3718_v43 = vpop.f32.mrf.mxu1 }
 0x6ef   :  { %v3719_v17 = vadd.f32 %v3718_v43, %v3633_v42  ;;  %v3739_v13 = vadd.f32 %v3738_v52, %v3711_v40 }
 0x6f0   :  { %v3766_v47 = vpop.f32.mrf.mxu3 }
 0x6f1   :  { %v3767_v61 = vadd.f32 %v3766_v47, %v3739_v13 }
 0x6f3   :  { %v3781_v35 = vmax.f32 %v3767_v61, 0.0 }
 0x6f5   :  { %v3788_v31 = vpack.c.bf16 %v3781_v35, %v3780_v11 }
 0x6f6   :  { %v3741_v29 = vpop.f32.mrf.mxu2  ;;  %v3720_v27 = vpop.f32.mrf.mxu1 }
 0x6f7   :  { %v3742_v25 = vadd.f32 %v3741_v29, %v3714_v3 }
 0x6f8   :  { %v3769_v14 = vpop.f32.mrf.mxu3 }
 0x6f9   :  { %v3770_v45 = vadd.f32 %v3769_v14, %v3742_v25 }
 0x6fb   :  { %v3782_v55 = vmax.f32 %v3770_v45, 0.0 }
 0x6fe   :  { %v3743_v60 = vpop.f32.mrf.mxu2 }
 0x6ff   :  { %v3744_v58 = vadd.f32 %v3743_v60, %v3716_v10 }
 0x700   :  { %v3771_v44 = vpop.f32.mrf.mxu3 }
 0x701   :  { %v3772_v15 = vadd.f32 %v3771_v44, %v3744_v58 }
 0x703   :  { %v3783_v12 = vmax.f32 %v3772_v15, 0.0 }
 0x705   :  { %v3789_v50 = vpack.c.bf16 %v3783_v12, %v3782_v55 }
 0x706   :  { %v3746_v46 = vpop.f32.mrf.mxu2 }
 0x707   :  { %v3747_v28 = vadd.f32 %v3746_v46, %v3719_v17 }
 0x708   :  { %v3774_v26 = vpop.f32.mrf.mxu3 }
 0x709   :  { %v3775_v53 = vadd.f32 %v3774_v26, %v3747_v28 }
 0x70b   :  { %v3784_v19 = vmax.f32 %v3775_v53, 0.0 }
 0x70d   :  { %v3790_v59 = vpack.c.bf16 %v3784_v19, %v3784_v19 }
 0x70e   :  { %v3748_v41 = vpop.f32.mrf.mxu2 }
 0x70f   :  { %v3810_v33 = vsel %vm3808_vm2, %v3790_v59, 0 }
 0x710   :  { %v3776_v23 = vpop.f32.mrf.mxu3  ;;  %3816 = vmatpush.bf16.msrb.mxu1 %v3810_v33 }
 0x714   :  { %3817 = vmatpush.bf16.msrb.mxu1 %v3789_v50 }
 0x718   :  { %3818 = vmatpush.bf16.msrb.mxu1 %v3788_v31 }
 0x71c   :  { %3819 = vmatpush.bf16.msrb.mxu1 %v3787_v2 }
 0x71f   :  { %4476 = vmatmul.msk.bf16.vlgmr.msrb.gmra.mxu1 %vm3804_vm3, %v4475_v18 }
 0x79c   :  { %v3821_v42 = vpop.f32.mrf.mxu1 }
 0x79d   :  { %v3822_v7 = vadd.f32 %v3821_v42, %v3793_v4 }
 0x79f   :  { %v3827_v62 = vsel %vm3826_vm4, %v3822_v7, -inf }
 0x7a4   :  { %v3823_v21 = vpop.f32.mrf.mxu1 }
 0x7a5   :  { %v3824_v49 = vadd.f32 %v3823_v21, %v3797_v22 }
 0x7a7   :  { %v3829_v51 = vsel %vm3828_vm5, %v3824_v49, -inf }
 0x7a8   :  { %v3830_v6 = vmax.f32 %v3827_v62, %v3829_v51 }
 0x7aa   :  { %v3831_v63 = vrot.slane %v3830_v6, 4 }
 0x7ac   :  { %v3832_v36 = vmax.f32 %v3830_v6, %v3831_v63 }
 0x7ae   :  { %v3833_v24 = vrot.slane %v3832_v36, 2 }
 0x7b0   :  { %v3834_v1 = vmax.f32 %v3832_v36, %v3833_v24 }
 0x7b2   :  { %v3835_v30 = vrot.slane %v3834_v1, 1 }
 0x7b4   :  { %v3836_v37 = vmax.f32 %v3834_v1, %v3835_v30 }
 0x7b6   :  { %v3837_v9 = vsub.f32 %v3822_v7, %v3836_v37  ;;  %v3838_v16 = vsub.f32 %v3824_v49, %v3836_v37 }
 0x7b8   :  { %v3839_v20 = vmul.f32 1.442695, %v3837_v9  ;;  %v3841_v8 = vmul.f32 1.442695, %v3838_v16 }
 0x7ba   :  { %4717 = vpow2.f32 %v3839_v20 }
 0x7bb   :  { %4719 = vpow2.f32 %v3841_v8 }
 0x7c0   :  { %v4718_v2 = vpop.eup %4717 }
 0x7c1   :  { %v4720_v56 = vpop.eup %4719  ;;  %v3843_v48 = vsel %vm3826_vm4, %v4718_v2, 0.0 }
 0x7c2   :  { %v3844_v5 = vsel %vm3828_vm5, %v4720_v56, 0.0 }
 0x7c3   :  { %v3845_v52 = vadd.f32 %v3844_v5, %v3843_v48 }
 0x7c5   :  { %v3846_v43 = vrot.slane %v3845_v52, 4 }
 0x7c7   :  { %v3847_v47 = vadd.f32 %v3846_v43, %v3845_v52 }
 0x7c9   :  { %v3848_v29 = vrot.slane %v3847_v47, 2 }
 0x7cb   :  { %v3849_v27 = vadd.f32 %v3848_v29, %v3847_v47 }
 0x7cd   :  { %v3850_v14 = vrot.slane %v3849_v27, 1 }
 0x7cf   :  { %v3851_v57 = vadd.f32 %v3850_v14, %v3849_v27 }
 0x7d1   :  { %4721 = vlog2.f32 %v3851_v57 }
 0x7d7   :  { %v4722_v60 = vpop.eup %4721 }
 0x7d8   :  { %v3853_v44 = vmul.f32 0.6931472, %v4722_v60 }
 0x7da   :  { %v3854_v17 = vsub.f32 %v3837_v9, %v3853_v44  ;;  %v3855_v3 = vsub.f32 %v3838_v16, %v3853_v44 }
 0x7dc   :  { %3856 = vst.msk [vmem:[%s8016_s9] sm:$0xff] %vm3826_vm4, %v3854_v17 }
 0x7dd   :  { %3857 = vst.msk [vmem:[%s8016_s9 + $0x8] sm:$0x3] %vm3828_vm5, %v3855_v3 }

</bundles_post_ra>
